<compile_context>
chip_gen: v7x
topology: tpu7x:2x2x1
jax: 0.10.0
libtpu: 0.0.40
codegen_flags: <defaults>
</compile_context>

<pallas_src>
import jax
import jax.numpy as jnp
from jax import lax
from jax.experimental import pallas as pl
from jax.experimental.pallas import tpu as pltpu


def _make_kernel(H, W, C, TH):
    f32 = jnp.float32
    bf16 = jnp.bfloat16
    n_full = H // TH
    rem = H - n_full * TH

    def kernel(xr_ref, w1_ref, w2_ref, s1_ref, b1_ref, s2_ref, b2_ref,
               out_ref, hbuf):
        # xr_ref : (H+2, W, C) f32   row-zero-padded input (batch dim squeezed)
        # w1/w2  : (3, 3C, C) bf16   per-kx weight matrices, K index = ky*C + ci
        # s*/b*  : (1, C) f32        folded BN affine (absorbs conv bias)
        # out_ref: (H, W, C) f32
        # hbuf   : (H+2, W, C) bf16  row-haloed relu(bn1(conv1(x)))

        # Zero ONLY the two halo rows; interior is fully overwritten.  Done per
        # grid step (do NOT gate on program_id under "parallel" semantics).
        zrow = jnp.zeros((1, W, C), bf16)
        hbuf[0:1, :, :] = zrow
        hbuf[H + 1:H + 2, :, :] = zrow

        # Hoisted per-channel affines and column-edge masks.
        s1f = jnp.broadcast_to(s1_ref[...].reshape(1, 1, C), (TH, W, C))
        b1f = jnp.broadcast_to(b1_ref[...].reshape(1, 1, C), (TH, W, C))
        s2f = jnp.broadcast_to(s2_ref[...].reshape(1, 1, C), (TH, W, C))
        b2f = jnp.broadcast_to(b2_ref[...].reshape(1, 1, C), (TH, W, C))
        col = lax.broadcasted_iota(jnp.int32, (TH, W, C), 1)
        not_first = col > 0          # column x-1 exists
        not_last = col < (W - 1)     # column x+1 exists

        def conv3x3(win_bf, w_ref, th):
            # win_bf: (th+2, W, C) bf16 row window (rows already zero-haloed).
            # Returns (th, W, C) f32 = 3x3 conv with padding=1 over that window.
            # ky folded into K: lhs[y, x, ky*C + c] = win_bf[y + ky, x, c].
            lhs = jnp.concatenate(
                [win_bf[0:th], win_bf[1:th + 1], win_bf[2:th + 2]], axis=-1)
            y0 = jnp.dot(lhs, w_ref[0], preferred_element_type=f32)  # kx = 0
            y1 = jnp.dot(lhs, w_ref[1], preferred_element_type=f32)  # kx = 1
            y2 = jnp.dot(lhs, w_ref[2], preferred_element_type=f32)  # kx = 2
            # out[x] = y0[x-1] + y1[x] + y2[x+1], zero outside [0, W).
            left = jnp.where(not_first[:th], pltpu.roll(y0, 1, axis=1), 0.0)
            right = jnp.where(not_last[:th], pltpu.roll(y2, W - 1, axis=1), 0.0)
            return left + y1 + right

        def conv1_strip(r0, th):
            win = xr_ref[pl.ds(r0, th + 2), :, :].astype(bf16)  # one cast/strip
            acc = conv3x3(win, w1_ref, th)
            h = jnp.maximum(acc * s1f[:th] + b1f[:th], 0.0)
            hbuf[pl.ds(r0 + 1, th), :, :] = h.astype(bf16)       # aligned store

        def conv2_strip(r0, th):
            win = hbuf[pl.ds(r0, th + 2), :, :]                  # already bf16
            acc = conv3x3(win, w2_ref, th)
            # Residual from the row-padded block already resident in VMEM;
            # columns are unpadded so this load is fully aligned.
            resid = xr_ref[pl.ds(r0 + 1, th), :, :]
            out_ref[pl.ds(r0, th), :, :] = (
                acc * s2f[:th] + b2f[:th] + resid).astype(out_ref.dtype)

        def run_pass(strip_fn):
            if n_full <= 4:
                for s in range(n_full):          # short: unroll for LLO sched
                    strip_fn(s * TH, TH)
            else:
                @pl.loop(0, n_full)              # long: keep live ranges tight
                def _(s):
                    strip_fn(s * TH, TH)
            if rem:
                strip_fn(n_full * TH, rem)       # remainder strip

        run_pass(conv1_strip)   # fill hbuf interior with relu(bn1(conv1(x)))
        run_pass(conv2_strip)   # conv2 + bn2 + residual add -> out

    return kernel


def residual_block_pallas(x_nchw, params):
    """x_nchw: (N, C, H, W) float32. Returns (N, C, H, W) float32."""
    N, C, H, W = x_nchw.shape
    eps = 1e-5

    # Strip height: target ~256 output pixels per MXU call (fills the 256-wide
    # MXUs on v6e/v7x; v5e is already matched at M>=128).  Remainder strips are
    # handled in-kernel, so TH does not need to divide H.
    TH = max(1, min(H, max(1, 256 // max(1, W))))

    # NCHW -> NHWC (channels on the 128-lane axis); pad ROWS only by 1.
    # Columns stay unpadded so every VMEM access is sublane-aligned; the +/-1
    # column taps are handled in-kernel via roll + edge masks.
    x = jnp.transpose(x_nchw, (0, 2, 3, 1)).astype(jnp.float32)
    xr = jnp.pad(x, ((0, 0), (1, 1), (0, 0), (0, 0)))

    # PyTorch (Cout, Cin, kh, kw) -> per-kx matrices (kw, kh*Cin, Cout) so the
    # three ky taps fold into the contraction (K = 3*Cin).  bf16 MXU operands.
    def prep_w(w_oihw):
        w = jnp.transpose(w_oihw, (3, 2, 1, 0))      # (kw, kh, Cin, Cout)
        return w.reshape(3, 3 * C, C).astype(jnp.bfloat16)

    w1c = prep_w(params["conv1_w"])
    w2c = prep_w(params["conv2_w"])

    # Fold eval-mode BN + conv bias into a per-channel scale/shift (f32).
    def fold(bias, gamma, beta, mean, var):
        s = gamma / jnp.sqrt(var + eps)
        b = (bias - mean) * s + beta
        return (s.reshape(1, C).astype(jnp.float32),
                b.reshape(1, C).astype(jnp.float32))

    s1, b1 = fold(params["conv1_b"], params["bn1_g"], params["bn1_b"],
                  params["bn1_m"], params["bn1_v"])
    s2, b2 = fold(params["conv2_b"], params["bn2_g"], params["bn2_b"],
                  params["bn2_m"], params["bn2_v"])

    kernel = _make_kernel(H, W, C, TH)

    out_nhwc = pl.pallas_call(
        kernel,
        out_shape=jax.ShapeDtypeStruct((N, H, W, C), jnp.float32),
        grid=(N,),
        in_specs=[
            pl.BlockSpec((None, H + 2, W, C), lambda n: (n, 0, 0, 0)),  # x (rows padded)
            pl.BlockSpec((3, 3 * C, C), lambda n: (0, 0, 0)),            # w1 (bf16)
            pl.BlockSpec((3, 3 * C, C), lambda n: (0, 0, 0)),            # w2 (bf16)
            pl.BlockSpec((1, C), lambda n: (0, 0)),                      # s1
            pl.BlockSpec((1, C), lambda n: (0, 0)),                      # b1
            pl.BlockSpec((1, C), lambda n: (0, 0)),                      # s2
            pl.BlockSpec((1, C), lambda n: (0, 0)),                      # b2
        ],
        out_specs=pl.BlockSpec((None, H, W, C), lambda n: (n, 0, 0, 0)),
        scratch_shapes=[pltpu.VMEM((H + 2, W, C), jnp.bfloat16)],
        compiler_params=pltpu.CompilerParams(
            dimension_semantics=("parallel",),
            vmem_limit_bytes=64 * 1024 * 1024),
    )(xr, w1c, w2c, s1, b1, s2, b2)

    # NHWC -> NCHW
    return jnp.transpose(out_nhwc, (0, 3, 1, 2))


def residual_block_ref(x_nchw, params):
    """Plain-JAX reference: eval-mode BN, convs with bf16 operands and f32
    accumulation (matching the kernel's MXU precision); everything else f32."""
    eps = 1e-5
    x = jnp.transpose(x_nchw, (0, 2, 3, 1)).astype(jnp.float32)
    C = x.shape[-1]
    dn = lax.conv_dimension_numbers(x.shape, (3, 3, C, C), ("NHWC", "HWIO", "NHWC"))

    def conv(inp, w_oihw, b):
        w = jnp.transpose(w_oihw, (2, 3, 1, 0))
        y = lax.conv_general_dilated(
            inp.astype(jnp.bfloat16), w.astype(jnp.bfloat16), (1, 1),
            ((1, 1), (1, 1)), dimension_numbers=dn,
            preferred_element_type=jnp.float32)
        return y + b

    def bn(y, g, b, m, v):
        return (y - m) / jnp.sqrt(v + eps) * g + b

    h = bn(conv(x, params["conv1_w"], params["conv1_b"]),
           params["bn1_g"], params["bn1_b"], params["bn1_m"], params["bn1_v"])
    h = jnp.maximum(h, 0.0)
    h = bn(conv(h, params["conv2_w"], params["conv2_b"]),
           params["bn2_g"], params["bn2_b"], params["bn2_m"], params["bn2_v"])
    return jnp.transpose(h + x, (0, 3, 1, 2))


if __name__ == "__main__":
    # Channels match the module signature (128); small spatial size for the test.
    N, C, H, W = 2, 128, 16, 16
    key = jax.random.PRNGKey(0)
    keys = jax.random.split(key, 13)
    ws = 0.03  # ~ PyTorch default Conv2d init scale for fan_in = 9*128

    params = {
        "conv1_w": ws * jax.random.normal(keys[0], (C, C, 3, 3), jnp.float32),
        "conv1_b": ws * jax.random.normal(keys[1], (C,), jnp.float32),
        "conv2_w": ws * jax.random.normal(keys[2], (C, C, 3, 3), jnp.float32),
        "conv2_b": ws * jax.random.normal(keys[3], (C,), jnp.float32),
        "bn1_g": 1.0 + 0.1 * jax.random.normal(keys[4], (C,), jnp.float32),
        "bn1_b": 0.1 * jax.random.normal(keys[5], (C,), jnp.float32),
        "bn1_m": 0.1 * jax.random.normal(keys[6], (C,), jnp.float32),
        "bn1_v": jax.random.uniform(keys[7], (C,), jnp.float32, 0.5, 1.5),
        "bn2_g": 1.0 + 0.1 * jax.random.normal(keys[8], (C,), jnp.float32),
        "bn2_b": 0.1 * jax.random.normal(keys[9], (C,), jnp.float32),
        "bn2_m": 0.1 * jax.random.normal(keys[10], (C,), jnp.float32),
        "bn2_v": jax.random.uniform(keys[11], (C,), jnp.float32, 0.5, 1.5),
    }

    x = jax.random.normal(keys[12], (N, C, H, W), jnp.float32)

    out = jax.block_until_ready(residual_block_pallas(x, params))
    ref = jax.block_until_ready(residual_block_ref(x, params))

    assert out.shape == (N, C, H, W)
    err = float(jnp.max(jnp.abs(out - ref)))
    assert err < 2e-2, f"mismatch vs JAX reference: {err}"
    print("KERNEL_OK")
</pallas_src>

<mosaic_0001>
module attributes {stable_mosaic.version = 11 : i64} {
  func.func @kernel(%arg0: i32, %arg1: memref<1x18x16x128xf32, #tpu.memory_space<vmem>>, %arg2: memref<3x384x128xbf16, #tpu.memory_space<vmem>>, %arg3: memref<3x384x128xbf16, #tpu.memory_space<vmem>>, %arg4: memref<1x128xf32, #tpu.memory_space<vmem>>, %arg5: memref<1x128xf32, #tpu.memory_space<vmem>>, %arg6: memref<1x128xf32, #tpu.memory_space<vmem>>, %arg7: memref<1x128xf32, #tpu.memory_space<vmem>>, %arg8: memref<1x16x16x128xf32, #tpu.memory_space<vmem>>, %arg9: memref<18x16x128xbf16, #tpu.memory_space<vmem>>) attributes {dimension_semantics = [#tpu.dimension_semantics<parallel>], iteration_bounds = array<i64: 2>, scalar_prefetch = 0 : i64, scratch_operands = 1 : i64, tpu.core_type = #tpu.core_type<tc>, window_params = [{transform_indices = @transform_0, window_bounds = array<i64: 1, 18, 16, 128>}, {pipeline_mode = #tpu.pipeline_mode<synchronous>, transform_indices = @transform_1, window_bounds = array<i64: 3, 384, 128>}, {pipeline_mode = #tpu.pipeline_mode<synchronous>, transform_indices = @transform_2, window_bounds = array<i64: 3, 384, 128>}, {pipeline_mode = #tpu.pipeline_mode<synchronous>, transform_indices = @transform_3, window_bounds = array<i64: 1, 128>}, {pipeline_mode = #tpu.pipeline_mode<synchronous>, transform_indices = @transform_4, window_bounds = array<i64: 1, 128>}, {pipeline_mode = #tpu.pipeline_mode<synchronous>, transform_indices = @transform_5, window_bounds = array<i64: 1, 128>}, {pipeline_mode = #tpu.pipeline_mode<synchronous>, transform_indices = @transform_6, window_bounds = array<i64: 1, 128>}, {transform_indices = @transform_7, window_bounds = array<i64: 1, 16, 16, 128>}]} {
    %cst = arith.constant 0.000000e+00 : bf16
    %0 = vector.broadcast %cst : bf16 to vector<1x16x128xbf16>
    %c0 = arith.constant 0 : index
    %c0_0 = arith.constant 0 : index
    %c0_1 = arith.constant 0 : index
    %1 = vector.load %arg9[%c0, %c0_0, %c0_1] : memref<18x16x128xbf16, #tpu.memory_space<vmem>>, vector<1x16x128xbf16>
    tpu.vector_store %arg9[%c0, %c0_0, %c0_1], %0 {strides = array<i32>} : memref<18x16x128xbf16, #tpu.memory_space<vmem>>, vector<1x16x128xbf16>,
    %c17 = arith.constant 17 : index
    %c0_2 = arith.constant 0 : index
    %c0_3 = arith.constant 0 : index
    %2 = vector.load %arg9[%c17, %c0_2, %c0_3] : memref<18x16x128xbf16, #tpu.memory_space<vmem>>, vector<1x16x128xbf16>
    tpu.vector_store %arg9[%c17, %c0_2, %c0_3], %0 {strides = array<i32>} : memref<18x16x128xbf16, #tpu.memory_space<vmem>>, vector<1x16x128xbf16>,
    %c0_4 = arith.constant 0 : index
    %c0_5 = arith.constant 0 : index
    %3 = vector.load %arg4[%c0_4, %c0_5] : memref<1x128xf32, #tpu.memory_space<vmem>>, vector<1x128xf32>
    %4 = vector.shape_cast %3 : vector<1x128xf32> to vector<1x1x128xf32>
    %5 = vector.shape_cast %4 : vector<1x1x128xf32> to vector<1x1x128xf32>
    %6 = vector.broadcast %5 : vector<1x1x128xf32> to vector<16x16x128xf32>
    %c0_6 = arith.constant 0 : index
    %c0_7 = arith.constant 0 : index
    %7 = vector.load %arg5[%c0_6, %c0_7] : memref<1x128xf32, #tpu.memory_space<vmem>>, vector<1x128xf32>
    %8 = vector.shape_cast %7 : vector<1x128xf32> to vector<1x1x128xf32>
    %9 = vector.shape_cast %8 : vector<1x1x128xf32> to vector<1x1x128xf32>
    %10 = vector.broadcast %9 : vector<1x1x128xf32> to vector<16x16x128xf32>
    %c0_8 = arith.constant 0 : index
    %c0_9 = arith.constant 0 : index
    %11 = vector.load %arg6[%c0_8, %c0_9] : memref<1x128xf32, #tpu.memory_space<vmem>>, vector<1x128xf32>
    %12 = vector.shape_cast %11 : vector<1x128xf32> to vector<1x1x128xf32>
    %13 = vector.shape_cast %12 : vector<1x1x128xf32> to vector<1x1x128xf32>
    %14 = vector.broadcast %13 : vector<1x1x128xf32> to vector<16x16x128xf32>
    %c0_10 = arith.constant 0 : index
    %c0_11 = arith.constant 0 : index
    %15 = vector.load %arg7[%c0_10, %c0_11] : memref<1x128xf32, #tpu.memory_space<vmem>>, vector<1x128xf32>
    %16 = vector.shape_cast %15 : vector<1x128xf32> to vector<1x1x128xf32>
    %17 = vector.shape_cast %16 : vector<1x1x128xf32> to vector<1x1x128xf32>
    %18 = vector.broadcast %17 : vector<1x1x128xf32> to vector<16x16x128xf32>
    %19 = tpu.iota {dimensions = array<i32: 1>} : vector<16x16x128xi32>
    %c0_i32 = arith.constant 0 : i32
    %20 = vector.broadcast %c0_i32 : i32 to vector<16x16x128xi32>
    %21 = arith.cmpi sgt, %19, %20 : vector<16x16x128xi32>
    %c15_i32 = arith.constant 15 : i32
    %22 = vector.broadcast %c15_i32 : i32 to vector<16x16x128xi32>
    %23 = arith.cmpi slt, %19, %22 : vector<16x16x128xi32>
    %c0_12 = arith.constant 0 : index
    %c0_13 = arith.constant 0 : index
    %c0_14 = arith.constant 0 : index
    %c0_15 = arith.constant 0 : index
    %24 = vector.load %arg1[%c0_12, %c0_13, %c0_14, %c0_15] : memref<1x18x16x128xf32, #tpu.memory_space<vmem>>, vector<1x18x16x128xf32>
    %25 = vector.shape_cast %24 : vector<1x18x16x128xf32> to vector<18x16x128xf32>
    %26 = arith.truncf %25 : vector<18x16x128xf32> to vector<18x16x128xbf16>
    %27 = vector.extract_strided_slice %26 {offsets = [0, 0, 0], sizes = [16, 16, 128], strides = [1, 1, 1]} : vector<18x16x128xbf16> to vector<16x16x128xbf16>
    %28 = vector.extract_strided_slice %26 {offsets = [1, 0, 0], sizes = [16, 16, 128], strides = [1, 1, 1]} : vector<18x16x128xbf16> to vector<16x16x128xbf16>
    %29 = vector.extract_strided_slice %26 {offsets = [2, 0, 0], sizes = [16, 16, 128], strides = [1, 1, 1]} : vector<18x16x128xbf16> to vector<16x16x128xbf16>
    %30 = tpu.concatenate %27, %28, %29 in 2 : vector<16x16x128xbf16>, vector<16x16x128xbf16>, vector<16x16x128xbf16> -> vector<16x16x384xbf16>
    %c0_16 = arith.constant 0 : index
    %c0_17 = arith.constant 0 : index
    %c0_18 = arith.constant 0 : index
    %31 = vector.load %arg2[%c0_16, %c0_17, %c0_18] : memref<3x384x128xbf16, #tpu.memory_space<vmem>>, vector<1x384x128xbf16>
    %32 = vector.shape_cast %31 : vector<1x384x128xbf16> to vector<384x128xbf16>
    %cst_19 = arith.constant dense<0.000000e+00> : vector<16x16x128xf32>
    %33 = tpu.matmul %30, %32, %cst_19 {dimension_numbers = #tpu.dot_dimension_numbers<[2], [0], [0, 1], [1], [0, 0, 0, 1, 1, 1], [], []>} : vector<16x16x384xbf16>, vector<384x128xbf16>, vector<16x16x128xf32> -> vector<16x16x128xf32>
    %c1 = arith.constant 1 : index
    %c0_20 = arith.constant 0 : index
    %c0_21 = arith.constant 0 : index
    %34 = vector.load %arg2[%c1, %c0_20, %c0_21] : memref<3x384x128xbf16, #tpu.memory_space<vmem>>, vector<1x384x128xbf16>
    %35 = vector.shape_cast %34 : vector<1x384x128xbf16> to vector<384x128xbf16>
    %cst_22 = arith.constant dense<0.000000e+00> : vector<16x16x128xf32>
    %36 = tpu.matmul %30, %35, %cst_22 {dimension_numbers = #tpu.dot_dimension_numbers<[2], [0], [0, 1], [1], [0, 0, 0, 1, 1, 1], [], []>} : vector<16x16x384xbf16>, vector<384x128xbf16>, vector<16x16x128xf32> -> vector<16x16x128xf32>
    %c2 = arith.constant 2 : index
    %c0_23 = arith.constant 0 : index
    %c0_24 = arith.constant 0 : index
    %37 = vector.load %arg2[%c2, %c0_23, %c0_24] : memref<3x384x128xbf16, #tpu.memory_space<vmem>>, vector<1x384x128xbf16>
    %38 = vector.shape_cast %37 : vector<1x384x128xbf16> to vector<384x128xbf16>
    %cst_25 = arith.constant dense<0.000000e+00> : vector<16x16x128xf32>
    %39 = tpu.matmul %30, %38, %cst_25 {dimension_numbers = #tpu.dot_dimension_numbers<[2], [0], [0, 1], [1], [0, 0, 0, 1, 1, 1], [], []>} : vector<16x16x384xbf16>, vector<384x128xbf16>, vector<16x16x128xf32> -> vector<16x16x128xf32>
    %c1_i32 = arith.constant 1 : i32
    %40 = tpu.dynamic_rotate %33 by %c1_i32 dim 1 : vector<16x16x128xf32>, i32 -> vector<16x16x128xf32>
    %cst_26 = arith.constant 0.000000e+00 : f32
    %41 = vector.broadcast %cst_26 : f32 to vector<16x16x128xf32>
    %42 = arith.select %21, %40, %41 : vector<16x16x128xi1>, vector<16x16x128xf32>
    %c15_i32_27 = arith.constant 15 : i32
    %43 = tpu.dynamic_rotate %39 by %c15_i32_27 dim 1 : vector<16x16x128xf32>, i32 -> vector<16x16x128xf32>
    %cst_28 = arith.constant 0.000000e+00 : f32
    %44 = vector.broadcast %cst_28 : f32 to vector<16x16x128xf32>
    %45 = arith.select %23, %43, %44 : vector<16x16x128xi1>, vector<16x16x128xf32>
    %46 = arith.addf %42, %36 : vector<16x16x128xf32>
    %47 = arith.addf %46, %45 : vector<16x16x128xf32>
    %48 = arith.mulf %47, %6 : vector<16x16x128xf32>
    %49 = arith.addf %48, %10 : vector<16x16x128xf32>
    %cst_29 = arith.constant 0.000000e+00 : f32
    %50 = vector.broadcast %cst_29 : f32 to vector<16x16x128xf32>
    %51 = arith.maximumf %49, %50 : vector<16x16x128xf32>
    %52 = arith.truncf %51 : vector<16x16x128xf32> to vector<16x16x128xbf16>
    %c1_30 = arith.constant 1 : index
    %c0_31 = arith.constant 0 : index
    %c0_32 = arith.constant 0 : index
    %53 = vector.load %arg9[%c1_30, %c0_31, %c0_32] : memref<18x16x128xbf16, #tpu.memory_space<vmem>>, vector<16x16x128xbf16>
    tpu.vector_store %arg9[%c1_30, %c0_31, %c0_32], %52 {strides = array<i32>} : memref<18x16x128xbf16, #tpu.memory_space<vmem>>, vector<16x16x128xbf16>,
    %c0_33 = arith.constant 0 : index
    %c0_34 = arith.constant 0 : index
    %c0_35 = arith.constant 0 : index
    %54 = vector.load %arg9[%c0_33, %c0_34, %c0_35] : memref<18x16x128xbf16, #tpu.memory_space<vmem>>, vector<18x16x128xbf16>
    %55 = vector.extract_strided_slice %54 {offsets = [0, 0, 0], sizes = [16, 16, 128], strides = [1, 1, 1]} : vector<18x16x128xbf16> to vector<16x16x128xbf16>
    %56 = vector.extract_strided_slice %54 {offsets = [1, 0, 0], sizes = [16, 16, 128], strides = [1, 1, 1]} : vector<18x16x128xbf16> to vector<16x16x128xbf16>
    %57 = vector.extract_strided_slice %54 {offsets = [2, 0, 0], sizes = [16, 16, 128], strides = [1, 1, 1]} : vector<18x16x128xbf16> to vector<16x16x128xbf16>
    %58 = tpu.concatenate %55, %56, %57 in 2 : vector<16x16x128xbf16>, vector<16x16x128xbf16>, vector<16x16x128xbf16> -> vector<16x16x384xbf16>
    %c0_36 = arith.constant 0 : index
    %c0_37 = arith.constant 0 : index
    %c0_38 = arith.constant 0 : index
    %59 = vector.load %arg3[%c0_36, %c0_37, %c0_38] : memref<3x384x128xbf16, #tpu.memory_space<vmem>>, vector<1x384x128xbf16>
    %60 = vector.shape_cast %59 : vector<1x384x128xbf16> to vector<384x128xbf16>
    %cst_39 = arith.constant dense<0.000000e+00> : vector<16x16x128xf32>
    %61 = tpu.matmul %58, %60, %cst_39 {dimension_numbers = #tpu.dot_dimension_numbers<[2], [0], [0, 1], [1], [0, 0, 0, 1, 1, 1], [], []>} : vector<16x16x384xbf16>, vector<384x128xbf16>, vector<16x16x128xf32> -> vector<16x16x128xf32>
    %c1_40 = arith.constant 1 : index
    %c0_41 = arith.constant 0 : index
    %c0_42 = arith.constant 0 : index
    %62 = vector.load %arg3[%c1_40, %c0_41, %c0_42] : memref<3x384x128xbf16, #tpu.memory_space<vmem>>, vector<1x384x128xbf16>
    %63 = vector.shape_cast %62 : vector<1x384x128xbf16> to vector<384x128xbf16>
    %cst_43 = arith.constant dense<0.000000e+00> : vector<16x16x128xf32>
    %64 = tpu.matmul %58, %63, %cst_43 {dimension_numbers = #tpu.dot_dimension_numbers<[2], [0], [0, 1], [1], [0, 0, 0, 1, 1, 1], [], []>} : vector<16x16x384xbf16>, vector<384x128xbf16>, vector<16x16x128xf32> -> vector<16x16x128xf32>
    %c2_44 = arith.constant 2 : index
    %c0_45 = arith.constant 0 : index
    %c0_46 = arith.constant 0 : index
    %65 = vector.load %arg3[%c2_44, %c0_45, %c0_46] : memref<3x384x128xbf16, #tpu.memory_space<vmem>>, vector<1x384x128xbf16>
    %66 = vector.shape_cast %65 : vector<1x384x128xbf16> to vector<384x128xbf16>
    %cst_47 = arith.constant dense<0.000000e+00> : vector<16x16x128xf32>
    %67 = tpu.matmul %58, %66, %cst_47 {dimension_numbers = #tpu.dot_dimension_numbers<[2], [0], [0, 1], [1], [0, 0, 0, 1, 1, 1], [], []>} : vector<16x16x384xbf16>, vector<384x128xbf16>, vector<16x16x128xf32> -> vector<16x16x128xf32>
    %c1_i32_48 = arith.constant 1 : i32
    %68 = tpu.dynamic_rotate %61 by %c1_i32_48 dim 1 : vector<16x16x128xf32>, i32 -> vector<16x16x128xf32>
    %cst_49 = arith.constant 0.000000e+00 : f32
    %69 = vector.broadcast %cst_49 : f32 to vector<16x16x128xf32>
    %70 = arith.select %21, %68, %69 : vector<16x16x128xi1>, vector<16x16x128xf32>
    %c15_i32_50 = arith.constant 15 : i32
    %71 = tpu.dynamic_rotate %67 by %c15_i32_50 dim 1 : vector<16x16x128xf32>, i32 -> vector<16x16x128xf32>
    %cst_51 = arith.constant 0.000000e+00 : f32
    %72 = vector.broadcast %cst_51 : f32 to vector<16x16x128xf32>
    %73 = arith.select %23, %71, %72 : vector<16x16x128xi1>, vector<16x16x128xf32>
    %74 = arith.addf %70, %64 : vector<16x16x128xf32>
    %75 = arith.addf %74, %73 : vector<16x16x128xf32>
    %c0_52 = arith.constant 0 : index
    %c1_53 = arith.constant 1 : index
    %c0_54 = arith.constant 0 : index
    %c0_55 = arith.constant 0 : index
    %76 = vector.load %arg1[%c0_52, %c1_53, %c0_54, %c0_55] : memref<1x18x16x128xf32, #tpu.memory_space<vmem>>, vector<1x16x16x128xf32>
    %77 = vector.shape_cast %76 : vector<1x16x16x128xf32> to vector<16x16x128xf32>
    %78 = arith.mulf %75, %14 : vector<16x16x128xf32>
    %79 = arith.addf %78, %18 : vector<16x16x128xf32>
    %80 = arith.addf %79, %77 : vector<16x16x128xf32>
    %c0_56 = arith.constant 0 : index
    %c0_57 = arith.constant 0 : index
    %c0_58 = arith.constant 0 : index
    %c0_59 = arith.constant 0 : index
    %81 = vector.load %arg8[%c0_56, %c0_57, %c0_58, %c0_59] : memref<1x16x16x128xf32, #tpu.memory_space<vmem>>, vector<1x16x16x128xf32>
    %82 = vector.shape_cast %81 : vector<1x16x16x128xf32> to vector<16x16x128xf32>
    %83 = vector.shape_cast %80 : vector<16x16x128xf32> to vector<1x16x16x128xf32>
    tpu.vector_store %arg8[%c0_56, %c0_57, %c0_58, %c0_59], %83 {strides = array<i32>} : memref<1x16x16x128xf32, #tpu.memory_space<vmem>>, vector<1x16x16x128xf32>,
    return
  }
  func.func @transform_0(%arg0: i32) -> (i32, i32, i32, i32) {
    %c0_i32 = arith.constant 0 : i32
    %c0_i32_0 = arith.constant 0 : i32
    %c0_i32_1 = arith.constant 0 : i32
    %c0_i32_2 = arith.constant 0 : i32
    return %arg0, %c0_i32, %c0_i32_0, %c0_i32_1 : i32, i32, i32, i32
  }
  func.func @transform_1(%arg0: i32) -> (i32, i32, i32) {
    %c0_i32 = arith.constant 0 : i32
    %c0_i32_0 = arith.constant 0 : i32
    %c0_i32_1 = arith.constant 0 : i32
    %c0_i32_2 = arith.constant 0 : i32
    return %c0_i32, %c0_i32_0, %c0_i32_1 : i32, i32, i32
  }
  func.func @transform_2(%arg0: i32) -> (i32, i32, i32) {
    %c0_i32 = arith.constant 0 : i32
    %c0_i32_0 = arith.constant 0 : i32
    %c0_i32_1 = arith.constant 0 : i32
    %c0_i32_2 = arith.constant 0 : i32
    return %c0_i32, %c0_i32_0, %c0_i32_1 : i32, i32, i32
  }
  func.func @transform_3(%arg0: i32) -> (i32, i32) {
    %c0_i32 = arith.constant 0 : i32
    %c0_i32_0 = arith.constant 0 : i32
    %c0_i32_1 = arith.constant 0 : i32
    return %c0_i32, %c0_i32_0 : i32, i32
  }
  func.func @transform_4(%arg0: i32) -> (i32, i32) {
    %c0_i32 = arith.constant 0 : i32
    %c0_i32_0 = arith.constant 0 : i32
    %c0_i32_1 = arith.constant 0 : i32
    return %c0_i32, %c0_i32_0 : i32, i32
  }
  func.func @transform_5(%arg0: i32) -> (i32, i32) {
    %c0_i32 = arith.constant 0 : i32
    %c0_i32_0 = arith.constant 0 : i32
    %c0_i32_1 = arith.constant 0 : i32
    return %c0_i32, %c0_i32_0 : i32, i32
  }
  func.func @transform_6(%arg0: i32) -> (i32, i32) {
    %c0_i32 = arith.constant 0 : i32
    %c0_i32_0 = arith.constant 0 : i32
    %c0_i32_1 = arith.constant 0 : i32
    return %c0_i32, %c0_i32_0 : i32, i32
  }
  func.func @transform_7(%arg0: i32) -> (i32, i32, i32, i32) {
    %c0_i32 = arith.constant 0 : i32
    %c0_i32_0 = arith.constant 0 : i32
    %c0_i32_1 = arith.constant 0 : i32
    %c0_i32_2 = arith.constant 0 : i32
    return %arg0, %c0_i32, %c0_i32_0, %c0_i32_1 : i32, i32, i32, i32
  }
}

</mosaic_0001>

<bundles_post_ra>
// kernel: tpu_custom_call.1
= control target key start
LH: loop header
LB: loop body
LE: loop exit
PB: predicated region body
PF: predicated region fallthrough
CT: control target
= control target key end

     0   :  { %s8473_s0 = inlined_call_operand.hbm [shape: f32[2,18,16,128], index: 0, kind: input, shape index: {}]   ;;  %s8474_s1 = inlined_call_operand.hbm [shape: bf16[3,384,128], index: 1, kind: input, shape index: {}]   ;;  %s8475_s2 = inlined_call_operand.hbm [shape: bf16[3,384,128], index: 2, kind: input, shape index: {}]   ;;  %s8476_s3 = inlined_call_operand.hbm [shape: f32[1,128], index: 3, kind: input, shape index: {}]   ;;  %s8477_s4 = inlined_call_operand.hbm [shape: f32[1,128], index: 4, kind: input, shape index: {}]   ;;  %s8478_s5 = inlined_call_operand.hbm [shape: f32[1,128], index: 5, kind: input, shape index: {}]   ;;  %s8479_s6 = inlined_call_operand.hbm [shape: f32[1,128], index: 6, kind: input, shape index: {}]   ;;  %s8480_s7 = inlined_call_operand.hbm [shape: f32[2,16,16,128], index: 7, kind: output, shape index: {}]  }
   0x1   :  { %8491 = sst [smem:[#allocation27_spill]] %s8474_s1 }
   0x2   :  { %12 = vsyncpa [#allocation4], 0 }
   0x3   :  { %14 = vsyncpa [#allocation4 + $0x1], 0 }
   0x4   :  { %15 = vsyncpa [#allocation7], 0 }
   0x5   :  { %16 = vsyncpa [#allocation10], 0 }
   0x6   :  { %17 = vsyncpa [#allocation13], 0 }
   0x7   :  { %18 = vsyncpa [#allocation5], 0 }
   0x8   :  { %20 = vsyncpa [#allocation5 + $0x1], 0  ;;  %s6425_s24 = smov 0   ;;  %s6427_s25 = smov 0  }
   0x9   :  { %s6429_s26 = smov 0   ;;  %s6431_s27 = smov 0  }
   0xa LB: > { %s6370_s28 = smov [#allocation6]   ;;  %s6446_s30 = sadd.s32 4294967295, %s6368_s27   ;;  %s6368_s27 = sphi %s6431_s27, %s8537_s27   ;;  %s6364_s26 = sphi %s6429_s26, %s8536_s26   ;;  %s6360_s25 = sphi %s6427_s25, %s8535_s25   ;;  %s6356_s24 = sphi %s6425_s24, %s8534_s24  }
   0xb   : > { %s221_s29 = sshll.u32 %s6370_s28, 4  ;;  %p4524_p0 = scmp.ge.s32.totalorder %s6368_s27, 1  ;;  %s6451_s29 = int_to_ptr.vmem [resolvable:$true] %s221_s29 }
   0xc   : > { %p8481_p1 = scmp.eq.s32.totalorder %s6446_s30, 0  ;;  %p209_p2 = scmp.lt.s32.totalorder %s6368_s27, 3 }
   0xd   : > { %s6371_s9 = smov [#allocation9]   ;;  %s6372_s12 = smov [#allocation12]  }
   0xe   : > { %p6453_p3 = pnand %p4524_p0, %p209_p2  ;;  %s248_s10 = sshll.u32 %s6371_s9, 4  ;;  %s6466_s10 = int_to_ptr.vmem [resolvable:$true] %s248_s10 }
   0xf   : > { %s270_s13 = sshll.u32 %s6372_s12, 4  ;;  %s8494_s1 = sld [smem:[#allocation27_spill]]  ;;  %s6468_s13 = int_to_ptr.vmem [resolvable:$true] %s270_s13 }
  0x10   : > { %s8492_s8 = scalar_select %p6453_p3, 1, 0 }
  0x11   : > { %p5862_p5 = pneg %p6453_p3 }
  0x13   : > { %p6462_p6 = pnand %p5862_p5, %p8481_p1 }
  0x15   : > { %s6092_s16 = scalar_lea.hbm %s8494_s1, 9216  ;;  %p6478_p8 = pneg %p6462_p6 }
  0x16   : > { %p6093_p7 = scmp.ne.s32.totalorder %s8494_s1, %s6092_s16  ;;  %p6099_p11 = scmp.lt.u32.totalorder %s6092_s16, %s8494_s1 }
  0x18   : > { %p6095_p9 = pnand %p6478_p8, %p6093_p7 }
  0x1a   : > { %p6096_p10 = pneg %p6095_p9 }
  0x1c   : > { %p6101_p12 = pnand %p6099_p11, %p6096_p10 }
  0x1e   : > { %6104 = shalt.err (!%p6101_p12)
}
  0x1f   : > { %s6105_s22 = scalar_lea.vmem %s6451_s29, 9216  ;;  %p6113_p5 = scmp.lt.s32.totalorder %s6451_s29, %s6451_s29 }
  0x20   : > { %p6106_p13 = scmp.ne.s32.totalorder %s6451_s29, %s6105_s22  ;;  %p6114_p4 = scmp.lt.s32.totalorder %s6105_s22, %s6105_s22 }
  0x22   : > { %p6108_p0 = pnand %p6106_p13, %p6478_p8  ;;  %p6115_p7 = por %p6114_p4, %p6113_p5 }
  0x24   : > { %p6109_p2 = pneg %p6108_p0 }
  0x26   : > { %p6116_p9 = pnand %p6115_p7, %p6109_p2 }
  0x28   : > { %6119 = shalt.err (!%p6116_p9)
}
  0x29   : > { %s6373_s23 = smov 64   ;;  %s6374_s28 = smov 4  }
  0x2a   : > { %5865 = dma.hbm_to_vmem [thread:$0]  (!%p6462_p6), %s8494_s1, 9216, %s6451_s29, [#allocation7], %s6373_s23, %s6373_s23, %s6374_s28  }
  0x2b   : > { %s6120_s16 = scalar_lea.hbm %s8476_s3, 16 }
  0x2c   : > { %p6121_p4 = scmp.ne.s32.totalorder %s8476_s3, %s6120_s16  ;;  %p6127_p12 = scmp.lt.u32.totalorder %s6120_s16, %s8476_s3 }
  0x2e   : > { %p6123_p10 = pnand %p6121_p4, %p6478_p8 }
  0x30   : > { %p6124_p11 = pneg %p6123_p10 }
  0x32   : > { %p6129_p13 = pnand %p6127_p12, %p6124_p11 }
  0x34   : > { %6132 = shalt.err (!%p6129_p13)
}
  0x35   : > { %s6133_s29 = scalar_lea.vmem %s6466_s10, 16  ;;  %s6140_s22 = scalar_lea.vmem %s6466_s10, 32 }
  0x36   : > { %p6134_p0 = scmp.ne.s32.totalorder %s6466_s10, %s6133_s29  ;;  %p6141_p7 = scmp.lt.s32.totalorder %s6466_s10, %s6466_s10 }
  0x37   : > { %p6142_p9 = scmp.lt.s32.totalorder %s6140_s22, %s6133_s29 }
  0x38   : > { %p6136_p2 = pnand %p6134_p0, %p6478_p8 }
  0x39   : > { %p6143_p4 = por %p6142_p9, %p6141_p7 }
  0x3a   : > { %p6137_p5 = pneg %p6136_p2 }
  0x3c   : > { %p6144_p10 = pnand %p6143_p4, %p6137_p5 }
  0x3e   : > { %6147 = shalt.err (!%p6144_p10)
}
  0x3f   : > { %5871 = dma.hbm_to_vmem [thread:$0]  (!%p6462_p6), %s8476_s3, 16, %s6466_s10, [#allocation10]  }
  0x40   : > { %s6148_s16 = scalar_lea.hbm %s8478_s5, 16 }
  0x41   : > { %p6149_p11 = scmp.ne.s32.totalorder %s8478_s5, %s6148_s16  ;;  %p6155_p0 = scmp.lt.u32.totalorder %s6148_s16, %s8478_s5 }
  0x43   : > { %p6151_p12 = pnand %p6149_p11, %p6478_p8 }
  0x45   : > { %p6152_p13 = pneg %p6151_p12 }
  0x47   : > { %p6157_p2 = pnand %p6155_p0, %p6152_p13 }
  0x49   : > { %6160 = shalt.err (!%p6157_p2)
}
  0x4a   : > { %s6161_s10 = scalar_lea.vmem %s6468_s13, 16  ;;  %s6168_s29 = scalar_lea.vmem %s6468_s13, 32 }
  0x4b   : > { %p6162_p5 = scmp.ne.s32.totalorder %s6468_s13, %s6161_s10  ;;  %p6169_p4 = scmp.lt.s32.totalorder %s6468_s13, %s6468_s13 }
  0x4c   : > { %p6170_p10 = scmp.lt.s32.totalorder %s6168_s29, %s6161_s10 }
  0x4d   : > { %p6164_p7 = pnand %p6162_p5, %p6478_p8 }
  0x4e   : > { %p6171_p11 = por %p6170_p10, %p6169_p4 }
  0x4f   : > { %p6165_p9 = pneg %p6164_p7 }
  0x51   : > { %p6172_p12 = pnand %p6171_p11, %p6165_p9 }
  0x53   : > { %6175 = shalt.err (!%p6172_p12)
}
  0x54   : > { %5877 = dma.hbm_to_vmem [thread:$0]  (!%p6462_p6), %s8478_s5, 16, %s6468_s13, [#allocation13]  }
  0x55   : > { %s6375_s12 = smov [#allocation8]   ;;  %s6376_s15 = smov [#allocation11]  }
  0x56   : > { %s234_s14 = sshll.u32 %s6375_s12, 4  ;;  %s259_s16 = sshll.u32 %s6376_s15, 4  ;;  %s235_s14 = int_to_ptr.vmem [resolvable:$true] %s234_s14  ;;  %s260_s16 = int_to_ptr.vmem [resolvable:$true] %s259_s16 }
  0x57   : > { %s6176_s20 = scalar_lea.hbm %s8475_s2, 9216 }
  0x58   : > { %p6177_p13 = scmp.ne.s32.totalorder %s8475_s2, %s6176_s20  ;;  %p6183_p5 = scmp.lt.u32.totalorder %s6176_s20, %s8475_s2 }
  0x5a   : > { %p6179_p0 = pnand %p6177_p13, %p6478_p8 }
  0x5c   : > { %p6180_p2 = pneg %p6179_p0 }
  0x5e   : > { %p6185_p7 = pnand %p6183_p5, %p6180_p2 }
  0x60   : > { %6188 = shalt.err (!%p6185_p7)
}
  0x61   : > { %s6189_s13 = scalar_lea.vmem %s235_s14, 9216  ;;  %p6197_p11 = scmp.lt.s32.totalorder %s235_s14, %s235_s14 }
  0x62   : > { %p6190_p9 = scmp.ne.s32.totalorder %s235_s14, %s6189_s13  ;;  %p6198_p12 = scmp.lt.s32.totalorder %s6189_s13, %s6189_s13 }
  0x64   : > { %p6192_p4 = pnand %p6190_p9, %p6478_p8  ;;  %p6199_p1 = por %p6198_p12, %p6197_p11 }
  0x66   : > { %p6193_p10 = pneg %p6192_p4 }
  0x68   : > { %p6200_p3 = pnand %p6199_p1, %p6193_p10 }
  0x6a   : > { %6203 = shalt.err (!%p6200_p3)
}
  0x6b   : > { %5868 = dma.hbm_to_vmem [thread:$0]  (!%p6462_p6), %s8475_s2, 9216, %s235_s14, [#allocation7], %s6373_s23, %s6373_s23, %s6374_s28  }
  0x6c   : > { %s6204_s18 = scalar_lea.hbm %s8477_s4, 16 }
  0x6d   : > { %p6205_p1 = scmp.ne.s32.totalorder %s8477_s4, %s6204_s18  ;;  %p6211_p0 = scmp.lt.u32.totalorder %s6204_s18, %s8477_s4 }
  0x6f   : > { %p6207_p3 = pnand %p6205_p1, %p6478_p8 }
  0x71   : > { %p6208_p13 = pneg %p6207_p3 }
  0x73   : > { %p6213_p2 = pnand %p6211_p0, %p6208_p13 }
  0x75   : > { %6216 = shalt.err (!%p6213_p2)
}
  0x76   : > { %s6217_s22 = scalar_lea.vmem %s260_s16, 16  ;;  %s6224_s23 = scalar_lea.vmem %s260_s16, 32 }
  0x77   : > { %p6218_p5 = scmp.ne.s32.totalorder %s260_s16, %s6217_s22  ;;  %p6225_p4 = scmp.lt.s32.totalorder %s260_s16, %s260_s16 }
  0x78   : > { %p6226_p10 = scmp.lt.s32.totalorder %s6224_s23, %s6217_s22 }
  0x79   : > { %p6220_p7 = pnand %p6218_p5, %p6478_p8 }
  0x7a   : > { %p6227_p11 = por %p6226_p10, %p6225_p4 }
  0x7b   : > { %p6221_p9 = pneg %p6220_p7 }
  0x7d   : > { %p6228_p12 = pnand %p6227_p11, %p6221_p9 }
  0x7f   : > { %6231 = shalt.err (!%p6228_p12)
}
  0x80   : > { %5874 = dma.hbm_to_vmem [thread:$0]  (!%p6462_p6), %s8477_s4, 16, %s260_s16, [#allocation10]  }
  0x81   : > { %s6377_s13 = smov [#allocation14]   ;;  %s6232_s17 = scalar_lea.hbm %s8479_s6, 16 }
  0x82   : > { %s281_s9 = sshll.u32 %s6377_s13, 4  ;;  %p6233_p1 = scmp.ne.s32.totalorder %s8479_s6, %s6232_s17  ;;  %s282_s9 = int_to_ptr.vmem [resolvable:$true] %s281_s9 }
  0x83   : > { %p6239_p0 = scmp.lt.u32.totalorder %s6232_s17, %s8479_s6 }
  0x84   : > { %p6235_p3 = pnand %p6233_p1, %p6478_p8 }
  0x86   : > { %p6236_p13 = pneg %p6235_p3 }
  0x88   : > { %p6241_p2 = pnand %p6239_p0, %p6236_p13 }
  0x8a   : > { %6244 = shalt.err (!%p6241_p2)
}
  0x8b   : > { %s6245_s16 = scalar_lea.vmem %s282_s9, 16  ;;  %s6252_s29 = scalar_lea.vmem %s282_s9, 32 }
  0x8c   : > { %p6246_p5 = scmp.ne.s32.totalorder %s282_s9, %s6245_s16  ;;  %p6253_p4 = scmp.lt.s32.totalorder %s282_s9, %s282_s9 }
  0x8d   : > { %p6254_p10 = scmp.lt.s32.totalorder %s6252_s29, %s6245_s16 }
  0x8e   : > { %p6248_p7 = pnand %p6246_p5, %p6478_p8 }
  0x8f   : > { %p6255_p11 = por %p6254_p10, %p6253_p4 }
  0x90   : > { %p6249_p9 = pneg %p6248_p7 }
  0x92   : > { %p6256_p12 = pnand %p6255_p11, %p6249_p9 }
  0x94   : > { %6259 = shalt.err (!%p6256_p12)
}
  0x95   : > { %5880 = dma.hbm_to_vmem [thread:$0]  (!%p6462_p6), %s8479_s6, 16, %s282_s9, [#allocation13]  }
  0x96   : > { %s4523_s19 = sadd.s32 4294967294, %s6368_s27   ;;  %s6609_s11 = sadd.s32 1, %s6368_s27  }
  0x97   : > { %s30_s28 = ssub.s32 %s6368_s27, %s6609_s11  ;;  %s33_s14 = sadd.s32 1, %s6364_s26 }
  0x98   : > { %p31_p8 = scmp.eq.s32.totalorder %s30_s28, 0  ;;  %p40_p1 = scmp.ne.s32.totalorder %s6364_s26, %s6360_s25 }
  0x99   : > { %p41_p3 = scmp.eq.s32.totalorder %s6368_s27, 0  ;;  %p46_p13 = scmp.ne.s32.totalorder %s6360_s25, %s6356_s24 }
  0x9a   : > { %s6620_s13 = scalar_select %p31_p8, %s6364_s26, %s33_s14  }
  0x9b   : > { %p42_p0 = por %p41_p3, %p40_p1  ;;  %p8496_p2 = scmp.eq.s32.totalorder %s6446_s30, 0 }
  0x9c   : > { %p196_p6 = scmp.eq.s32.totalorder %s6446_s30, 1  ;;  %p202_p7 = scmp.eq.s32.totalorder %s4523_s19, 1 }
  0x9d   : > { %p6624_p5 = por %p8496_p2, %p46_p13  ;;  %p5895_p9 = scmp.lt.s32.totalorder %s6368_s27, 2 }
  0x9e   : > { %s292_s9 = sand.u32 1, %s6364_s26   ;;  %p6631_p4 = por %p196_p6, %p40_p1 }
  0x9f   : > { %p6635_p10 = por %p202_p7, %p46_p13  ;;  %s5831_s18 = smul.u32 288, %s292_s9 }
  0xa0   : > { %s8498_s15 = scalar_select %p6631_p4, 1, 0 }
  0xa1   : > { %s8499_s17 = scalar_select %p6635_p10, 1, 0 }
  0xa2   : > { %s5832_s20 = smul.u32 4608, %s6368_s27  ;;  %p6640_p11 = pnand %p5895_p9, %p42_p0 }
  0xa3   : > { %s296_s22 = scalar_lea.vmem [#allocation3], %s5831_s18  ;;  %s6651_s19 = scalar_lea.sflag [#allocation4], %s292_s9 }
  0xa4   : > { %s6647_s29 = scalar_lea.hbm %s8473_s0, %s5832_s20  ;;  %s303_s23 = sshll.u32 %s296_s22, 4  ;;  %s6649_s23 = int_to_ptr.vmem [resolvable:$true] %s303_s23 }
  0xa5   : > { %s6260_s28 = scalar_lea.hbm %s6647_s29, 4608  ;;  %p6262_p8 = pneg %p6640_p11 }
  0xa6   : > { %p6261_p12 = scmp.ne.s32.totalorder %s6647_s29, %s6260_s28  ;;  %s6265_s10 = scalar_lea.hbm %s8473_s0, 9216 }
  0xa7   : > { %p6266_p13 = scmp.lt.u32.totalorder %s6647_s29, %s8473_s0  ;;  %p6267_p0 = scmp.lt.u32.totalorder %s6265_s10, %s6260_s28 }
  0xa8   : > { %p6263_p1 = pnand %p6262_p8, %p6261_p12  ;;  %p6269_p6 = scmp.lt.u32.totalorder %s6260_s28, %s6647_s29 }
  0xa9   : > { %p6268_p2 = por %p6267_p0, %p6266_p13 }
  0xaa   : > { %p6264_p3 = pneg %p6263_p1 }
  0xab   : > { %p6270_p7 = por %p6269_p6, %p6268_p2 }
  0xad   : > { %p6271_p9 = pnand %p6270_p7, %p6264_p3 }
  0xaf   : > { %6274 = shalt.err (!%p6271_p9)
}
  0xb0   : > { %s6275_s9 = scalar_lea.vmem %s6649_s23, 4608  ;;  %s6378_s18 = smov [#allocation3]  }
  0xb1   : > { %p6276_p12 = scmp.ne.s32.totalorder %s6649_s23, %s6275_s9  ;;  %s6280_s22 = sshll.u32 %s6378_s18, 4  ;;  %s6281_s22 = int_to_ptr.vmem [resolvable:$false] %s6280_s22 }
  0xb2   : > { %s6282_s1 = scalar_lea.vmem %s6281_s22, 9216  ;;  %p6283_p4 = scmp.lt.s32.totalorder %s6649_s23, %s6281_s22 }
  0xb3   : > { %p6278_p1 = pnand %p6276_p12, %p6262_p8  ;;  %p6284_p13 = scmp.lt.s32.totalorder %s6282_s1, %s6275_s9 }
  0xb5   : > { %p6279_p10 = pneg %p6278_p1  ;;  %p6285_p0 = por %p6284_p13, %p6283_p4 }
  0xb7   : > { %p6286_p2 = pnand %p6285_p0, %p6279_p10 }
  0xb9   : > { %6289 = shalt.err (!%p6286_p2)
}
  0xba   : > { %s6379_s28 = smov 128   ;;  %s6380_s14 = smov 8  }
  0xbb   : > { %5884 = dma.hbm_to_vmem [thread:$0]  (!%p6640_p11), %s6647_s29, 4608, %s6649_s23, %s6651_s19, %s6379_s28, %s6379_s28, %s6380_s14  }
  0xbc   : > { %p8501_p8 = scmp.ne.s32.totalorder %s8492_s8, 0 }
  0xbe   : > { %315 = sbr.rel (%p8501_p8) target bundleno = 1231 (0x4cf), region = 48 }
  0xc5   : > { %s6682_s20 = sand.u32 1, %s6360_s25  }
  0xc6   : > { %s5833_s10 = smul.u32 288, %s6682_s20  ;;  %s318_s16 = scalar_lea.sflag [#allocation4], %s6682_s20 }
  0xc8   : > { %s6686_s9 = scalar_lea.vmem [#allocation3], %s5833_s10 }
  0xc9   : > { %6335 = dma.done.wait (%p6624_p5), %s318_s16, 4608  }
  0xca   : > { %6337 = vsyncadd (%p6624_p5), %s318_s16, 4294962688  ;;  %p8502_p4 = scmp.eq.s32.totalorder %s6446_s30, 0 }
  0xcc   : > { %6339 = dma.done.wait (%p8502_p4), [#allocation7], 18432   ;;  %p8503_p10 = pmov %p8502_p4 }
  0xcd   : > { %p8504_p11 = pmov %p8502_p4 }
  0xce   : > { %6341 = vsyncadd (%p8503_p10), [#allocation7], 4294948864 }
  0xcf   : > { %6343 = dma.done.wait (%p8504_p11), [#allocation10], 32   ;;  %p8505_p3 = pmov %p8502_p4 }
  0xd1   : > { %6345 = vsyncadd (%p8505_p3), [#allocation10], 4294967264  ;;  %p8506_p6 = pmov %p8505_p3 }
  0xd2   : > { %p8507_p7 = pmov %p8505_p3 }
  0xd3   : > { %6347 = dma.done.wait (%p8506_p6), [#allocation13], 32  }
  0xd4   : > { %6349 = vsyncadd (%p8507_p7), [#allocation13], 4294967264  ;;  %v5948_v0 = vld [vmem:[#allocation6 + $0x40] sm:$0xff]   ;;  %v5951_v3 = vld [vmem:[#allocation6 + $0x48] sm:$0xff]   ;;  %s4540_s8 = sshll.u32 %s6682_s20, 8  ;;  %s4726_s21 = sshll.u32 %s6446_s30, 12 }
  0xd5   : > { %v5949_v1 = vld [vmem:[#allocation6 + $0x80] sm:$0xff]   ;;  %4727 = vmatprep.subr.bf16.mxu0 %v5948_v0  ;;  %v5952_v4 = vld [vmem:[#allocation6 + $0x88] sm:$0xff]   ;;  %v5954_v6 = vld [vmem:[#allocation6 + $0x50] sm:$0xff]   ;;  %s8166_s12 = scalar_lea.vmem [#allocation15], %s4540_s8  ;;  %s8424_s18 = scalar_lea.hbm %s8480_s7, %s4726_s21 }
  0xd6   : > { %v5950_v2 = vld [vmem:[#allocation6] sm:$0xff]   ;;  %5543 = vmatprep.subr.bf16.mxu1 %v5949_v1  ;;  %v5953_v5 = vld [vmem:[#allocation6 + $0x8] sm:$0xff]   ;;  %v5955_v7 = vld [vmem:[#allocation6 + $0x90] sm:$0xff]   ;;  %s4393_s29 = sshll.u32 %s8166_s12, 4  ;;  %s4380_s30 = scalar_lea.sflag [#allocation5], %s6682_s20  ;;  %s8426_s29 = int_to_ptr.vmem [resolvable:$true] %s4393_s29 }
  0xd7   : > { %4728 = vmatpush3.bf16.msra.mxu0 %v5950_v2  ;;  %5544 = vmatpush3.bf16.msra.mxu1 %v5949_v1  ;;  %v5956_v8 = vld [vmem:[#allocation6 + $0x10] sm:$0xff]   ;;  %v5957_v9 = vld [vmem:[#allocation6 + $0x58] sm:$0xff]   ;;  %v5960_v12 = vld [vmem:[#allocation6 + $0x60] sm:$0xff]   ;;  %s6290_s22 = scalar_lea.vmem %s8426_s29, 4096  ;;  %p8531_p9 = scmp.ne.s32.totalorder %s8498_s15, 0 }
  0xd8   : > { %4729 = vmatprep.subr.bf16.mxu0 %v5951_v3  ;;  %5545 = vmatprep.subr.bf16.mxu1 %v5952_v4  ;;  %v5958_v10 = vld [vmem:[#allocation6 + $0x98] sm:$0xff]   ;;  %v5961_v13 = vld [vmem:[#allocation6 + $0xa0] sm:$0xff]   ;;  %v5963_v15 = vld [vmem:[#allocation6 + $0x68] sm:$0xff]   ;;  %p6291_p5 = scmp.ne.s32.totalorder %s8426_s29, %s6290_s22  ;;  %s6382_s1 = smov [#allocation15]  }
  0xd9   : > { %v5959_v11 = vld [vmem:[#allocation6 + $0x18] sm:$0xff]   ;;  %v5962_v14 = vld [vmem:[#allocation6 + $0x20] sm:$0xff]   ;;  %v5964_v16 = vld [vmem:[#allocation6 + $0xa8] sm:$0xff]   ;;  %s6294_s28 = sshll.u32 %s6382_s1, 4  ;;  %s6295_s28 = int_to_ptr.vmem [resolvable:$false] %s6294_s28 }
  0xda   : > { %v5965_v17 = vld [vmem:[#allocation6 + $0x28] sm:$0xff]   ;;  %v5966_v18 = vld [vmem:[#allocation6 + $0x70] sm:$0xff]   ;;  %v418_v22 = vld [vmem:[%s6686_s9 + $0x18] sm:$0xff]  ;;  %p6292_p12 = pnand %p6291_p5, %p8531_p9  ;;  %s6296_s14 = scalar_lea.vmem %s6295_s28, 8192 }
  0xdb   : > { %4730 = vmatpush3.bf16.msra.mxu0 %v5953_v5  ;;  %5546 = vmatpush3.bf16.msra.mxu1 %v5952_v4  ;;  %v5967_v19 = vld [vmem:[#allocation6 + $0xb0] sm:$0xff]   ;;  %v419_v23 = vld [vmem:[%s6686_s9 + $0x20] sm:$0xff]  ;;  %v5969_v24 = vld [vmem:[#allocation6 + $0x78] sm:$0xff]   ;;  %p6297_p13 = scmp.lt.s32.totalorder %s8426_s29, %s6295_s28  ;;  %p6298_p0 = scmp.lt.s32.totalorder %s6296_s14, %s6290_s22 }
  0xdc   : > { %4731 = vmatprep.subr.bf16.mxu0 %v5954_v6  ;;  %5547 = vmatprep.subr.bf16.mxu1 %v5955_v7  ;;  %v5968_v20 = vld [vmem:[#allocation6 + $0x30] sm:$0xff]   ;;  %v5970_v25 = vld [vmem:[#allocation6 + $0xb8] sm:$0xff]   ;;  %v420_v27 = vld [vmem:[%s6686_s9 + $0x28] sm:$0xff]  ;;  %p6293_p1 = pneg %p6292_p12 }
  0xdd   : > { %v417_v21 = vld [vmem:[%s6686_s9 + $0x10] sm:$0xff]  ;;  %v5971_v28 = vld [vmem:[#allocation6 + $0x38] sm:$0xff]   ;;  %v6710_v29 = vpack.c.bf16 %v420_v27, %v419_v23  ;;  %v415_v30 = vld [vmem:[%s6686_s9] sm:$0xff]  ;;  %p6299_p2 = por %p6298_p0, %p6297_p13 }
  0xde   : > { %v6707_v26 = vpack.c.bf16 %v418_v22, %v417_v21  ;;  %v416_v31 = vld [vmem:[%s6686_s9 + $0x8] sm:$0xff]  ;;  %v421_v32 = vld [vmem:[%s6686_s9 + $0x30] sm:$0xff]  ;;  %v422_v33 = vld [vmem:[%s6686_s9 + $0x38] sm:$0xff] }
  0xdf   : > { %4732 = vmatpush3.bf16.msra.mxu0 %v5956_v8  ;;  %5548 = vmatpush3.bf16.msra.mxu1 %v5955_v7  ;;  %v5972_v34 = vld [vmem:[#allocation6 + $0x140] sm:$0xff]   ;;  %v424_v37 = vld [vmem:[%s6686_s9 + $0x48] sm:$0xff]  ;;  %v6720_v38 = vpack.c.bf16 %v416_v31, %v415_v30  ;;  %v6722_v39 = vpack.c.bf16 %v422_v33, %v421_v32  ;;  %v425_v42 = vld [vmem:[%s6686_s9 + $0x50] sm:$0xff]  ;;  %p6300_p8 = pnand %p6299_p2, %p6293_p1 }
  0xe0   : > { %4733 = vmatprep.subr.bf16.mxu0 %v5957_v9  ;;  %5549 = vmatprep.subr.bf16.mxu1 %v5958_v10  ;;  %v5973_v35 = vld [vmem:[#allocation6 + $0x100] sm:$0xff]   ;;  %v426_v43 = vld [vmem:[%s6686_s9 + $0x58] sm:$0xff]  ;;  %v5975_v44 = vld [vmem:[#allocation6 + $0x108] sm:$0xff]  }
  0xe1   : > { %693 = vmatprep.mubr.bf16.mxu0 %v6707_v26  ;;  %5559 = vmatprep.mubr.bf16.mxu1 %v6710_v29  ;;  %v423_v36 = vld [vmem:[%s6686_s9 + $0x40] sm:$0xff]  ;;  %v5977_v45 = vld [vmem:[#allocation6 + $0x148] sm:$0xff]   ;;  %v5978_v49 = vld [vmem:[#allocation6 + $0x110] sm:$0xff]   ;;  %v6734_v50 = vpack.c.bf16 %v426_v43, %v425_v42 }
  0xe2   : > { %v5974_v40 = vld [vmem:[#allocation6 + $0xc0] sm:$0xff]   ;;  %v6724_v41 = vpack.c.bf16 %v424_v37, %v423_v36  ;;  %v5976_v46 = vld [vmem:[#allocation6 + $0xc8] sm:$0xff]   ;;  %v5979_v52 = vld [vmem:[#allocation6 + $0xd0] sm:$0xff]  }
  0xe3   : > { %4734 = vmatpush3.bf16.msra.mxu0 %v5959_v11  ;;  %5550 = vmatpush3.bf16.msra.mxu1 %v5958_v10  ;;  %v427_v47 = vld [vmem:[%s6686_s9 + $0x60] sm:$0xff]  ;;  %v428_v48 = vld [vmem:[%s6686_s9 + $0x68] sm:$0xff]  ;;  %v5980_v53 = vld [vmem:[#allocation6 + $0x118] sm:$0xff]  }
  0xe4   : > { %4735 = vmatprep.subr.bf16.mxu0 %v5960_v12  ;;  %5551 = vmatprep.subr.bf16.mxu1 %v5961_v13  ;;  %v6736_v51 = vpack.c.bf16 %v428_v48, %v427_v47  ;;  %v5982_v54 = vld [vmem:[#allocation6 + $0x150] sm:$0xff]   ;;  %v430_v56 = vld [vmem:[%s6686_s9 + $0x78] sm:$0xff]  ;;  %v431_v57 = vld [vmem:[%s6686_s9 + $0x80] sm:$0xff] }
  0xe5   : > { %v429_v55 = vld [vmem:[%s6686_s9 + $0x70] sm:$0xff]  ;;  %v432_v58 = vld [vmem:[%s6686_s9 + $0x88] sm:$0xff]  ;;  %v5981_v59 = vld [vmem:[#allocation6 + $0xd8] sm:$0xff]  }
  0xe6   : > { %v5983_v60 = vld [vmem:[#allocation6 + $0x120] sm:$0xff]   ;;  %v6746_v61 = vpack.c.bf16 %v430_v56, %v429_v55  ;;  %v6748_v62 = vpack.c.bf16 %v432_v58, %v431_v57  ;;  %v5985_v0 = vld [vmem:[#allocation6 + $0x128] sm:$0xff]   ;;  %v5987_v1 = vld [vmem:[#allocation6 + $0x158] sm:$0xff]  }
  0xe7   : > { %4736 = vmatpush3.bf16.msra.mxu0 %v5962_v14  ;;  %5552 = vmatpush3.bf16.msra.mxu1 %v5961_v13  ;;  %v5984_v63 = vld [vmem:[#allocation6 + $0xe0] sm:$0xff]   ;;  %v433_v2 = vld [vmem:[%s6686_s9 + $0x90] sm:$0xff]  ;;  %v434_v3 = vld [vmem:[%s6686_s9 + $0x98] sm:$0xff] }
  0xe8   : > { %4737 = vmatprep.subr.bf16.mxu0 %v5963_v15  ;;  %5553 = vmatprep.subr.bf16.mxu1 %v5964_v16  ;;  %v435_v4 = vld [vmem:[%s6686_s9 + $0xa0] sm:$0xff]  ;;  %v436_v5 = vld [vmem:[%s6686_s9 + $0xa8] sm:$0xff]  ;;  %v5988_v7 = vld [vmem:[#allocation6 + $0x130] sm:$0xff]   ;;  %v6758_v8 = vpack.c.bf16 %v434_v3, %v433_v2 }
  0xe9   : > { %v5986_v6 = vld [vmem:[#allocation6 + $0xe8] sm:$0xff]   ;;  %v5989_v9 = vld [vmem:[#allocation6 + $0xf0] sm:$0xff]   ;;  %v6760_v10 = vpack.c.bf16 %v436_v5, %v435_v4  ;;  %v5992_v11 = vld [vmem:[#allocation6 + $0x160] sm:$0xff]  }
  0xea   : > { %v5990_v12 = vld [vmem:[#allocation6 + $0x138] sm:$0xff]   ;;  %v437_v13 = vld [vmem:[%s6686_s9 + $0xb0] sm:$0xff]  ;;  %v5994_v15 = vld [vmem:[#allocation6 + $0x168] sm:$0xff]  }
  0xeb   : > { %4738 = vmatpush3.bf16.msra.mxu0 %v5965_v17  ;;  %5554 = vmatpush3.bf16.msra.mxu1 %v5964_v16  ;;  %v438_v14 = vld [vmem:[%s6686_s9 + $0xb8] sm:$0xff]  ;;  %v439_v16 = vld [vmem:[%s6686_s9 + $0xc0] sm:$0xff]  ;;  %v440_v17 = vld [vmem:[%s6686_s9 + $0xc8] sm:$0xff] }
  0xec   : > { %4739 = vmatprep.subr.bf16.mxu0 %v5966_v18  ;;  %5555 = vmatprep.subr.bf16.mxu1 %v5967_v19  ;;  %v5991_v18 = vld [vmem:[#allocation6 + $0xf8] sm:$0xff]   ;;  %v6770_v21 = vpack.c.bf16 %v438_v14, %v437_v13  ;;  %v6772_v22 = vpack.c.bf16 %v440_v17, %v439_v16  ;;  %v441_v23 = vld [vmem:[%s6686_s9 + $0xd0] sm:$0xff]  ;;  %v443_v27 = vld [vmem:[%s6686_s9 + $0xe0] sm:$0xff] }
  0xed   : > { %v6000_v30 = vld [vmem:[#allocation6 + $0x1c0] sm:$0xff]   ;;  %v445_v33 = vld [vmem:[%s6686_s9 + $0xf0] sm:$0xff]  ;;  %v448_v36 = vld [vmem:[%s6686_s9 + $0x108] sm:$0xff] }
  0xee   : > { %v449_v42 = vld [vmem:[%s6686_s9 + $0x110] sm:$0xff]  ;;  %v450_v43 = vld [vmem:[%s6686_s9 + $0x118] sm:$0xff]  ;;  %v6002_v48 = vld [vmem:[#allocation6 + $0x220] sm:$0xff]  }
  0xef   : > { %4740 = vmatpush3.bf16.msra.mxu0 %v5968_v20  ;;  %5556 = vmatpush3.bf16.msra.mxu1 %v5967_v19  ;;  %v5993_v19 = vld [vmem:[#allocation6 + $0x200] sm:$0xff]   ;;  %v5996_v20 = vld [vmem:[#allocation6 + $0x170] sm:$0xff]   ;;  %v5999_v47 = vld [vmem:[#allocation6 + $0x218] sm:$0xff]  }
  0xf0   : > { %4741 = vmatprep.subr.bf16.mxu0 %v5969_v24  ;;  %5557 = vmatprep.subr.bf16.mxu1 %v5970_v25  ;;  %v5998_v24 = vld [vmem:[#allocation6 + $0x178] sm:$0xff]   ;;  %v6003_v55 = vld [vmem:[#allocation6 + $0x1c8] sm:$0xff]   ;;  %v6005_v57 = vld [vmem:[#allocation6 + $0x1d0] sm:$0xff]  }
  0xf1   : > { %v6004_v56 = vld [vmem:[#allocation6 + $0x188] sm:$0xff]   ;;  %v6006_v58 = vld [vmem:[#allocation6 + $0x190] sm:$0xff]   ;;  %v6018_v5 = vld [vmem:[#allocation6 + $0x1f8] sm:$0xff]  }
  0xf2   : > { %v6014_v2 = vld [vmem:[#allocation6 + $0x1a8] sm:$0xff]   ;;  %v6015_v3 = vld [vmem:[#allocation6 + $0x1f0] sm:$0xff]  }
  0xf3   : > { %4742 = vmatpush3.bf16.msra.mxu0 %v5971_v28  ;;  %5558 = vmatpush3.bf16.msra.mxu1 %v5970_v25  ;;  %v442_v25 = vld [vmem:[%s6686_s9 + $0xd8] sm:$0xff]  ;;  %v444_v28 = vld [vmem:[%s6686_s9 + $0xe8] sm:$0xff]  ;;  %v6016_v4 = vld [vmem:[#allocation6 + $0x1b0] sm:$0xff]  }
  0xf4   : > { %5591 = vmatprep.subr.bf16.mxu0 %v5972_v34  ;;  %4863 = vmatprep.subr.bf16.mxu1 %v5973_v35  ;;  %v6782_v31 = vpack.c.bf16 %v442_v25, %v441_v23  ;;  %v6784_v32 = vpack.c.bf16 %v444_v28, %v443_v27  ;;  %v447_v35 = vld [vmem:[%s6686_s9 + $0x100] sm:$0xff] }
  0xf6   : > { %694 = vmatmul.mubr.bf16.vlgmr.msra.gmra.mrb[0].mxu0 %v6720_v38  ;;  %5560 = vmatmul.mubr.bf16.vlgmr.msra.gmra.mrb[0].mxu1 %v6722_v39 }
  0xf7   : > { %5592 = vmatpush3.bf16.msra.mxu0 %v5972_v34  ;;  %4864 = vmatpush3.bf16.msra.mxu1 %v5974_v40  ;;  %v446_v34 = vld [vmem:[%s6686_s9 + $0xf8] sm:$0xff]  ;;  %v6796_v40 = vpack.c.bf16 %v448_v36, %v447_v35 }
  0xf8   : > { %701 = vmatprep.mubr.bf16.mxu0 %v6710_v29  ;;  %5563 = vmatprep.mubr.bf16.mxu1 %v6724_v41  ;;  %v6794_v37 = vpack.c.bf16 %v446_v34, %v445_v33 }
  0xf9   : > { %4865 = vmatprep.subr.bf16.mxu1 %v5975_v44  ;;  %5593 = vmatprep.subr.bf16.mxu0 %v5977_v45  ;;  %v6804_v44 = vpack.c.bf16 %v450_v43, %v449_v42 }
  0xfb   : > { %4866 = vmatpush3.bf16.msra.mxu1 %v5976_v46  ;;  %5594 = vmatpush3.bf16.msra.mxu0 %v5977_v45  ;;  %v5995_v45 = vld [vmem:[#allocation6 + $0x208] sm:$0xff]   ;;  %v5997_v46 = vld [vmem:[#allocation6 + $0x210] sm:$0xff]  }
  0xfc   : > { %4867 = vmatprep.subr.bf16.mxu1 %v5978_v49  ;;  %5595 = vmatprep.subr.bf16.mxu0 %v5982_v54  ;;  %v6007_v49 = vld [vmem:[#allocation6 + $0x228] sm:$0xff]  }
  0xfe   : > { %702 = vmatmul.mubr.bf16.gmra.mrb[4].mxu0 %v6707_v26  ;;  %5564 = vmatmul.mubr.bf16.gmra.mrb[4].mxu1 %v6734_v50 }
  0xff   : > { %709 = vmatprep.mubr.bf16.mxu0 %v6722_v39  ;;  %5567 = vmatprep.mubr.bf16.mxu1 %v6736_v51 }
 0x100   : > { %4868 = vmatpush3.bf16.msra.mxu1 %v5979_v52  ;;  %5596 = vmatpush3.bf16.msra.mxu0 %v5982_v54  ;;  %v6012_v52 = vld [vmem:[#allocation6 + $0x230] sm:$0xff]   ;;  %v6001_v54 = vld [vmem:[#allocation6 + $0x180] sm:$0xff]  }
 0x101   : > { %4869 = vmatprep.subr.bf16.mxu1 %v5980_v53  ;;  %5597 = vmatprep.subr.bf16.mxu0 %v5987_v1  ;;  %v6017_v53 = vld [vmem:[#allocation6 + $0x238] sm:$0xff]  }
 0x104   : > { %4870 = vmatpush3.bf16.msra.mxu1 %v5981_v59  ;;  %5598 = vmatpush3.bf16.msra.mxu0 %v5987_v1  ;;  %v6008_v59 = vld [vmem:[#allocation6 + $0x1d8] sm:$0xff]   ;;  %v6013_v1 = vld [vmem:[#allocation6 + $0x1e8] sm:$0xff]  }
 0x105   : > { %4871 = vmatprep.subr.bf16.mxu1 %v5983_v60  ;;  %5599 = vmatprep.subr.bf16.mxu0 %v5992_v11  ;;  %v6009_v60 = vld [vmem:[#allocation6 + $0x198] sm:$0xff]  }
 0x106   : > { %710 = vmatmul.mubr.bf16.gmra.mrb[8].mxu0 %v6710_v29  ;;  %5568 = vmatmul.mubr.bf16.gmra.mrb[8].mxu1 %v6746_v61 }
 0x107   : > { %717 = vmatprep.mubr.bf16.mxu0 %v6724_v41  ;;  %5571 = vmatprep.mubr.bf16.mxu1 %v6748_v62 }
 0x108   : > { %4872 = vmatpush3.bf16.msra.mxu1 %v5984_v63  ;;  %5600 = vmatpush3.bf16.msra.mxu0 %v5992_v11  ;;  %v6010_v63 = vld [vmem:[#allocation6 + $0x1e0] sm:$0xff]  }
 0x109   : > { %4873 = vmatprep.subr.bf16.mxu1 %v5985_v0  ;;  %5601 = vmatprep.subr.bf16.mxu0 %v5994_v15  ;;  %v6011_v0 = vld [vmem:[#allocation6 + $0x1a0] sm:$0xff]  }
 0x10c   : > { %4874 = vmatpush3.bf16.msra.mxu1 %v5986_v6  ;;  %5602 = vmatpush3.bf16.msra.mxu0 %v5994_v15  ;;  %v6019_v6 = vld [vmem:[#allocation6 + $0x1b8] sm:$0xff]  }
 0x10d   : > { %4875 = vmatprep.subr.bf16.mxu1 %v5988_v7  ;;  %5603 = vmatprep.subr.bf16.mxu0 %v5996_v20 }
 0x10e   : > { %718 = vmatmul.mubr.bf16.gmra.mrb[12].mxu0 %v6722_v39  ;;  %5572 = vmatmul.mubr.bf16.gmra.mrb[12].mxu1 %v6758_v8 }
 0x10f   : > { %725 = vmatprep.mubr.bf16.mxu0 %v6734_v50  ;;  %5575 = vmatprep.mubr.bf16.mxu1 %v6760_v10 }
 0x110   : > { %4876 = vmatpush3.bf16.msra.mxu1 %v5989_v9  ;;  %5604 = vmatpush3.bf16.msra.mxu0 %v5996_v20 }
 0x111   : > { %4877 = vmatprep.subr.bf16.mxu1 %v5990_v12  ;;  %5605 = vmatprep.subr.bf16.mxu0 %v5998_v24 }
 0x114   : > { %4878 = vmatpush3.bf16.msra.mxu1 %v5991_v18  ;;  %5606 = vmatpush3.bf16.msra.mxu0 %v5998_v24 }
 0x115   : > { %5639 = vmatprep.subr.bf16.mxu1 %v5993_v19  ;;  %4999 = vmatprep.subr.bf16.mxu0 %v6000_v30 }
 0x116   : > { %726 = vmatmul.mubr.bf16.gmra.mrb[16].mxu0 %v6724_v41  ;;  %5576 = vmatmul.mubr.bf16.gmra.mrb[16].mxu1 %v6770_v21 }
 0x117   : > { %733 = vmatprep.mubr.bf16.mxu0 %v6736_v51  ;;  %5579 = vmatprep.mubr.bf16.mxu1 %v6772_v22 }
 0x11e   : > { %734 = vmatmul.mubr.bf16.gmra.mrb[20].mxu0 %v6734_v50  ;;  %5580 = vmatmul.mubr.bf16.gmra.mrb[20].mxu1 %v6782_v31 }
 0x11f   : > { %741 = vmatprep.mubr.bf16.mxu0 %v6746_v61  ;;  %5583 = vmatprep.mubr.bf16.mxu1 %v6784_v32 }
 0x126   : > { %742 = vmatmul.mubr.bf16.gmra.mrb[24].mxu0 %v6736_v51  ;;  %5584 = vmatmul.mubr.bf16.gmra.mrb[24].mxu1 %v6794_v37 }
 0x127   : > { %749 = vmatprep.mubr.bf16.mxu0 %v6748_v62  ;;  %5587 = vmatprep.mubr.bf16.mxu1 %v6796_v40 }
 0x12e   : > { %750 = vmatmul.mubr.bf16.gmra.mrb[28].mxu0 %v6746_v61  ;;  %5588 = vmatmul.mubr.bf16.gmra.mrb[28].mxu1 %v6804_v44 }
 0x12f   : > { %757 = vmatprep.mubr.bf16.mxu0 %v6758_v8  ;;  %1208 = vmatprep.mubr.bf16.mxu1 %v6707_v26 }
 0x136   : > { %758 = vmatmul.mubr.bf16.gmra.mrb[32].mxu0 %v6748_v62  ;;  %1209 = vmatmul.mubr.bf16.vlgmr.msra.gmra.mrb[32].mxu1 %v6720_v38 }
 0x137   : > { %5640 = vmatpush3.bf16.msra.mxu1 %v5993_v19  ;;  %765 = vmatprep.mubr.bf16.mxu0 %v6760_v10 }
 0x138   : > { %1216 = vmatprep.mubr.bf16.mxu1 %v6710_v29  ;;  %5641 = vmatprep.subr.bf16.mxu1 %v5995_v45 }
 0x13b   : > { %5642 = vmatpush3.bf16.msra.mxu1 %v5995_v45 }
 0x13c   : > { %5643 = vmatprep.subr.bf16.mxu1 %v5997_v46 }
 0x13e   : > { %766 = vmatmul.mubr.bf16.gmra.mrb[36].mxu0 %v6758_v8  ;;  %1217 = vmatmul.mubr.bf16.gmra.mrb[36].mxu1 %v6707_v26 }
 0x13f   : > { %773 = vmatprep.mubr.bf16.mxu0 %v6770_v21  ;;  %1224 = vmatprep.mubr.bf16.mxu1 %v6722_v39 }
 0x140   : > { %5644 = vmatpush3.bf16.msra.mxu1 %v5997_v46 }
 0x141   : > { %5645 = vmatprep.subr.bf16.mxu1 %v5999_v47 }
 0x144   : > { %5646 = vmatpush3.bf16.msra.mxu1 %v5999_v47 }
 0x145   : > { %5647 = vmatprep.subr.bf16.mxu1 %v6002_v48 }
 0x146   : > { %774 = vmatmul.mubr.bf16.gmra.mrb[40].mxu0 %v6760_v10  ;;  %1225 = vmatmul.mubr.bf16.gmra.mrb[40].mxu1 %v6710_v29 }
 0x147   : > { %781 = vmatprep.mubr.bf16.mxu0 %v6772_v22  ;;  %1232 = vmatprep.mubr.bf16.mxu1 %v6724_v41 }
 0x148   : > { %5648 = vmatpush3.bf16.msra.mxu1 %v6002_v48 }
 0x149   : > { %5649 = vmatprep.subr.bf16.mxu1 %v6007_v49 }
 0x14c   : > { %5650 = vmatpush3.bf16.msra.mxu1 %v6007_v49 }
 0x14d   : > { %5651 = vmatprep.subr.bf16.mxu1 %v6012_v52 }
 0x14e   : > { %782 = vmatmul.mubr.bf16.gmra.mrb[44].mxu0 %v6770_v21  ;;  %1233 = vmatmul.mubr.bf16.gmra.mrb[44].mxu1 %v6722_v39 }
 0x14f   : > { %789 = vmatprep.mubr.bf16.mxu0 %v6782_v31  ;;  %1240 = vmatprep.mubr.bf16.mxu1 %v6734_v50 }
 0x150   : > { %5652 = vmatpush3.bf16.msra.mxu1 %v6012_v52 }
 0x151   : > { %5653 = vmatprep.subr.bf16.mxu1 %v6017_v53 }
 0x154   : > { %5654 = vmatpush3.bf16.msra.mxu1 %v6017_v53 }
 0x156   : > { %790 = vmatmul.mubr.bf16.gmra.mrb[48].mxu0 %v6772_v22  ;;  %1241 = vmatmul.mubr.bf16.gmra.mrb[48].mxu1 %v6724_v41 }
 0x157   : > { %797 = vmatprep.mubr.bf16.mxu0 %v6784_v32  ;;  %1248 = vmatprep.mubr.bf16.mxu1 %v6736_v51 }
 0x15e   : > { %798 = vmatmul.mubr.bf16.gmra.mrb[52].mxu0 %v6782_v31  ;;  %1249 = vmatmul.mubr.bf16.gmra.mrb[52].mxu1 %v6734_v50 }
 0x15f   : > { %805 = vmatprep.mubr.bf16.mxu0 %v6794_v37  ;;  %1256 = vmatprep.mubr.bf16.mxu1 %v6746_v61 }
 0x166   : > { %806 = vmatmul.mubr.bf16.gmra.mrb[56].mxu0 %v6784_v32  ;;  %1257 = vmatmul.mubr.bf16.gmra.mrb[56].mxu1 %v6736_v51 }
 0x167   : > { %813 = vmatprep.mubr.bf16.mxu0 %v6796_v40  ;;  %1264 = vmatprep.mubr.bf16.mxu1 %v6748_v62 }
 0x16e   : > { %814 = vmatmul.mubr.bf16.gmra.mrb[60].mxu0 %v6794_v37  ;;  %1265 = vmatmul.mubr.bf16.gmra.mrb[60].mxu1 %v6746_v61 }
 0x16f   : > { %1272 = vmatprep.mubr.bf16.mxu1 %v6758_v8  ;;  %5607 = vmatprep.mubr.bf16.mxu0 %v6710_v29 }
 0x176   : > { %1273 = vmatmul.mubr.bf16.gmra.mrb[64].mxu1 %v6748_v62  ;;  %5608 = vmatmul.mubr.bf16.vlgmr.msra.gmra.mrb[64].mxu0 %v6722_v39 }
 0x177   : > { %5000 = vmatpush3.bf16.msra.mxu0 %v6001_v54  ;;  %1280 = vmatprep.mubr.bf16.mxu1 %v6760_v10 }
 0x178   : > { %5611 = vmatprep.mubr.bf16.mxu0 %v6724_v41  ;;  %5001 = vmatprep.subr.bf16.mxu0 %v6003_v55 }
 0x17b   : > { %5002 = vmatpush3.bf16.msra.mxu0 %v6004_v56 }
 0x17c   : > { %5003 = vmatprep.subr.bf16.mxu0 %v6005_v57 }
 0x17e   : > { %1281 = vmatmul.mubr.bf16.gmra.mrb[68].mxu1 %v6758_v8  ;;  %5612 = vmatmul.mubr.bf16.gmra.mrb[68].mxu0 %v6734_v50 }
 0x17f   : > { %1288 = vmatprep.mubr.bf16.mxu1 %v6770_v21  ;;  %5615 = vmatprep.mubr.bf16.mxu0 %v6736_v51 }
 0x180   : > { %5004 = vmatpush3.bf16.msra.mxu0 %v6006_v58 }
 0x181   : > { %5005 = vmatprep.subr.bf16.mxu0 %v6008_v59 }
 0x184   : > { %5006 = vmatpush3.bf16.msra.mxu0 %v6009_v60 }
 0x185   : > { %5007 = vmatprep.subr.bf16.mxu0 %v6010_v63 }
 0x186   : > { %1289 = vmatmul.mubr.bf16.gmra.mrb[72].mxu1 %v6760_v10  ;;  %5616 = vmatmul.mubr.bf16.gmra.mrb[72].mxu0 %v6746_v61 }
 0x187   : > { %1296 = vmatprep.mubr.bf16.mxu1 %v6772_v22  ;;  %5619 = vmatprep.mubr.bf16.mxu0 %v6748_v62 }
 0x188   : > { %5008 = vmatpush3.bf16.msra.mxu0 %v6011_v0 }
 0x189   : > { %5009 = vmatprep.subr.bf16.mxu0 %v6013_v1 }
 0x18c   : > { %5010 = vmatpush3.bf16.msra.mxu0 %v6014_v2  ;;  %v6020_v2 = vld [vmem:[#allocation8 + $0x40] sm:$0xff]  }
 0x18d   : > { %5011 = vmatprep.subr.bf16.mxu0 %v6015_v3  ;;  %5135 = vmatprep.subr.bf16.mxu1 %v6020_v2 }
 0x18e   : > { %1297 = vmatmul.mubr.bf16.gmra.mrb[76].mxu1 %v6770_v21  ;;  %5620 = vmatmul.mubr.bf16.gmra.mrb[76].mxu0 %v6758_v8 }
 0x18f   : > { %1304 = vmatprep.mubr.bf16.mxu1 %v6782_v31  ;;  %5623 = vmatprep.mubr.bf16.mxu0 %v6760_v10 }
 0x190   : > { %5012 = vmatpush3.bf16.msra.mxu0 %v6016_v4 }
 0x191   : > { %5013 = vmatprep.subr.bf16.mxu0 %v6018_v5 }
 0x194   : > { %5014 = vmatpush3.bf16.msra.mxu0 %v6019_v6 }
 0x196   : > { %1305 = vmatmul.mubr.bf16.gmra.mrb[80].mxu1 %v6772_v22  ;;  %5624 = vmatmul.mubr.bf16.gmra.mrb[80].mxu0 %v6770_v21 }
 0x197   : > { %1312 = vmatprep.mubr.bf16.mxu1 %v6784_v32  ;;  %5627 = vmatprep.mubr.bf16.mxu0 %v6772_v22 }
 0x19e   : > { %1313 = vmatmul.mubr.bf16.gmra.mrb[84].mxu1 %v6782_v31  ;;  %5628 = vmatmul.mubr.bf16.gmra.mrb[84].mxu0 %v6782_v31 }
 0x19f   : > { %1320 = vmatprep.mubr.bf16.mxu1 %v6794_v37  ;;  %5631 = vmatprep.mubr.bf16.mxu0 %v6784_v32 }
 0x1a6   : > { %1321 = vmatmul.mubr.bf16.gmra.mrb[88].mxu1 %v6784_v32  ;;  %5632 = vmatmul.mubr.bf16.gmra.mrb[88].mxu0 %v6794_v37 }
 0x1a7   : > { %1328 = vmatprep.mubr.bf16.mxu1 %v6796_v40  ;;  %5635 = vmatprep.mubr.bf16.mxu0 %v6796_v40 }
 0x1ae   : > { %1329 = vmatmul.mubr.bf16.gmra.mrb[92].mxu1 %v6794_v37  ;;  %5636 = vmatmul.mubr.bf16.gmra.mrb[92].mxu0 %v6804_v44 }
 0x1af   : > { %1723 = vmatprep.mubr.bf16.mxu0 %v6707_v26  ;;  %5655 = vmatprep.mubr.bf16.mxu1 %v6710_v29 }
 0x1b6   : > { %1724 = vmatmul.mubr.bf16.vlgmr.msra.gmra.mrb[96].mxu0 %v6720_v38  ;;  %5656 = vmatmul.mubr.bf16.vlgmr.msra.gmra.mrb[96].mxu1 %v6722_v39  ;;  %v408_v38 = vlaneseq }
 0x1b7   : > { %1731 = vmatprep.mubr.bf16.mxu0 %v6710_v29  ;;  %5659 = vmatprep.mubr.bf16.mxu1 %v6724_v41 }
 0x1b8   : > { %v6886_v17 = vshrl.u32 %v408_v38, 7 }
 0x1ba   : > { %vm2045_vm0 = vcmp.lt.s32.totalorder %v6886_v17, 1  ;;  %vm411_vm1 = vcmp.gt.s32.totalorder %v6886_v17, 0  ;;  %vm2142_vm2 = vcmp.lt.s32.totalorder %v6886_v17, 7 }
 0x1be   : > { %1732 = vmatmul.mubr.bf16.gmra.mrb[100].mxu0 %v6707_v26  ;;  %5660 = vmatmul.mubr.bf16.gmra.mrb[100].mxu1 %v6734_v50 }
 0x1bf   : > { %1739 = vmatprep.mubr.bf16.mxu0 %v6722_v39  ;;  %5663 = vmatprep.mubr.bf16.mxu1 %v6736_v51 }
 0x1c6   : > { %1740 = vmatmul.mubr.bf16.gmra.mrb[104].mxu0 %v6710_v29  ;;  %5664 = vmatmul.mubr.bf16.gmra.mrb[104].mxu1 %v6746_v61 }
 0x1c7   : > { %1747 = vmatprep.mubr.bf16.mxu0 %v6724_v41  ;;  %5667 = vmatprep.mubr.bf16.mxu1 %v6748_v62 }
 0x1c9   : > { %v4743_v7 = vpop.f32.mrb[0].mxu0  ;;  %v5561_v9 = vpop.f32.mrb[0].mxu1 }
 0x1ca   : > { %v4744_v11 = vpop.f32.mrb[1].mxu0  ;;  %v856_v12 = vpop.f32.mrb[1].mxu1 }
 0x1cb   : > { %v4745_v26 = vadd.f32 %v4744_v11, %v4743_v7  ;;  %v4746_v13 = vpop.f32.mrb[2].mxu0  ;;  %v5562_v14 = vpop.f32.mrb[2].mxu1 }
 0x1cc   : > { %v4747_v15 = vpop.f32.mrb[3].mxu0  ;;  %v859_v16 = vpop.f32.mrb[3].mxu1 }
 0x1cd   : > { %v857_v18 = vadd.f32 %v4745_v26, %v856_v12  ;;  %v4748_v29 = vadd.f32 %v4747_v15, %v4746_v13  ;;  %v6021_v15 = vld [vmem:[#allocation8] sm:$0xff]  }
 0x1ce   : > { %1748 = vmatmul.mubr.bf16.gmra.mrb[108].mxu0 %v6722_v39  ;;  %5668 = vmatmul.mubr.bf16.gmra.mrb[108].mxu1 %v6758_v8 }
 0x1cf   : > { %v860_v19 = vadd.f32 %v4748_v29, %v859_v16  ;;  %1755 = vmatprep.mubr.bf16.mxu0 %v6734_v50  ;;  %5671 = vmatprep.mubr.bf16.mxu1 %v6760_v10  ;;  %v2013_v20 = vrot.slane %v857_v18, 7  ;;  %v6022_v29 = vld [vmem:[#allocation8 + $0x80] sm:$0xff]  }
 0x1d0   : > { %5136 = vmatpush3.bf16.msra.mxu1 %v6021_v15  ;;  %5687 = vmatprep.subr.bf16.mxu0 %v6022_v29  ;;  %v6028_v15 = vld [vmem:[#allocation8 + $0x58] sm:$0xff]  }
 0x1d1   : > { %v2029_v23 = vrot.slane %v860_v19, 7  ;;  %v4749_v24 = vpop.f32.mrb[4].mxu0  ;;  %v5565_v25 = vpop.f32.mrb[4].mxu1  ;;  %5688 = vmatpush3.bf16.msra.mxu0 %v6022_v29 }
 0x1d2   : > { %v4750_v27 = vpop.f32.mrb[5].mxu0  ;;  %v872_v28 = vpop.f32.mrb[5].mxu1 }
 0x1d3   : > { %v4751_v30 = vadd.f32 %v4750_v27, %v4749_v24  ;;  %v4752_v33 = vpop.f32.mrb[6].mxu0  ;;  %v5566_v34 = vpop.f32.mrb[6].mxu1  ;;  %v6895_v39 = vsel %vm2045_vm0, %v2029_v23, %v2013_v20  ;;  %v6899_v35 = vsel %vm2045_vm0, %v2013_v20, %v2029_v23  ;;  %v6023_v20 = vld [vmem:[#allocation8 + $0x48] sm:$0xff]  }
 0x1d4   : > { %v4753_v36 = vpop.f32.mrb[7].mxu0  ;;  %v875_v42 = vpop.f32.mrb[7].mxu1  ;;  %5137 = vmatprep.subr.bf16.mxu1 %v6023_v20 }
 0x1d5   : > { %v865_v43 = vadd.f32 %v5561_v9, %v4751_v30  ;;  %v4754_v45 = vadd.f32 %v4753_v36, %v4752_v33 }
 0x1d6   : > { %1756 = vmatmul.mubr.bf16.gmra.mrb[112].mxu0 %v6724_v41  ;;  %5672 = vmatmul.mubr.bf16.gmra.mrb[112].mxu1 %v6770_v21 }
 0x1d7   : > { %v868_v46 = vadd.f32 %v5562_v14, %v4754_v45  ;;  %1763 = vmatprep.mubr.bf16.mxu0 %v6736_v51  ;;  %5675 = vmatprep.mubr.bf16.mxu1 %v6772_v22  ;;  %v2014_v47 = vrot.slane %v865_v43, 7 }
 0x1d9   : > { %v2030_v48 = vrot.slane %v868_v46, 7  ;;  %v4755_v49 = vpop.f32.mrb[8].mxu0  ;;  %v6905_v52 = vpop.f32.mrb[8].mxu1  ;;  %v6024_v46 = vld [vmem:[#allocation8 + $0x8] sm:$0xff]  }
 0x1da   : > { %v4756_v53 = vpop.f32.mrb[9].mxu0  ;;  %v888_v54 = vpop.f32.mrb[9].mxu1  ;;  %5138 = vmatpush3.bf16.msra.mxu1 %v6024_v46 }
 0x1db   : > { %v4757_v55 = vadd.f32 %v4756_v53, %v4755_v49  ;;  %v4758_v56 = vpop.f32.mrb[10].mxu0  ;;  %v6907_v57 = vpop.f32.mrb[10].mxu1  ;;  %v6911_v41 = vsel %vm2045_vm0, %v2030_v48, %v2014_v47  ;;  %v6915_v58 = vsel %vm2045_vm0, %v2014_v47, %v2030_v48  ;;  %v6025_v53 = vld [vmem:[#allocation8 + $0x50] sm:$0xff]  }
 0x1dc   : > { %v4759_v59 = vpop.f32.mrb[11].mxu0  ;;  %v891_v60 = vpop.f32.mrb[11].mxu1  ;;  %5139 = vmatprep.subr.bf16.mxu1 %v6025_v53 }
 0x1dd   : > { %v873_v63 = vadd.f32 %v4757_v55, %v872_v28  ;;  %v4760_v0 = vadd.f32 %v4759_v59, %v4758_v56 }
 0x1de   : > { %1764 = vmatmul.mubr.bf16.gmra.mrb[116].mxu0 %v6734_v50  ;;  %5676 = vmatmul.mubr.bf16.gmra.mrb[116].mxu1 %v6782_v31 }
 0x1df   : > { %v876_v1 = vadd.f32 %v4760_v0, %v875_v42  ;;  %1771 = vmatprep.mubr.bf16.mxu0 %v6746_v61  ;;  %5679 = vmatprep.mubr.bf16.mxu1 %v6784_v32  ;;  %v2015_v3 = vrot.slane %v873_v63, 7 }
 0x1e1   : > { %v2031_v4 = vrot.slane %v876_v1, 7  ;;  %v4761_v5 = vpop.f32.mrb[12].mxu0  ;;  %v6921_v6 = vpop.f32.mrb[12].mxu1 }
 0x1e2   : > { %v4762_v38 = vpop.f32.mrb[13].mxu0  ;;  %v6923_v7 = vpop.f32.mrb[13].mxu1 }
 0x1e3   : > { %v4763_v9 = vadd.f32 %v4762_v38, %v4761_v5  ;;  %v4764_v11 = vpop.f32.mrb[14].mxu0  ;;  %v6925_v50 = vpop.f32.mrb[14].mxu1  ;;  %v6929_v12 = vsel %vm2045_vm0, %v2031_v4, %v2015_v3  ;;  %v6933_v26 = vsel %vm2045_vm0, %v2015_v3, %v2031_v4  ;;  %v6026_v5 = vld [vmem:[#allocation8 + $0x10] sm:$0xff]  }
 0x1e4   : > { %v4765_v13 = vpop.f32.mrb[15].mxu0  ;;  %v6935_v14 = vpop.f32.mrb[15].mxu1  ;;  %5140 = vmatpush3.bf16.msra.mxu1 %v6026_v5 }
 0x1e5   : > { %v881_v16 = vadd.f32 %v5565_v25, %v4763_v9  ;;  %v4766_v18 = vadd.f32 %v4765_v13, %v4764_v11  ;;  %v6027_v11 = vld [vmem:[#allocation8 + $0x88] sm:$0xff]   ;;  %5141 = vmatprep.subr.bf16.mxu1 %v6028_v15  ;;  %v6032_v15 = vld [vmem:[#allocation8 + $0x90] sm:$0xff]  }
 0x1e6   : > { %1772 = vmatmul.mubr.bf16.gmra.mrb[120].mxu0 %v6736_v51  ;;  %5680 = vmatmul.mubr.bf16.gmra.mrb[120].mxu1 %v6794_v37 }
 0x1e7   : > { %v884_v19 = vadd.f32 %v5566_v34, %v4766_v18  ;;  %1779 = vmatprep.mubr.bf16.mxu0 %v6748_v62  ;;  %5683 = vmatprep.mubr.bf16.mxu1 %v6796_v40  ;;  %v2016_v23 = vrot.slane %v881_v16, 7 }
 0x1e8   : > { %5689 = vmatprep.subr.bf16.mxu0 %v6027_v11 }
 0x1e9   : > { %v2032_v24 = vrot.slane %v884_v19, 7  ;;  %v4767_v27 = vpop.f32.mrb[16].mxu0  ;;  %v6941_v28 = vpop.f32.mrb[16].mxu1  ;;  %5690 = vmatpush3.bf16.msra.mxu0 %v6027_v11 }
 0x1ea   : > { %v4768_v25 = vpop.f32.mrb[17].mxu0  ;;  %v6943_v30 = vpop.f32.mrb[17].mxu1  ;;  %5691 = vmatprep.subr.bf16.mxu0 %v6032_v15 }
 0x1eb   : > { %v4769_v51 = vadd.f32 %v4768_v25, %v4767_v27  ;;  %v4770_v33 = vpop.f32.mrb[18].mxu0  ;;  %v6945_v34 = vpop.f32.mrb[18].mxu1  ;;  %v6949_v36 = vsel %vm2045_vm0, %v2032_v24, %v2016_v23  ;;  %v6953_v42 = vsel %vm2045_vm0, %v2016_v23, %v2032_v24 }
 0x1ec   : > { %v4771_v43 = vpop.f32.mrb[19].mxu0  ;;  %v6955_v45 = vpop.f32.mrb[19].mxu1 }
 0x1ed   : > { %v889_v47 = vadd.f32 %v4769_v51, %v888_v54  ;;  %v4772_v48 = vadd.f32 %v4771_v43, %v4770_v33  ;;  %v6029_v33 = vld [vmem:[#allocation8 + $0x18] sm:$0xff]   ;;  %5692 = vmatpush3.bf16.msra.mxu0 %v6032_v15 }
 0x1ee   : > { %1780 = vmatmul.mubr.bf16.gmra.mrb[124].mxu0 %v6746_v61  ;;  %5684 = vmatmul.mubr.bf16.gmra.mrb[124].mxu1 %v6804_v44 }
 0x1ef   : > { %v892_v49 = vadd.f32 %v4772_v48, %v891_v60  ;;  %1787 = vmatprep.mubr.bf16.mxu0 %v6758_v8  ;;  %v2017_v55 = vrot.slane %v889_v47, 7  ;;  %5142 = vmatpush3.bf16.msra.mxu1 %v6029_v33  ;;  %v6030_v48 = vld [vmem:[#allocation8 + $0x60] sm:$0xff]  }
 0x1f0   : > { %5143 = vmatprep.subr.bf16.mxu1 %v6030_v48 }
 0x1f1   : > { %v2033_v56 = vrot.slane %v892_v49, 7  ;;  %v4773_v59 = vpop.f32.mrb[20].mxu0  ;;  %v6960_v63 = vpop.f32.mrb[20].mxu1 }
 0x1f2   : > { %v4774_v0 = vpop.f32.mrb[21].mxu0  ;;  %v6962_v1 = vpop.f32.mrb[21].mxu1 }
 0x1f3   : > { %v4775_v54 = vadd.f32 %v4774_v0, %v4773_v59  ;;  %v4776_v2 = vpop.f32.mrb[22].mxu0  ;;  %v6964_v3 = vpop.f32.mrb[22].mxu1  ;;  %v6968_v61 = vsel %vm2045_vm0, %v2033_v56, %v2017_v55  ;;  %v6972_v44 = vsel %vm2045_vm0, %v2017_v55, %v2033_v56  ;;  %v6031_v59 = vld [vmem:[#allocation8 + $0x20] sm:$0xff]  }
 0x1f4   : > { %v4777_v60 = vpop.f32.mrb[23].mxu0  ;;  %v6974_v4 = vpop.f32.mrb[23].mxu1  ;;  %5144 = vmatpush3.bf16.msra.mxu1 %v6031_v59 }
 0x1f5   : > { %v897_v38 = vadd.f32 %v6905_v52, %v4775_v54  ;;  %v4778_v9 = vadd.f32 %v4777_v60, %v4776_v2 }
 0x1f6   : > { %1788 = vmatmul.mubr.bf16.gmra.mrb[128].mxu0 %v6748_v62 }
 0x1f7   : > { %v900_v13 = vadd.f32 %v6907_v57, %v4778_v9  ;;  %1795 = vmatprep.mubr.bf16.mxu0 %v6760_v10  ;;  %v2018_v16 = vrot.slane %v897_v38, 7 }
 0x1f9   : > { %v2034_v18 = vrot.slane %v900_v13, 7  ;;  %v4779_v29 = vpop.f32.mrb[24].mxu0  ;;  %v6980_v19 = vpop.f32.mrb[24].mxu1 }
 0x1fa   : > { %v4780_v20 = vpop.f32.mrb[25].mxu0  ;;  %v6982_v52 = vpop.f32.mrb[25].mxu1 }
 0x1fb   : > { %v4781_v23 = vadd.f32 %v4780_v20, %v4779_v29  ;;  %v4782_v24 = vpop.f32.mrb[26].mxu0  ;;  %v6984_v62 = vpop.f32.mrb[26].mxu1  ;;  %v6988_v57 = vsel %vm2045_vm0, %v2034_v18, %v2018_v16  ;;  %v6992_v27 = vsel %vm2045_vm0, %v2018_v16, %v2034_v18 }
 0x1fc   : > { %v4783_v25 = vpop.f32.mrb[27].mxu0  ;;  %v6994_v51 = vpop.f32.mrb[27].mxu1 }
 0x1fd   : > { %v905_v43 = vadd.f32 %v4781_v23, %v6923_v7  ;;  %v4784_v46 = vadd.f32 %v4783_v25, %v4782_v24  ;;  %v6033_v23 = vld [vmem:[#allocation8 + $0x68] sm:$0xff]  }
 0x1fe   : > { %1796 = vmatmul.mubr.bf16.gmra.mrb[132].mxu0 %v6758_v8  ;;  %v6034_v24 = vld [vmem:[#allocation8 + $0x28] sm:$0xff]   ;;  %5145 = vmatprep.subr.bf16.mxu1 %v6033_v23 }
 0x1ff   : > { %v908_v47 = vadd.f32 %v4784_v46, %v6935_v14  ;;  %1803 = vmatprep.mubr.bf16.mxu0 %v6770_v21  ;;  %v2019_v49 = vrot.slane %v905_v43, 7  ;;  %5146 = vmatpush3.bf16.msra.mxu1 %v6034_v24 }
 0x201   : > { %v2035_v53 = vrot.slane %v908_v47, 7  ;;  %v4785_v55 = vpop.f32.mrb[28].mxu0  ;;  %v7000_v56 = vpop.f32.mrb[28].mxu1 }
 0x202   : > { %v4786_v0 = vpop.f32.mrb[29].mxu0  ;;  %v7002_v54 = vpop.f32.mrb[29].mxu1 }
 0x203   : > { %v4787_v7 = vadd.f32 %v4786_v0, %v4785_v55  ;;  %v4788_v2 = vpop.f32.mrb[30].mxu0  ;;  %v7004_v60 = vpop.f32.mrb[30].mxu1  ;;  %v7008_v8 = vsel %vm2045_vm0, %v2035_v53, %v2019_v49  ;;  %v7012_v14 = vsel %vm2045_vm0, %v2019_v49, %v2035_v53 }
 0x204   : > { %v4789_v5 = vpop.f32.mrb[31].mxu0  ;;  %v7014_v38 = vpop.f32.mrb[31].mxu1 }
 0x205   : > { %v913_v9 = vadd.f32 %v6921_v6, %v4787_v7  ;;  %v4790_v11 = vadd.f32 %v4789_v5, %v4788_v2 }
 0x206   : > { %1804 = vmatmul.mubr.bf16.gmra.mrb[136].mxu0 %v6760_v10 }
 0x207   : > { %v916_v13 = vadd.f32 %v6925_v50, %v4790_v11  ;;  %1811 = vmatprep.mubr.bf16.mxu0 %v6772_v22  ;;  %v2020_v16 = vrot.slane %v913_v9, 7 }
 0x209   : > { %v2036_v18 = vrot.slane %v916_v13, 7  ;;  %v4791_v29 = vpop.f32.mrb[32].mxu0  ;;  %v4879_v20 = vpop.f32.mrb[32].mxu1 }
 0x20a   : > { %v4792_v25 = vpop.f32.mrb[33].mxu0  ;;  %v4880_v33 = vpop.f32.mrb[33].mxu1 }
 0x20b   : > { %v4793_v43 = vadd.f32 %v4792_v25, %v4791_v29  ;;  %v7020_v6 = vadd.f32 %v4880_v33, %v4879_v20  ;;  %v4794_v46 = vpop.f32.mrb[34].mxu0  ;;  %v4882_v10 = vpop.f32.mrb[34].mxu1  ;;  %v7024_v50 = vsel %vm2045_vm0, %v2036_v18, %v2020_v16  ;;  %v7028_v47 = vsel %vm2045_vm0, %v2020_v16, %v2036_v18  ;;  %v6035_v33 = vld [vmem:[#allocation8 + $0x70] sm:$0xff]  }
 0x20c   : > { %v4795_v48 = vpop.f32.mrb[35].mxu0  ;;  %v4883_v49 = vpop.f32.mrb[35].mxu1  ;;  %5147 = vmatprep.subr.bf16.mxu1 %v6035_v33 }
 0x20d   : > { %v921_v53 = vadd.f32 %v4793_v43, %v6943_v30  ;;  %v4796_v55 = vadd.f32 %v4795_v48, %v4794_v46  ;;  %v7031_v59 = vadd.f32 %v4883_v49, %v4882_v10  ;;  %v6036_v46 = vld [vmem:[#allocation8 + $0x30] sm:$0xff]  }
 0x20e   : > { %1812 = vmatmul.mubr.bf16.gmra.mrb[140].mxu0 %v6770_v21  ;;  %5148 = vmatpush3.bf16.msra.mxu1 %v6036_v46 }
 0x20f   : > { %v924_v0 = vadd.f32 %v4796_v55, %v6955_v45  ;;  %1819 = vmatprep.mubr.bf16.mxu0 %v6782_v31  ;;  %v2021_v7 = vrot.slane %v921_v53, 7  ;;  %v6037_v55 = vld [vmem:[#allocation8 + $0x98] sm:$0xff]  }
 0x210   : > { %5693 = vmatprep.subr.bf16.mxu0 %v6037_v55 }
 0x211   : > { %v2037_v2 = vrot.slane %v924_v0, 7  ;;  %v4797_v5 = vpop.f32.mrb[36].mxu0  ;;  %v4885_v9 = vpop.f32.mrb[36].mxu1  ;;  %5694 = vmatpush3.bf16.msra.mxu0 %v6037_v55 }
 0x212   : > { %v4798_v11 = vpop.f32.mrb[37].mxu0  ;;  %v4886_v13 = vpop.f32.mrb[37].mxu1 }
 0x213   : > { %v4799_v15 = vadd.f32 %v4798_v11, %v4797_v5  ;;  %v7036_v16 = vadd.f32 %v4886_v13, %v4885_v9  ;;  %v4800_v18 = vpop.f32.mrb[38].mxu0  ;;  %v4888_v30 = vpop.f32.mrb[38].mxu1  ;;  %v7040_v29 = vsel %vm2045_vm0, %v2037_v2, %v2021_v7  ;;  %v7044_v21 = vsel %vm2045_vm0, %v2021_v7, %v2037_v2  ;;  %v6038_v7 = vld [vmem:[#allocation8 + $0x78] sm:$0xff]  }
 0x214   : > { %v4801_v45 = vpop.f32.mrb[39].mxu0  ;;  %v4889_v20 = vpop.f32.mrb[39].mxu1  ;;  %v6039_v13 = vld [vmem:[#allocation8 + $0x38] sm:$0xff]   ;;  %5149 = vmatprep.subr.bf16.mxu1 %v6038_v7 }
 0x215   : > { %v929_v23 = vadd.f32 %v6941_v28, %v4799_v15  ;;  %v4802_v24 = vadd.f32 %v4801_v45, %v4800_v18  ;;  %v7047_v25 = vadd.f32 %v4889_v20, %v4888_v30  ;;  %5150 = vmatpush3.bf16.msra.mxu1 %v6039_v13 }
 0x216   : > { %1820 = vmatmul.mubr.bf16.gmra.mrb[144].mxu0 %v6772_v22 }
 0x217   : > { %v932_v43 = vadd.f32 %v6945_v34, %v4802_v24  ;;  %1827 = vmatprep.mubr.bf16.mxu0 %v6784_v32  ;;  %v2022_v10 = vrot.slane %v929_v23, 7  ;;  %v6040_v23 = vld [vmem:[#allocation8 + $0xa0] sm:$0xff]  }
 0x218   : > { %5695 = vmatprep.subr.bf16.mxu0 %v6040_v23 }
 0x219   : > { %v2038_v48 = vrot.slane %v932_v43, 7  ;;  %v4803_v49 = vpop.f32.mrb[40].mxu0  ;;  %v4891_v53 = vpop.f32.mrb[40].mxu1  ;;  %5696 = vmatpush3.bf16.msra.mxu0 %v6040_v23 }
 0x21a   : > { %v4804_v0 = vpop.f32.mrb[41].mxu0  ;;  %v4892_v28 = vpop.f32.mrb[41].mxu1 }
 0x21b   : > { %v4805_v2 = vadd.f32 %v4804_v0, %v4803_v49  ;;  %v7052_v5 = vadd.f32 %v4892_v28, %v4891_v53  ;;  %v4806_v22 = vpop.f32.mrb[42].mxu0  ;;  %v4894_v9 = vpop.f32.mrb[42].mxu1  ;;  %v7056_v34 = vsel %vm2045_vm0, %v2038_v48, %v2022_v10  ;;  %v7060_v11 = vsel %vm2045_vm0, %v2022_v10, %v2038_v48  ;;  %v6042_v48 = vld [vmem:[#allocation8 + $0xa8] sm:$0xff]  }
 0x21c   : > { %v4807_v15 = vpop.f32.mrb[43].mxu0  ;;  %v4895_v18 = vpop.f32.mrb[43].mxu1  ;;  %5697 = vmatprep.subr.bf16.mxu0 %v6042_v48 }
 0x21d   : > { %v937_v30 = vadd.f32 %v4805_v2, %v6962_v1  ;;  %v4808_v45 = vadd.f32 %v4807_v15, %v4806_v22  ;;  %v7063_v20 = vadd.f32 %v4895_v18, %v4894_v9  ;;  %5698 = vmatpush3.bf16.msra.mxu0 %v6042_v48  ;;  %v6043_v15 = vld [vmem:[#allocation8 + $0xb0] sm:$0xff]  }
 0x21e   : > { %1828 = vmatmul.mubr.bf16.gmra.mrb[148].mxu0 %v6782_v31  ;;  %5699 = vmatprep.subr.bf16.mxu0 %v6043_v15 }
 0x21f   : > { %v940_v24 = vadd.f32 %v4808_v45, %v6974_v4  ;;  %1835 = vmatprep.mubr.bf16.mxu0 %v6794_v37  ;;  %v2023_v33 = vrot.slane %v937_v30, 7 }
 0x221   : > { %v2039_v43 = vrot.slane %v940_v24, 7  ;;  %v4809_v46 = vpop.f32.mrb[44].mxu0  ;;  %v4897_v10 = vpop.f32.mrb[44].mxu1  ;;  %5700 = vmatpush3.bf16.msra.mxu0 %v6043_v15 }
 0x222   : > { %v4810_v49 = vpop.f32.mrb[45].mxu0  ;;  %v4898_v1 = vpop.f32.mrb[45].mxu1 }
 0x223   : > { %v4811_v53 = vadd.f32 %v4810_v49, %v4809_v46  ;;  %v7068_v55 = vadd.f32 %v4898_v1, %v4897_v10  ;;  %v4812_v0 = vpop.f32.mrb[46].mxu0  ;;  %v4900_v28 = vpop.f32.mrb[46].mxu1  ;;  %v7072_v31 = vsel %vm2045_vm0, %v2039_v43, %v2023_v33  ;;  %v7076_v4 = vsel %vm2045_vm0, %v2023_v33, %v2039_v43  ;;  %v6044_v33 = vld [vmem:[#allocation8 + $0xb8] sm:$0xff]  }
 0x224   : > { %v4813_v7 = vpop.f32.mrb[47].mxu0  ;;  %v4901_v2 = vpop.f32.mrb[47].mxu1  ;;  %5701 = vmatprep.subr.bf16.mxu0 %v6044_v33 }
 0x225   : > { %v945_v22 = vadd.f32 %v6960_v63, %v4811_v53  ;;  %v4814_v9 = vadd.f32 %v4813_v7, %v4812_v0  ;;  %v7079_v13 = vadd.f32 %v4901_v2, %v4900_v28  ;;  %5702 = vmatpush3.bf16.msra.mxu0 %v6044_v33  ;;  %v7097_v7 = vld [vmem:[#allocation8 + $0x140] sm:$0xff]  }
 0x226   : > { %1836 = vmatmul.mubr.bf16.gmra.mrb[152].mxu0 %v6784_v32  ;;  %8508 = vst [vmem:[#allocation21_spill] sm:$0xff] %v7097_v7  ;;  %5735 = vmatprep.subr.bf16.mxu1 %v7097_v7 }
 0x227   : > { %v948_v18 = vadd.f32 %v6964_v3, %v4814_v9  ;;  %1843 = vmatprep.mubr.bf16.mxu0 %v6796_v40  ;;  %v2024_v30 = vrot.slane %v945_v22, 7 }
 0x229   : > { %v2040_v45 = vrot.slane %v948_v18, 7  ;;  %v4815_v23 = vpop.f32.mrb[48].mxu0  ;;  %v4903_v24 = vpop.f32.mrb[48].mxu1 }
 0x22a   : > { %v4816_v43 = vpop.f32.mrb[49].mxu0  ;;  %v4904_v46 = vpop.f32.mrb[49].mxu1 }
 0x22b   : > { %v4817_v63 = vadd.f32 %v4816_v43, %v4815_v23  ;;  %v7084_v10 = vadd.f32 %v4904_v46, %v4903_v24  ;;  %v4818_v48 = vpop.f32.mrb[50].mxu0  ;;  %v4906_v49 = vpop.f32.mrb[50].mxu1  ;;  %v7088_v32 = vsel %vm2045_vm0, %v2040_v45, %v2024_v30  ;;  %v7092_v40 = vsel %vm2045_vm0, %v2024_v30, %v2040_v45 }
 0x22c   : > { %v4819_v3 = vpop.f32.mrb[51].mxu0  ;;  %v4907_v1 = vpop.f32.mrb[51].mxu1 }
 0x22d   : > { %v953_v53 = vadd.f32 %v4817_v63, %v6982_v52  ;;  %v4820_v0 = vadd.f32 %v4819_v3, %v4818_v48  ;;  %v7095_v28 = vadd.f32 %v4907_v1, %v4906_v49 }
 0x22e   : > { %1844 = vmatmul.mubr.bf16.gmra.mrb[156].mxu0 %v6794_v37 }
 0x22f   : > { %v956_v2 = vadd.f32 %v4820_v0, %v6994_v51  ;;  %v2025_v22 = vrot.slane %v953_v53, 7 }
 0x231   : > { %v2041_v9 = vrot.slane %v956_v2, 7  ;;  %v4821_v15 = vpop.f32.mrb[52].mxu0  ;;  %v4909_v18 = vpop.f32.mrb[52].mxu1 }
 0x232   : > { %v4822_v30 = vpop.f32.mrb[53].mxu0  ;;  %v4910_v45 = vpop.f32.mrb[53].mxu1 }
 0x233   : > { %v4823_v23 = vadd.f32 %v4822_v30, %v4821_v15  ;;  %v7102_v24 = vadd.f32 %v4910_v45, %v4909_v18  ;;  %v4824_v52 = vpop.f32.mrb[54].mxu0  ;;  %v4912_v33 = vpop.f32.mrb[54].mxu1  ;;  %v7106_v43 = vsel %vm2045_vm0, %v2041_v9, %v2025_v22  ;;  %v7110_v37 = vsel %vm2045_vm0, %v2025_v22, %v2041_v9 }
 0x234   : > { %8509 = vst [vmem:[#allocation22_spill] sm:$0xff] %v7110_v37  ;;  %v4825_v51 = vpop.f32.mrb[55].mxu0  ;;  %v4913_v46 = vpop.f32.mrb[55].mxu1 }
 0x235   : > { %v961_v63 = vadd.f32 %v6980_v19, %v4823_v23  ;;  %v4826_v48 = vadd.f32 %v4825_v51, %v4824_v52  ;;  %v7113_v49 = vadd.f32 %v4913_v46, %v4912_v33 }
 0x237   : > { %v964_v3 = vadd.f32 %v6984_v62, %v4826_v48  ;;  %v2026_v1 = vrot.slane %v961_v63, 7 }
 0x239   : > { %v2042_v53 = vrot.slane %v964_v3, 7  ;;  %v4827_v0 = vpop.f32.mrb[56].mxu0  ;;  %v4915_v2 = vpop.f32.mrb[56].mxu1 }
 0x23a   : > { %v4828_v15 = vpop.f32.mrb[57].mxu0  ;;  %v4916_v18 = vpop.f32.mrb[57].mxu1 }
 0x23b   : > { %v4829_v30 = vadd.f32 %v4828_v15, %v4827_v0  ;;  %v7116_v45 = vadd.f32 %v4916_v18, %v4915_v2  ;;  %v4830_v22 = vpop.f32.mrb[58].mxu0  ;;  %v4918_v9 = vpop.f32.mrb[58].mxu1  ;;  %v7120_v7 = vsel %vm2045_vm0, %v2042_v53, %v2026_v1  ;;  %v7124_v19 = vsel %vm2045_vm0, %v2026_v1, %v2042_v53 }
 0x23c   : > { %8510 = vst [vmem:[#allocation23_spill] sm:$0xff] %v7124_v19  ;;  %v4831_v62 = vpop.f32.mrb[59].mxu0  ;;  %v4919_v23 = vpop.f32.mrb[59].mxu1 }
 0x23d   : > { %v969_v52 = vadd.f32 %v4829_v30, %v7002_v54  ;;  %v4832_v33 = vadd.f32 %v4831_v62, %v4830_v22  ;;  %v7127_v51 = vadd.f32 %v4919_v23, %v4918_v9 }
 0x23f   : > { %v972_v46 = vadd.f32 %v4832_v33, %v7014_v38  ;;  %v2027_v63 = vrot.slane %v969_v52, 7 }
 0x241   : > { %v2043_v48 = vrot.slane %v972_v46, 7  ;;  %v4833_v3 = vpop.f32.mrb[60].mxu0  ;;  %v4921_v0 = vpop.f32.mrb[60].mxu1 }
 0x242   : > { %v4834_v2 = vpop.f32.mrb[61].mxu0  ;;  %v4922_v15 = vpop.f32.mrb[61].mxu1 }
 0x243   : > { %v4835_v18 = vadd.f32 %v4834_v2, %v4833_v3  ;;  %v7130_v37 = vadd.f32 %v4922_v15, %v4921_v0  ;;  %v4836_v1 = vpop.f32.mrb[62].mxu0  ;;  %v4924_v53 = vpop.f32.mrb[62].mxu1  ;;  %v7134_v19 = vsel %vm2045_vm0, %v2043_v48, %v2027_v63  ;;  %v7138_v54 = vsel %vm2045_vm0, %v2027_v63, %v2043_v48 }
 0x244   : > { %v4837_v38 = vpop.f32.mrb[63].mxu0  ;;  %v4925_v30 = vpop.f32.mrb[63].mxu1  ;;  %v2080_v63 = vsel %vm411_vm1, %v6911_v41, 0.0  ;;  %v2078_v41 = vsel %vm411_vm1, %v6895_v39, 0.0 }
 0x245   : > { %v977_v22 = vadd.f32 %v7000_v56, %v4835_v18  ;;  %v4838_v9 = vadd.f32 %v4837_v38, %v4836_v1  ;;  %v7141_v62 = vadd.f32 %v4925_v30, %v4924_v53 }
 0x247   : > { %v980_v23 = vadd.f32 %v7004_v60, %v4838_v9  ;;  %v2028_v52 = vrot.slane %v977_v22, 7 }
 0x249   : > { %v2044_v33 = vrot.slane %v980_v23, 7  ;;  %v4927_v46 = vpop.f32.mrb[64].mxu1  ;;  %v5609_v3 = vpop.f32.mrb[64].mxu0 }
 0x24a   : > { %v1380_v0 = vadd.f32 %v5609_v3, %v7036_v16  ;;  %v4928_v48 = vpop.f32.mrb[65].mxu1  ;;  %v1371_v2 = vpop.f32.mrb[65].mxu0 }
 0x24b   : > { %v7149_v56 = vadd.f32 %v4928_v48, %v4927_v46  ;;  %v1372_v15 = vadd.f32 %v7020_v6, %v1371_v2  ;;  %v4930_v18 = vpop.f32.mrb[66].mxu1  ;;  %v5610_v60 = vpop.f32.mrb[66].mxu0  ;;  %v7154_v1 = vsel %vm2045_vm0, %v2044_v33, %v2028_v52  ;;  %v7158_v53 = vsel %vm2045_vm0, %v2028_v52, %v2044_v33 }
 0x24c   : > { %v7160_v16 = vadd.f32 %v2080_v63, %v1380_v0  ;;  %v1383_v38 = vadd.f32 %v5610_v60, %v7047_v25  ;;  %v4931_v30 = vpop.f32.mrb[67].mxu1  ;;  %v1374_v6 = vpop.f32.mrb[67].mxu0  ;;  %v2084_v63 = vsel %vm411_vm1, %v6949_v36, 0.0 }
 0x24d   : > { %v7166_v22 = vadd.f32 %v2078_v41, %v1372_v15  ;;  %v7168_v9 = vadd.f32 %v4931_v30, %v4930_v18  ;;  %v1375_v23 = vadd.f32 %v7031_v59, %v1374_v6 }
 0x24e   : > { %v7172_v46 = vadd.f32 %v6915_v58, %v1383_v38 }
 0x24f   : > { %v7175_v52 = vadd.f32 %v6899_v35, %v1375_v23  ;;  %v2082_v35 = vsel %vm411_vm1, %v6929_v12, 0.0 }
 0x251   : > { %v4933_v33 = vpop.f32.mrb[68].mxu1  ;;  %v5613_v3 = vpop.f32.mrb[68].mxu0 }
 0x252   : > { %v1396_v39 = vadd.f32 %v5613_v3, %v7068_v55  ;;  %v4934_v0 = vpop.f32.mrb[69].mxu1  ;;  %v1387_v25 = vpop.f32.mrb[69].mxu0 }
 0x253   : > { %v4935_v48 = vadd.f32 %v4934_v0, %v4933_v33  ;;  %v1388_v2 = vadd.f32 %v7052_v5, %v1387_v25  ;;  %v4936_v59 = vpop.f32.mrb[70].mxu1  ;;  %v5614_v15 = vpop.f32.mrb[70].mxu0 }
 0x254   : > { %v7182_v58 = vadd.f32 %v2084_v63, %v1396_v39  ;;  %v1399_v18 = vadd.f32 %v5614_v15, %v7079_v13  ;;  %v4937_v55 = vpop.f32.mrb[71].mxu1  ;;  %v1390_v60 = vpop.f32.mrb[71].mxu0  ;;  %v2088_v13 = vsel %vm411_vm1, %v6988_v57, 0.0 }
 0x255   : > { %v7188_v41 = vadd.f32 %v2082_v35, %v1388_v2  ;;  %v4938_v38 = vadd.f32 %v4937_v55, %v4936_v59  ;;  %v1391_v36 = vadd.f32 %v7063_v20, %v1390_v60 }
 0x256   : > { %v7192_v30 = vadd.f32 %v6953_v42, %v1399_v18 }
 0x257   : > { %v7195_v5 = vadd.f32 %v6933_v26, %v1391_v36  ;;  %v2086_v26 = vsel %vm411_vm1, %v6968_v61, 0.0  ;;  %v2092_v36 = vsel %vm411_vm1, %v7024_v50, 0.0 }
 0x259   : > { %v4939_v6 = vpop.f32.mrb[72].mxu1  ;;  %v5617_v23 = vpop.f32.mrb[72].mxu0 }
 0x25a   : > { %v1412_v33 = vadd.f32 %v5617_v23, %v7102_v24  ;;  %v4940_v12 = vpop.f32.mrb[73].mxu1  ;;  %v1403_v3 = vpop.f32.mrb[73].mxu0 }
 0x25b   : > { %v7201_v39 = vadd.f32 %v4940_v12, %v4939_v6  ;;  %v1404_v20 = vadd.f32 %v7084_v10, %v1403_v3  ;;  %v4942_v0 = vpop.f32.mrb[74].mxu1  ;;  %v5618_v42 = vpop.f32.mrb[74].mxu0 }
 0x25c   : > { %v7204_v25 = vadd.f32 %v2088_v13, %v1412_v33  ;;  %v1415_v24 = vadd.f32 %v5618_v42, %v7113_v49  ;;  %v4943_v63 = vpop.f32.mrb[75].mxu1  ;;  %v1406_v2 = vpop.f32.mrb[75].mxu0 }
 0x25d   : > { %v7210_v59 = vadd.f32 %v2086_v26, %v1404_v20  ;;  %v7212_v15 = vadd.f32 %v4943_v63, %v4942_v0  ;;  %v1407_v57 = vadd.f32 %v7095_v28, %v1406_v2 }
 0x25e   : > { %v7216_v10 = vadd.f32 %v6992_v27, %v1415_v24 }
 0x25f   : > { %v7219_v35 = vadd.f32 %v6972_v44, %v1407_v57  ;;  %v2090_v44 = vsel %vm411_vm1, %v7008_v8, 0.0 }
 0x261   : > { %v4945_v18 = vpop.f32.mrb[76].mxu1  ;;  %v5621_v55 = vpop.f32.mrb[76].mxu0 }
 0x262   : > { %v1428_v61 = vadd.f32 %v5621_v55, %v7130_v37  ;;  %v4946_v60 = vpop.f32.mrb[77].mxu1  ;;  %v1419_v49 = vpop.f32.mrb[77].mxu0 }
 0x263   : > { %v4947_v6 = vadd.f32 %v4946_v60, %v4945_v18  ;;  %v1420_v23 = vadd.f32 %v7116_v45, %v1419_v49  ;;  %v4948_v28 = vpop.f32.mrb[78].mxu1  ;;  %v5622_v33 = vpop.f32.mrb[78].mxu0 }
 0x264   : > { %v7226_v27 = vadd.f32 %v2092_v36, %v1428_v61  ;;  %v1431_v12 = vadd.f32 %v5622_v33, %v7141_v62  ;;  %v4949_v37 = vpop.f32.mrb[79].mxu1  ;;  %v1422_v3 = vpop.f32.mrb[79].mxu0  ;;  %v2096_v62 = vsel %vm411_vm1, %v7056_v34, 0.0  ;;  %v6049_v34 = vld [vmem:[#allocation8 + $0x100] sm:$0xff]  }
 0x265   : > { %v7232_v13 = vadd.f32 %v2090_v44, %v1420_v23  ;;  %v4950_v20 = vadd.f32 %v4949_v37, %v4948_v28  ;;  %v1423_v50 = vadd.f32 %v7127_v51, %v1422_v3  ;;  %5271 = vmatprep.subr.bf16.mxu0 %v6049_v34 }
 0x266   : > { %v7236_v0 = vadd.f32 %v7028_v47, %v1431_v12  ;;  %v2100_v12 = vsel %vm411_vm1, %v7088_v32, 0.0 }
 0x267   : > { %v7239_v45 = vadd.f32 %v7012_v14, %v1423_v50  ;;  %v2094_v14 = vsel %vm411_vm1, %v7040_v29, 0.0 }
 0x269   : > { %v4951_v42 = vpop.f32.mrb[80].mxu1  ;;  %v5625_v26 = vpop.f32.mrb[80].mxu0 }
 0x26a   : > { %v1444_v24 = vadd.f32 %v5625_v26, %v4935_v48  ;;  %v4952_v63 = vpop.f32.mrb[81].mxu1  ;;  %v1435_v8 = vpop.f32.mrb[81].mxu0 }
 0x26b   : > { %v4953_v2 = vadd.f32 %v4952_v63, %v4951_v42  ;;  %v1436_v57 = vadd.f32 %v7149_v56, %v1435_v8  ;;  %v4954_v18 = vpop.f32.mrb[82].mxu1  ;;  %v5626_v51 = vpop.f32.mrb[82].mxu0 }
 0x26c   : > { %v7245_v55 = vadd.f32 %v2096_v62, %v1444_v24  ;;  %v1447_v47 = vadd.f32 %v5626_v51, %v4938_v38  ;;  %v4955_v61 = vpop.f32.mrb[83].mxu1  ;;  %v1438_v48 = vpop.f32.mrb[83].mxu0 }
 0x26d   : > { %v7250_v60 = vadd.f32 %v2094_v14, %v1436_v57  ;;  %v4956_v49 = vadd.f32 %v4955_v61, %v4954_v18  ;;  %v1439_v36 = vadd.f32 %v7168_v9, %v1438_v48 }
 0x26e   : > { %v7254_v23 = vadd.f32 %v7060_v11, %v1447_v47 }
 0x26f   : > { %v7257_v56 = vadd.f32 %v7044_v21, %v1439_v36  ;;  %v2098_v21 = vsel %vm411_vm1, %v7072_v31, 0.0  ;;  %v2104_v31 = vsel %vm411_vm1, %v7120_v7, 0.0  ;;  %v8512_v7 = vld [vmem:[#allocation22_spill] sm:$0xff] }
 0x271   : > { %v4957_v28 = vpop.f32.mrb[84].mxu1  ;;  %v5629_v33 = vpop.f32.mrb[84].mxu0 }
 0x272   : > { %v1460_v44 = vadd.f32 %v5629_v33, %v4947_v6  ;;  %v4958_v29 = vpop.f32.mrb[85].mxu1  ;;  %v1451_v38 = vpop.f32.mrb[85].mxu0 }
 0x273   : > { %v4959_v37 = vadd.f32 %v4958_v29, %v4957_v28  ;;  %v1452_v9 = vadd.f32 %v7201_v39, %v1451_v38  ;;  %v4960_v3 = vpop.f32.mrb[86].mxu1  ;;  %v5630_v50 = vpop.f32.mrb[86].mxu0  ;;  %v8511_v29 = vld [vmem:[#allocation23_spill] sm:$0xff] }
 0x274   : > { %v7263_v11 = vadd.f32 %v2100_v12, %v1460_v44  ;;  %v1463_v42 = vadd.f32 %v5630_v50, %v4950_v20  ;;  %v4961_v26 = vpop.f32.mrb[87].mxu1  ;;  %v1454_v6 = vpop.f32.mrb[87].mxu0 }
 0x275   : > { %v7268_v24 = vadd.f32 %v2098_v21, %v1452_v9  ;;  %v4962_v63 = vadd.f32 %v4961_v26, %v4960_v3  ;;  %v1455_v8 = vadd.f32 %v7212_v15, %v1454_v6  ;;  %v2106_v26 = vsel %vm411_vm1, %v7134_v19, 0.0 }
 0x276   : > { %v7272_v32 = vadd.f32 %v7092_v40, %v1463_v42 }
 0x277   : > { %v7275_v39 = vadd.f32 %v7076_v4, %v1455_v8  ;;  %v2102_v4 = vsel %vm411_vm1, %v7106_v43, 0.0 }
 0x279   : > { %v4963_v62 = vpop.f32.mrb[88].mxu1  ;;  %v5633_v57 = vpop.f32.mrb[88].mxu0 }
 0x27a   : > { %v1476_v18 = vadd.f32 %v5633_v57, %v4959_v37  ;;  %v4964_v51 = vpop.f32.mrb[89].mxu1  ;;  %v1467_v14 = vpop.f32.mrb[89].mxu0 }
 0x27b   : > { %v4965_v20 = vadd.f32 %v4964_v51, %v4963_v62  ;;  %v1468_v47 = vadd.f32 %v4953_v2, %v1467_v14  ;;  %v4966_v61 = vpop.f32.mrb[90].mxu1  ;;  %v5634_v48 = vpop.f32.mrb[90].mxu0 }
 0x27c   : > { %v7280_v15 = vadd.f32 %v2104_v31, %v1476_v18  ;;  %v1479_v40 = vadd.f32 %v5634_v48, %v4962_v63  ;;  %v4967_v36 = vpop.f32.mrb[91].mxu1  ;;  %v1470_v34 = vpop.f32.mrb[91].mxu0  ;;  %v2108_v18 = vsel %vm411_vm1, %v7154_v1, 0.0 }
 0x27d   : > { %v7285_v28 = vadd.f32 %v2102_v4, %v1468_v47  ;;  %v4968_v33 = vadd.f32 %v4967_v36, %v4966_v61  ;;  %v1471_v44 = vadd.f32 %v4956_v49, %v1470_v34 }
 0x27e   : > { %v7288_v38 = vadd.f32 %v8511_v29, %v1479_v40  ;;  %v7310_v29 = vadd.s32 8, %v6886_v17 }
 0x27f   : > { %v7291_v2 = vadd.f32 %v8512_v7, %v1471_v44 }
 0x280   : > { %vm414_vm3 = vcmp.lt.s32.totalorder %v7310_v29, 15 }
 0x281   : > { %v4969_v12 = vpop.f32.mrb[92].mxu1  ;;  %v5637_v37 = vpop.f32.mrb[92].mxu0 }
 0x282   : > { %v4970_v9 = vpop.f32.mrb[93].mxu1  ;;  %v1483_v3 = vpop.f32.mrb[93].mxu0 }
 0x283   : > { %v4971_v50 = vadd.f32 %v4970_v9, %v4969_v12  ;;  %v1484_v21 = vadd.f32 %v4965_v20, %v1483_v3  ;;  %v4972_v43 = vpop.f32.mrb[94].mxu1  ;;  %v5638_v42 = vpop.f32.mrb[94].mxu0 }
 0x284   : > { %v4973_v6 = vpop.f32.mrb[95].mxu1  ;;  %v1486_v49 = vpop.f32.mrb[95].mxu0 }
 0x285   : > { %v1492_v63 = vadd.f32 %v5637_v37, %v4971_v50  ;;  %v7296_v8 = vadd.f32 %v2106_v26, %v1484_v21  ;;  %v4974_v62 = vadd.f32 %v4973_v6, %v4972_v43  ;;  %v1487_v57 = vadd.f32 %v4968_v33, %v1486_v49  ;;  %v7316_v50 = vld [vmem:[#allocation9] ss:$0 sm:$0xff] }
 0x287   : > { %v7301_v51 = vadd.f32 %v2108_v18, %v1492_v63  ;;  %v1495_v14 = vadd.f32 %v5638_v42, %v4974_v62  ;;  %v7304_v31 = vadd.f32 %v7138_v54, %v1487_v57  ;;  %v7327_v18 = vld [vmem:[#allocation11] ss:$0 sm:$0xff] }
 0x289   : > { %v7307_v20 = vadd.f32 %v7158_v53, %v1495_v14  ;;  %v5015_v19 = vpop.f32.mrb[96].mxu0  ;;  %v5657_v47 = vpop.f32.mrb[96].mxu1 }
 0x28a   : > { %v5016_v61 = vpop.f32.mrb[97].mxu0  ;;  %v1886_v48 = vpop.f32.mrb[97].mxu1 }
 0x28b   : > { %v5017_v4 = vadd.f32 %v5016_v61, %v5015_v19  ;;  %v5018_v40 = vpop.f32.mrb[98].mxu0  ;;  %v5658_v36 = vpop.f32.mrb[98].mxu1 }
 0x28c   : > { %v5019_v34 = vpop.f32.mrb[99].mxu0  ;;  %v1889_v33 = vpop.f32.mrb[99].mxu1 }
 0x28d   : > { %v1887_v44 = vadd.f32 %v5017_v4, %v1886_v48  ;;  %v5020_v1 = vadd.f32 %v5019_v34, %v5018_v40 }
 0x28f   : > { %v1890_v7 = vadd.f32 %v5020_v1, %v1889_v33  ;;  %v2110_v54 = vrot.slane %v1887_v44, 1 }
 0x291   : > { %v2126_v53 = vrot.slane %v1890_v7, 1  ;;  %v5021_v12 = vpop.f32.mrb[100].mxu0  ;;  %v7314_v37 = vpop.f32.mrb[100].mxu1 }
 0x292   : > { %v5022_v9 = vpop.f32.mrb[101].mxu0  ;;  %v1902_v3 = vpop.f32.mrb[101].mxu1 }
 0x293   : > { %v2143_v21 = vsel %vm2142_vm2, %v2110_v54, %v2126_v53  ;;  %v2159_v43 = vsel %vm2142_vm2, %v2126_v53, %v2110_v54  ;;  %v5023_v42 = vadd.f32 %v5022_v9, %v5021_v12  ;;  %v5024_v26 = vpop.f32.mrb[102].mxu0  ;;  %v7322_v6 = vpop.f32.mrb[102].mxu1 }
 0x294   : > { %v2176_v49 = vsel %vm414_vm3, %v2159_v43, 0.0  ;;  %v2239_v63 = vadd.f32 %v7166_v22, %v2143_v21  ;;  %v5025_v62 = vpop.f32.mrb[103].mxu0  ;;  %v1905_v57 = vpop.f32.mrb[103].mxu1 }
 0x295   : > { %v2240_v14 = vadd.f32 %v7175_v52, %v2176_v49  ;;  %v1895_v19 = vadd.f32 %v5657_v47, %v5023_v42  ;;  %v5026_v61 = vadd.f32 %v5025_v62, %v5024_v26 }
 0x296   : > { %v2271_v48 = vmul.f32 %v7316_v50, %v2239_v63 }
 0x297   : > { %v2272_v4 = vmul.f32 %v7316_v50, %v2240_v14  ;;  %v1898_v40 = vadd.f32 %v5658_v36, %v5026_v61  ;;  %v2111_v44 = vrot.slane %v1895_v19, 1 }
 0x298   : > { %v2303_v34 = vadd.f32 %v7327_v18, %v2271_v48 }
 0x299   : > { %v2304_v33 = vadd.f32 %v7327_v18, %v2272_v4  ;;  %v2127_v1 = vrot.slane %v1898_v40, 1  ;;  %v5027_v22 = vpop.f32.mrb[104].mxu0  ;;  %v7334_v7 = vpop.f32.mrb[104].mxu1  ;;  %v6045_v4 = vld [vmem:[#allocation8 + $0x148] sm:$0xff]  }
 0x29a   : > { %v2335_v54 = vmax.f32 %v2303_v34, 0.0  ;;  %v5028_v53 = vpop.f32.mrb[105].mxu0  ;;  %v7336_v12 = vpop.f32.mrb[105].mxu1 }
 0x29b   : > { %v2336_v52 = vmax.f32 %v2304_v33, 0.0  ;;  %v2144_v47 = vsel %vm2142_vm2, %v2111_v44, %v2127_v1  ;;  %v2160_v36 = vsel %vm2142_vm2, %v2127_v1, %v2111_v44  ;;  %v5029_v9 = vadd.f32 %v5028_v53, %v5027_v22  ;;  %v5030_v21 = vpop.f32.mrb[106].mxu0  ;;  %v7342_v43 = vpop.f32.mrb[106].mxu1 }
 0x29c   : > { %v2178_v42 = vsel %vm414_vm3, %v2160_v36, 0.0  ;;  %v2241_v26 = vadd.f32 %v7160_v16, %v2144_v47  ;;  %v5031_v49 = vpop.f32.mrb[107].mxu0  ;;  %v7347_v63 = vpop.f32.mrb[107].mxu1  ;;  %v8485_v16 = vmov 0   ;;  %v6046_v47 = vld [vmem:[#allocation8 + $0x150] sm:$0xff]  }
 0x29d   : > { %v7349_v62 = vpack.c.bf16 %v2336_v52, %v2335_v54  ;;  %v2242_v14 = vadd.f32 %v7172_v46, %v2178_v42  ;;  %v1903_v19 = vadd.f32 %v5029_v9, %v1902_v3  ;;  %v5032_v61 = vadd.f32 %v5031_v49, %v5030_v21  ;;  %v8513_v3 = vld [vmem:[#allocation21_spill] sm:$0xff] }
 0x29e   : > { %v2273_v48 = vmul.f32 %v7316_v50, %v2241_v26 }
 0x29f   : > { %v2274_v40 = vmul.f32 %v7316_v50, %v2242_v14  ;;  %v1906_v34 = vadd.f32 %v5032_v61, %v1905_v57  ;;  %2642 = vmatprep.mubr.bf16.mxu1 %v7349_v62  ;;  %v2112_v1 = vrot.slane %v1903_v19, 1 }
 0x2a0   : > { %v2305_v33 = vadd.f32 %v7327_v18, %v2273_v48  ;;  %2643 = vmatmul.mubr.bf16.vlgmr.msra.gmra.mrb[128].mxu1 %v8485_v16 }
 0x2a1   : > { %v2306_v44 = vadd.f32 %v7327_v18, %v2274_v40  ;;  %v2128_v22 = vrot.slane %v1906_v34, 1  ;;  %v5033_v46 = vpop.f32.mrb[108].mxu0  ;;  %5736 = vmatpush3.bf16.msra.mxu1 %v8513_v3  ;;  %v7359_v54 = vpop.f32.mrb[108].mxu1 }
 0x2a2   : > { %v2337_v53 = vmax.f32 %v2305_v33, 0.0  ;;  %v5034_v52 = vpop.f32.mrb[109].mxu0  ;;  %5737 = vmatprep.subr.bf16.mxu1 %v6045_v4  ;;  %v7361_v57 = vpop.f32.mrb[109].mxu1 }
 0x2a3   : > { %v2338_v36 = vmax.f32 %v2306_v44, 0.0  ;;  %v2145_v9 = vsel %vm2142_vm2, %v2112_v1, %v2128_v22  ;;  %v2161_v21 = vsel %vm2142_vm2, %v2128_v22, %v2112_v1  ;;  %v5035_v42 = vadd.f32 %v5034_v52, %v5033_v46  ;;  %v5036_v26 = vpop.f32.mrb[110].mxu0  ;;  %v7367_v49 = vpop.f32.mrb[110].mxu1  ;;  %v6047_v22 = vld [vmem:[#allocation8 + $0x158] sm:$0xff]  }
 0x2a4   : > { %v2180_v14 = vsel %vm414_vm3, %v2161_v21, 0.0  ;;  %v2243_v19 = vadd.f32 %v7188_v41, %v2145_v9  ;;  %v5037_v61 = vpop.f32.mrb[111].mxu0  ;;  %v7372_v48 = vpop.f32.mrb[111].mxu1 }
 0x2a5   : > { %v7374_v40 = vpack.c.bf16 %v2338_v36, %v2337_v53  ;;  %v2244_v34 = vadd.f32 %v7195_v5, %v2180_v14  ;;  %v1911_v33 = vadd.f32 %v7314_v37, %v5035_v42  ;;  %v5038_v44 = vadd.f32 %v5037_v61, %v5036_v26  ;;  %5738 = vmatpush3.bf16.msra.mxu1 %v6045_v4 }
 0x2a6   : > { %v2275_v1 = vmul.f32 %v7316_v50, %v2243_v19  ;;  %5739 = vmatprep.subr.bf16.mxu1 %v6046_v47 }
 0x2a7   : > { %8514 = vst [vmem:[#allocation23_spill] sm:$0xff] %v7374_v40  ;;  %v2276_v46 = vmul.f32 %v7316_v50, %v2244_v34  ;;  %v1914_v3 = vadd.f32 %v7322_v6, %v5038_v44  ;;  %2650 = vmatprep.mubr.bf16.mxu1 %v7374_v40  ;;  %5703 = vmatprep.mubr.bf16.mxu0 %v7374_v40  ;;  %v2113_v37 = vrot.slane %v1911_v33, 1  ;;  %v6048_v6 = vld [vmem:[#allocation8 + $0x160] sm:$0xff]  }
 0x2a8   : > { %v2307_v41 = vadd.f32 %v7327_v18, %v2275_v1  ;;  %2651 = vmatmul.mubr.bf16.gmra.mrb[132].mxu1 %v7349_v62 }
 0x2a9   : > { %v2308_v5 = vadd.f32 %v7327_v18, %v2276_v46  ;;  %v2129_v4 = vrot.slane %v1914_v3, 1  ;;  %v5039_v53 = vpop.f32.mrb[112].mxu0  ;;  %5740 = vmatpush3.bf16.msra.mxu1 %v6046_v47  ;;  %v7386_v52 = vpop.f32.mrb[112].mxu1  ;;  %v6050_v46 = vld [vmem:[#allocation8 + $0xc0] sm:$0xff]  }
 0x2aa   : > { %v2339_v36 = vmax.f32 %v2307_v41, 0.0  ;;  %v5040_v9 = vpop.f32.mrb[113].mxu0  ;;  %v7388_v21 = vpop.f32.mrb[113].mxu1  ;;  %5741 = vmatprep.subr.bf16.mxu1 %v6047_v22 }
 0x2ab   : > { %v2340_v42 = vmax.f32 %v2308_v5, 0.0  ;;  %v2146_v26 = vsel %vm2142_vm2, %v2113_v37, %v2129_v4  ;;  %v2162_v14 = vsel %vm2142_vm2, %v2129_v4, %v2113_v37  ;;  %v5041_v19 = vadd.f32 %v5040_v9, %v5039_v53  ;;  %v5042_v61 = vpop.f32.mrb[114].mxu0  ;;  %v7394_v34 = vpop.f32.mrb[114].mxu1  ;;  %v6051_v4 = vld [vmem:[#allocation8 + $0x108] sm:$0xff]  }
 0x2ac   : > { %v2182_v47 = vsel %vm414_vm3, %v2162_v14, 0.0  ;;  %v2245_v33 = vadd.f32 %v7182_v58, %v2146_v26  ;;  %v5043_v44 = vpop.f32.mrb[115].mxu0  ;;  %v7399_v1 = vpop.f32.mrb[115].mxu1  ;;  %v6053_v9 = vld [vmem:[#allocation8 + $0x168] sm:$0xff]  }
 0x2ad   : > { %v7401_v3 = vpack.c.bf16 %v2340_v42, %v2339_v36  ;;  %v2246_v41 = vadd.f32 %v7192_v30, %v2182_v47  ;;  %v1919_v5 = vadd.f32 %v5041_v19, %v7336_v12  ;;  %v5044_v37 = vadd.f32 %v5043_v44, %v5042_v61  ;;  %5742 = vmatpush3.bf16.msra.mxu1 %v6047_v22  ;;  %v6052_v30 = vld [vmem:[#allocation8 + $0xc8] sm:$0xff]   ;;  %v6058_v44 = vld [vmem:[#allocation8 + $0x170] sm:$0xff]  }
 0x2ae   : > { %v2277_v53 = vmul.f32 %v7316_v50, %v2245_v33  ;;  %5743 = vmatprep.subr.bf16.mxu1 %v6048_v6  ;;  %v6054_v33 = vld [vmem:[#allocation8 + $0x110] sm:$0xff]  }
 0x2af   : > { %8515 = vst [vmem:[#allocation22_spill] sm:$0xff] %v7401_v3  ;;  %v2278_v14 = vmul.f32 %v7316_v50, %v2246_v41  ;;  %v1922_v58 = vadd.f32 %v5044_v37, %v7347_v63  ;;  %2658 = vmatprep.mubr.bf16.mxu1 %v7401_v3  ;;  %5704 = vmatmul.mubr.bf16.vlgmr.msra.gmra.mrb[160].mxu0 %v7401_v3  ;;  %v2114_v22 = vrot.slane %v1919_v5, 1 }
 0x2b0   : > { %v2309_v36 = vadd.f32 %v7327_v18, %v2277_v53  ;;  %2659 = vmatmul.mubr.bf16.gmra.mrb[136].mxu1 %v7374_v40  ;;  %5272 = vmatpush3.bf16.msra.mxu0 %v6050_v46 }
 0x2b1   : > { %v2310_v12 = vadd.f32 %v7327_v18, %v2278_v14  ;;  %v2130_v42 = vrot.slane %v1922_v58, 1  ;;  %v5045_v26 = vpop.f32.mrb[116].mxu0  ;;  %v7413_v19 = vpop.f32.mrb[116].mxu1  ;;  %5744 = vmatpush3.bf16.msra.mxu1 %v6048_v6  ;;  %5273 = vmatprep.subr.bf16.mxu0 %v6051_v4 }
 0x2b2   : > { %v2341_v63 = vmax.f32 %v2309_v36, 0.0  ;;  %v5046_v61 = vpop.f32.mrb[117].mxu0  ;;  %v7415_v47 = vpop.f32.mrb[117].mxu1  ;;  %5745 = vmatprep.subr.bf16.mxu1 %v6053_v9 }
 0x2b3   : > { %v2342_v41 = vmax.f32 %v2310_v12, 0.0  ;;  %v2147_v46 = vsel %vm2142_vm2, %v2114_v22, %v2130_v42  ;;  %v2163_v5 = vsel %vm2142_vm2, %v2130_v42, %v2114_v22  ;;  %v5047_v37 = vadd.f32 %v5046_v61, %v5045_v26  ;;  %v5048_v53 = vpop.f32.mrb[118].mxu0  ;;  %v7421_v14 = vpop.f32.mrb[118].mxu1  ;;  %v6055_v12 = vld [vmem:[#allocation8 + $0xd0] sm:$0xff]   ;;  %v6056_v26 = vld [vmem:[#allocation8 + $0x118] sm:$0xff]  }
 0x2b4   : > { %v2184_v6 = vsel %vm414_vm3, %v2163_v5, 0.0  ;;  %v2247_v4 = vadd.f32 %v7210_v59, %v2147_v46  ;;  %v5049_v58 = vpop.f32.mrb[119].mxu0  ;;  %v7426_v36 = vpop.f32.mrb[119].mxu1  ;;  %5274 = vmatpush3.bf16.msra.mxu0 %v6052_v30  ;;  %v6063_v5 = vld [vmem:[#allocation8 + $0x178] sm:$0xff]  }
 0x2b5   : > { %v7428_v16 = vpack.c.bf16 %v2342_v41, %v2341_v63  ;;  %v2248_v40 = vadd.f32 %v7219_v35, %v2184_v6  ;;  %v1927_v22 = vadd.f32 %v7334_v7, %v5047_v37  ;;  %v5050_v42 = vadd.f32 %v5049_v58, %v5048_v53  ;;  %5746 = vmatpush3.bf16.msra.mxu1 %v6053_v9  ;;  %v6057_v7 = vld [vmem:[#allocation8 + $0xd8] sm:$0xff]  }
 0x2b6   : > { %v2279_v61 = vmul.f32 %v7316_v50, %v2247_v4  ;;  %5275 = vmatprep.subr.bf16.mxu0 %v6054_v33  ;;  %5747 = vmatprep.subr.bf16.mxu1 %v6058_v44 }
 0x2b7   : > { %v2280_v59 = vmul.f32 %v7316_v50, %v2248_v40  ;;  %v1930_v46 = vadd.f32 %v7342_v43, %v5050_v42  ;;  %2666 = vmatprep.mubr.bf16.mxu1 %v7428_v16  ;;  %5707 = vmatprep.mubr.bf16.mxu0 %v7428_v16  ;;  %v2115_v30 = vrot.slane %v1927_v22, 1  ;;  %v6059_v43 = vld [vmem:[#allocation8 + $0x120] sm:$0xff]  }
 0x2b8   : > { %v2311_v35 = vadd.f32 %v7327_v18, %v2279_v61  ;;  %2667 = vmatmul.mubr.bf16.gmra.mrb[140].mxu1 %v7401_v3  ;;  %5276 = vmatpush3.bf16.msra.mxu0 %v6055_v12 }
 0x2b9   : > { %v2312_v9 = vadd.f32 %v7327_v18, %v2280_v59  ;;  %v2131_v63 = vrot.slane %v1930_v46, 1  ;;  %v5051_v33 = vpop.f32.mrb[120].mxu0  ;;  %v7440_v41 = vpop.f32.mrb[120].mxu1  ;;  %5277 = vmatprep.subr.bf16.mxu0 %v6056_v26  ;;  %5748 = vmatpush3.bf16.msra.mxu1 %v6058_v44  ;;  %v6060_v46 = vld [vmem:[#allocation8 + $0xe0] sm:$0xff]  }
 0x2ba   : > { %v2343_v40 = vmax.f32 %v2311_v35, 0.0  ;;  %v5052_v37 = vpop.f32.mrb[121].mxu0  ;;  %v7442_v53 = vpop.f32.mrb[121].mxu1  ;;  %5749 = vmatprep.subr.bf16.mxu1 %v6063_v5 }
 0x2bb   : > { %v2344_v6 = vmax.f32 %v2312_v9, 0.0  ;;  %v2148_v4 = vsel %vm2142_vm2, %v2115_v30, %v2131_v63  ;;  %v2164_v58 = vsel %vm2142_vm2, %v2131_v63, %v2115_v30  ;;  %v5053_v12 = vadd.f32 %v5052_v37, %v5051_v33  ;;  %v5054_v22 = vpop.f32.mrb[122].mxu0  ;;  %v7448_v42 = vpop.f32.mrb[122].mxu1  ;;  %v6061_v33 = vld [vmem:[#allocation8 + $0x128] sm:$0xff]   ;;  %v6068_v37 = vld [vmem:[#allocation8 + $0x1c0] sm:$0xff]  }
 0x2bc   : > { %v2186_v44 = vsel %vm414_vm3, %v2164_v58, 0.0  ;;  %v2249_v26 = vadd.f32 %v7204_v25, %v2148_v4  ;;  %v5055_v61 = vpop.f32.mrb[123].mxu0  ;;  %v7453_v59 = vpop.f32.mrb[123].mxu1  ;;  %5278 = vmatpush3.bf16.msra.mxu0 %v6057_v7  ;;  %v6064_v58 = vld [vmem:[#allocation8 + $0x130] sm:$0xff]  }
 0x2bd   : > { %v7455_v35 = vpack.c.bf16 %v2344_v6, %v2343_v40  ;;  %v2250_v9 = vadd.f32 %v7216_v10, %v2186_v44  ;;  %v1935_v30 = vadd.f32 %v5053_v12, %v7361_v57  ;;  %v5056_v63 = vadd.f32 %v5055_v61, %v5054_v22  ;;  %5279 = vmatprep.subr.bf16.mxu0 %v6059_v43  ;;  %v6062_v10 = vld [vmem:[#allocation8 + $0xe8] sm:$0xff]  }
 0x2be   : > { %v2281_v3 = vmul.f32 %v7316_v50, %v2249_v26  ;;  %5750 = vmatpush3.bf16.msra.mxu1 %v6063_v5 }
 0x2bf   : > { %v2282_v25 = vmul.f32 %v7316_v50, %v2250_v9  ;;  %v1938_v4 = vadd.f32 %v5056_v63, %v7372_v48  ;;  %2674 = vmatprep.mubr.bf16.mxu1 %v7455_v35  ;;  %5708 = vmatmul.mubr.bf16.gmra.mrb[164].mxu0 %v7455_v35  ;;  %v2116_v43 = vrot.slane %v1935_v30, 1 }
 0x2c0   : > { %v2313_v7 = vadd.f32 %v7327_v18, %v2281_v3  ;;  %2675 = vmatmul.mubr.bf16.gmra.mrb[144].mxu1 %v7428_v16  ;;  %5280 = vmatpush3.bf16.msra.mxu0 %v6060_v46 }
 0x2c1   : > { %v2314_v57 = vadd.f32 %v7327_v18, %v2282_v25  ;;  %v2132_v40 = vrot.slane %v1938_v4, 1  ;;  %v5057_v6 = vpop.f32.mrb[124].mxu0  ;;  %v7467_v5 = vpop.f32.mrb[124].mxu1  ;;  %5281 = vmatprep.subr.bf16.mxu0 %v6061_v33  ;;  %5407 = vmatprep.subr.bf16.mxu1 %v6068_v37  ;;  %v6065_v25 = vld [vmem:[#allocation8 + $0xf0] sm:$0xff]  }
 0x2c2   : > { %v2345_v48 = vmax.f32 %v2313_v7, 0.0  ;;  %v5058_v12 = vpop.f32.mrb[125].mxu0  ;;  %v7469_v22 = vpop.f32.mrb[125].mxu1 }
 0x2c3   : > { %v2346_v44 = vmax.f32 %v2314_v57, 0.0  ;;  %v2149_v3 = vsel %vm2142_vm2, %v2116_v43, %v2132_v40  ;;  %v2165_v26 = vsel %vm2142_vm2, %v2132_v40, %v2116_v43  ;;  %v5059_v61 = vadd.f32 %v5058_v12, %v5057_v6  ;;  %v5060_v46 = vpop.f32.mrb[126].mxu0  ;;  %v7475_v9 = vpop.f32.mrb[126].mxu1  ;;  %v6066_v40 = vld [vmem:[#allocation8 + $0x138] sm:$0xff]  }
 0x2c4   : > { %v2188_v30 = vsel %vm414_vm3, %v2165_v26, 0.0  ;;  %v2251_v63 = vadd.f32 %v7232_v13, %v2149_v3  ;;  %v5061_v33 = vpop.f32.mrb[127].mxu0  ;;  %v7480_v37 = vpop.f32.mrb[127].mxu1  ;;  %5282 = vmatpush3.bf16.msra.mxu0 %v6062_v10  ;;  %v7494_v3 = vld [vmem:[#allocation8 + $0x200] sm:$0xff]  }
 0x2c5   : > { %v7482_v4 = vpack.c.bf16 %v2346_v44, %v2345_v48  ;;  %v2252_v7 = vadd.f32 %v7239_v45, %v2188_v30  ;;  %v1943_v57 = vadd.f32 %v7359_v54, %v5059_v61  ;;  %v5062_v43 = vadd.f32 %v5061_v33, %v5060_v46  ;;  %5283 = vmatprep.subr.bf16.mxu0 %v6064_v58  ;;  %v6067_v45 = vld [vmem:[#allocation8 + $0xf8] sm:$0xff]  }
 0x2c6   : > { %v2283_v6 = vmul.f32 %v7316_v50, %v2251_v63 }
 0x2c7   : > { %v2284_v12 = vmul.f32 %v7316_v50, %v2252_v7  ;;  %v1946_v13 = vadd.f32 %v7367_v49, %v5062_v43  ;;  %2682 = vmatprep.mubr.bf16.mxu1 %v7482_v4  ;;  %5711 = vmatprep.mubr.bf16.mxu0 %v7482_v4  ;;  %v2117_v58 = vrot.slane %v1943_v57, 1 }
 0x2c8   : > { %v2315_v10 = vadd.f32 %v7327_v18, %v2283_v6  ;;  %2683 = vmatmul.mubr.bf16.gmra.mrb[148].mxu1 %v7455_v35  ;;  %5284 = vmatpush3.bf16.msra.mxu0 %v6065_v25 }
 0x2c9   : > { %v2316_v54 = vadd.f32 %v7327_v18, %v2284_v12  ;;  %v2133_v48 = vrot.slane %v1946_v13, 1  ;;  %v5063_v44 = vpop.f32.mrb[128].mxu0  ;;  %5285 = vmatprep.subr.bf16.mxu0 %v6066_v40 }
 0x2ca   : > { %v2347_v26 = vmax.f32 %v2315_v10, 0.0  ;;  %v5064_v49 = vpop.f32.mrb[129].mxu0 }
 0x2cb   : > { %v2348_v61 = vmax.f32 %v2316_v54, 0.0  ;;  %v2150_v46 = vsel %vm2142_vm2, %v2117_v58, %v2133_v48  ;;  %v2166_v30 = vsel %vm2142_vm2, %v2133_v48, %v2117_v58  ;;  %v5065_v63 = vadd.f32 %v5064_v49, %v5063_v44  ;;  %v5066_v33 = vpop.f32.mrb[130].mxu0 }
 0x2cc   : > { %v2190_v25 = vsel %vm414_vm3, %v2166_v30, 0.0  ;;  %v2253_v7 = vadd.f32 %v7226_v27, %v2150_v46  ;;  %v5067_v57 = vpop.f32.mrb[131].mxu0  ;;  %5286 = vmatpush3.bf16.msra.mxu0 %v6067_v45 }
 0x2cd   : > { %v7503_v43 = vpack.c.bf16 %v2348_v61, %v2347_v26  ;;  %v2254_v40 = vadd.f32 %v7236_v0, %v2190_v25  ;;  %v1951_v6 = vadd.f32 %v5065_v63, %v7388_v21  ;;  %v5068_v12 = vadd.f32 %v5067_v57, %v5066_v33  ;;  %5783 = vmatprep.subr.bf16.mxu0 %v7494_v3 }
 0x2ce   : > { %v2285_v13 = vmul.f32 %v7316_v50, %v2253_v7 }
 0x2cf   : > { %v2286_v10 = vmul.f32 %v7316_v50, %v2254_v40  ;;  %v1954_v54 = vadd.f32 %v5068_v12, %v7399_v1  ;;  %2690 = vmatprep.mubr.bf16.mxu1 %v7503_v43  ;;  %5712 = vmatmul.mubr.bf16.gmra.mrb[168].mxu0 %v7503_v43  ;;  %v2118_v21 = vrot.slane %v1951_v6, 1 }
 0x2d0   : > { %v2317_v27 = vadd.f32 %v7327_v18, %v2285_v13  ;;  %2691 = vmatmul.mubr.bf16.gmra.mrb[152].mxu1 %v7482_v4 }
 0x2d1   : > { %v2318_v0 = vadd.f32 %v7327_v18, %v2286_v10  ;;  %v2134_v45 = vrot.slane %v1954_v54, 1  ;;  %v5069_v58 = vpop.f32.mrb[132].mxu0 }
 0x2d2   : > { %v2349_v48 = vmax.f32 %v2317_v27, 0.0  ;;  %v5070_v44 = vpop.f32.mrb[133].mxu0 }
 0x2d3   : > { %v2350_v26 = vmax.f32 %v2318_v0, 0.0  ;;  %v2151_v49 = vsel %vm2142_vm2, %v2118_v21, %v2134_v45  ;;  %v2167_v1 = vsel %vm2142_vm2, %v2134_v45, %v2118_v21  ;;  %v5071_v61 = vadd.f32 %v5070_v44, %v5069_v58  ;;  %v5072_v46 = vpop.f32.mrb[134].mxu0 }
 0x2d4   : > { %v2192_v30 = vsel %vm414_vm3, %v2167_v1, 0.0  ;;  %v2255_v63 = vadd.f32 %v7250_v60, %v2151_v49  ;;  %v5073_v33 = vpop.f32.mrb[135].mxu0 }
 0x2d5   : > { %v7523_v25 = vpack.c.bf16 %v2350_v26, %v2349_v48  ;;  %v2256_v7 = vadd.f32 %v7257_v56, %v2192_v30  ;;  %v1959_v57 = vadd.f32 %v7386_v52, %v5071_v61  ;;  %v5074_v40 = vadd.f32 %v5073_v33, %v5072_v46 }
 0x2d6   : > { %v2287_v6 = vmul.f32 %v7316_v50, %v2255_v63 }
 0x2d7   : > { %v2288_v12 = vmul.f32 %v7316_v50, %v2256_v7  ;;  %v1962_v13 = vadd.f32 %v7394_v34, %v5074_v40  ;;  %2698 = vmatprep.mubr.bf16.mxu1 %v7523_v25  ;;  %5715 = vmatprep.mubr.bf16.mxu0 %v7523_v25  ;;  %v2119_v56 = vrot.slane %v1959_v57, 1 }
 0x2d8   : > { %v2319_v60 = vadd.f32 %v7327_v18, %v2287_v6  ;;  %2699 = vmatmul.mubr.bf16.gmra.mrb[156].mxu1 %v7503_v43 }
 0x2d9   : > { %v2320_v10 = vadd.f32 %v7327_v18, %v2288_v12  ;;  %v2135_v54 = vrot.slane %v1962_v13, 1  ;;  %v5075_v52 = vpop.f32.mrb[136].mxu0 }
 0x2da   : > { %v2351_v27 = vmax.f32 %v2319_v60, 0.0  ;;  %v5076_v0 = vpop.f32.mrb[137].mxu0 }
 0x2db   : > { %v2352_v21 = vmax.f32 %v2320_v10, 0.0  ;;  %v2152_v45 = vsel %vm2142_vm2, %v2119_v56, %v2135_v54  ;;  %v2168_v34 = vsel %vm2142_vm2, %v2135_v54, %v2119_v56  ;;  %v5077_v58 = vadd.f32 %v5076_v0, %v5075_v52  ;;  %v5078_v48 = vpop.f32.mrb[138].mxu0 }
 0x2dc   : > { %v2194_v44 = vsel %vm414_vm3, %v2168_v34, 0.0  ;;  %v2257_v26 = vadd.f32 %v7245_v55, %v2152_v45  ;;  %v5079_v49 = vpop.f32.mrb[139].mxu0 }
 0x2dd   : > { %v7542_v1 = vpack.c.bf16 %v2352_v21, %v2351_v27  ;;  %v2258_v61 = vadd.f32 %v7254_v23, %v2194_v44  ;;  %v1967_v46 = vadd.f32 %v5077_v58, %v7415_v47  ;;  %v5080_v30 = vadd.f32 %v5079_v49, %v5078_v48 }
 0x2de   : > { %v2289_v63 = vmul.f32 %v7316_v50, %v2257_v26 }
 0x2df   : > { %v2290_v33 = vmul.f32 %v7316_v50, %v2258_v61  ;;  %v1970_v7 = vadd.f32 %v5080_v30, %v7426_v36  ;;  %2706 = vmatprep.mubr.bf16.mxu1 %v7542_v1  ;;  %5716 = vmatmul.mubr.bf16.gmra.mrb[172].mxu0 %v7542_v1  ;;  %v2120_v23 = vrot.slane %v1967_v46, 1 }
 0x2e0   : > { %v2321_v55 = vadd.f32 %v7327_v18, %v2289_v63  ;;  %2707 = vmatmul.mubr.bf16.gmra.mrb[160].mxu1 %v7523_v25 }
 0x2e1   : > { %v2322_v57 = vadd.f32 %v7327_v18, %v2290_v33  ;;  %v2136_v40 = vrot.slane %v1970_v7, 1  ;;  %v5081_v47 = vpop.f32.mrb[140].mxu0 }
 0x2e2   : > { %v2353_v6 = vmax.f32 %v2321_v55, 0.0  ;;  %v5082_v12 = vpop.f32.mrb[141].mxu0 }
 0x2e3   : > { %v2354_v13 = vmax.f32 %v2322_v57, 0.0  ;;  %v2153_v60 = vsel %vm2142_vm2, %v2120_v23, %v2136_v40  ;;  %v2169_v36 = vsel %vm2142_vm2, %v2136_v40, %v2120_v23  ;;  %v5083_v10 = vadd.f32 %v5082_v12, %v5081_v47  ;;  %v5084_v56 = vpop.f32.mrb[142].mxu0 }
 0x2e4   : > { %v2196_v54 = vsel %vm414_vm3, %v2169_v36, 0.0  ;;  %v2259_v52 = vadd.f32 %v7268_v24, %v2153_v60  ;;  %v5085_v27 = vpop.f32.mrb[143].mxu0 }
 0x2e5   : > { %v7561_v0 = vpack.c.bf16 %v2354_v13, %v2353_v6  ;;  %v2260_v21 = vadd.f32 %v7275_v39, %v2196_v54  ;;  %v1975_v45 = vadd.f32 %v7413_v19, %v5083_v10  ;;  %v5086_v34 = vadd.f32 %v5085_v27, %v5084_v56 }
 0x2e6   : > { %v2291_v58 = vmul.f32 %v7316_v50, %v2259_v52 }
 0x2e7   : > { %v2292_v48 = vmul.f32 %v7316_v50, %v2260_v21  ;;  %v1978_v44 = vadd.f32 %v7421_v14, %v5086_v34  ;;  %2714 = vmatprep.mubr.bf16.mxu1 %v7561_v0  ;;  %5719 = vmatprep.mubr.bf16.mxu0 %v7561_v0  ;;  %v2121_v39 = vrot.slane %v1975_v45, 1 }
 0x2e8   : > { %v2323_v24 = vadd.f32 %v7327_v18, %v2291_v58  ;;  %2715 = vmatmul.mubr.bf16.gmra.mrb[164].mxu1 %v7542_v1 }
 0x2e9   : > { %v2324_v26 = vadd.f32 %v7327_v18, %v2292_v48  ;;  %v2137_v49 = vrot.slane %v1978_v44, 1  ;;  %v5087_v19 = vpop.f32.mrb[144].mxu0 }
 0x2ea   : > { %v2355_v61 = vmax.f32 %v2323_v24, 0.0  ;;  %v5088_v46 = vpop.f32.mrb[145].mxu0 }
 0x2eb   : > { %v2356_v30 = vmax.f32 %v2324_v26, 0.0  ;;  %v2154_v63 = vsel %vm2142_vm2, %v2121_v39, %v2137_v49  ;;  %v2170_v14 = vsel %vm2142_vm2, %v2137_v49, %v2121_v39  ;;  %v5089_v33 = vadd.f32 %v5088_v46, %v5087_v19  ;;  %v5090_v7 = vpop.f32.mrb[146].mxu0 }
 0x2ec   : > { %v2198_v55 = vsel %vm414_vm3, %v2170_v14, 0.0  ;;  %v2261_v57 = vadd.f32 %v7263_v11, %v2154_v63  ;;  %v5091_v23 = vpop.f32.mrb[147].mxu0 }
 0x2ed   : > { %v7580_v40 = vpack.c.bf16 %v2356_v30, %v2355_v61  ;;  %v2262_v47 = vadd.f32 %v7272_v32, %v2198_v55  ;;  %v1983_v6 = vadd.f32 %v5089_v33, %v7442_v53  ;;  %v5092_v12 = vadd.f32 %v5091_v23, %v5090_v7 }
 0x2ee   : > { %v2293_v13 = vmul.f32 %v7316_v50, %v2261_v57 }
 0x2ef   : > { %v2294_v60 = vmul.f32 %v7316_v50, %v2262_v47  ;;  %v1986_v36 = vadd.f32 %v5092_v12, %v7453_v59  ;;  %2722 = vmatprep.mubr.bf16.mxu1 %v7580_v40  ;;  %5720 = vmatmul.mubr.bf16.gmra.mrb[176].mxu0 %v7580_v40  ;;  %v2122_v32 = vrot.slane %v1983_v6, 1 }
 0x2f0   : > { %v2325_v11 = vadd.f32 %v7327_v18, %v2293_v13  ;;  %2723 = vmatmul.mubr.bf16.gmra.mrb[168].mxu1 %v7561_v0 }
 0x2f1   : > { %v2326_v10 = vadd.f32 %v7327_v18, %v2294_v60  ;;  %v2138_v56 = vrot.slane %v1986_v36, 1  ;;  %v5093_v53 = vpop.f32.mrb[148].mxu0 }
 0x2f2   : > { %v2357_v54 = vmax.f32 %v2325_v11, 0.0  ;;  %v5094_v52 = vpop.f32.mrb[149].mxu0 }
 0x2f3   : > { %v2358_v27 = vmax.f32 %v2326_v10, 0.0  ;;  %v2155_v21 = vsel %vm2142_vm2, %v2122_v32, %v2138_v56  ;;  %v2171_v59 = vsel %vm2142_vm2, %v2138_v56, %v2122_v32  ;;  %v5095_v45 = vadd.f32 %v5094_v52, %v5093_v53  ;;  %v5096_v34 = vpop.f32.mrb[150].mxu0 }
 0x2f4   : > { %v2200_v58 = vsel %vm414_vm3, %v2171_v59, 0.0  ;;  %v2263_v48 = vadd.f32 %v7285_v28, %v2155_v21  ;;  %v5097_v44 = vpop.f32.mrb[151].mxu0 }
 0x2f5   : > { %v7599_v24 = vpack.c.bf16 %v2358_v27, %v2357_v54  ;;  %v2264_v26 = vadd.f32 %v7291_v2, %v2200_v58  ;;  %v1991_v39 = vadd.f32 %v7440_v41, %v5095_v45  ;;  %v5098_v49 = vadd.f32 %v5097_v44, %v5096_v34 }
 0x2f6   : > { %v2295_v19 = vmul.f32 %v7316_v50, %v2263_v48 }
 0x2f7   : > { %v2296_v61 = vmul.f32 %v7316_v50, %v2264_v26  ;;  %v1994_v46 = vadd.f32 %v7448_v42, %v5098_v49  ;;  %2730 = vmatprep.mubr.bf16.mxu1 %v7599_v24  ;;  %5723 = vmatprep.mubr.bf16.mxu0 %v7599_v24  ;;  %v2123_v2 = vrot.slane %v1991_v39, 1 }
 0x2f8   : > { %v2327_v28 = vadd.f32 %v7327_v18, %v2295_v19  ;;  %2731 = vmatmul.mubr.bf16.gmra.mrb[172].mxu1 %v7580_v40 }
 0x2f9   : > { %v2328_v30 = vadd.f32 %v7327_v18, %v2296_v61  ;;  %v2139_v63 = vrot.slane %v1994_v46, 1  ;;  %v5099_v41 = vpop.f32.mrb[152].mxu0 }
 0x2fa   : > { %v2359_v14 = vmax.f32 %v2327_v28, 0.0  ;;  %v5100_v33 = vpop.f32.mrb[153].mxu0 }
 0x2fb   : > { %v2360_v7 = vmax.f32 %v2328_v30, 0.0  ;;  %v2156_v55 = vsel %vm2142_vm2, %v2123_v2, %v2139_v63  ;;  %v2172_v42 = vsel %vm2142_vm2, %v2139_v63, %v2123_v2  ;;  %v5101_v57 = vadd.f32 %v5100_v33, %v5099_v41  ;;  %v5102_v23 = vpop.f32.mrb[154].mxu0 }
 0x2fc   : > { %v2202_v47 = vsel %vm414_vm3, %v2172_v42, 0.0  ;;  %v2265_v6 = vadd.f32 %v7280_v15, %v2156_v55  ;;  %v5103_v12 = vpop.f32.mrb[155].mxu0 }
 0x2fd   : > { %v7618_v13 = vpack.c.bf16 %v2360_v7, %v2359_v14  ;;  %v2266_v60 = vadd.f32 %v7288_v38, %v2202_v47  ;;  %v1999_v36 = vadd.f32 %v5101_v57, %v7469_v22  ;;  %v5104_v11 = vadd.f32 %v5103_v12, %v5102_v23 }
 0x2fe   : > { %v2297_v10 = vmul.f32 %v7316_v50, %v2265_v6 }
 0x2ff   : > { %v2298_v32 = vmul.f32 %v7316_v50, %v2266_v60  ;;  %v2002_v56 = vadd.f32 %v5104_v11, %v7480_v37  ;;  %2738 = vmatprep.mubr.bf16.mxu1 %v7618_v13  ;;  %5724 = vmatmul.mubr.bf16.gmra.mrb[180].mxu0 %v7618_v13  ;;  %v2124_v38 = vrot.slane %v1999_v36, 1  ;;  %v6069_v60 = vld [vmem:[#allocation8 + $0x180] sm:$0xff]   ;;  %v6071_v36 = vld [vmem:[#allocation8 + $0x1c8] sm:$0xff]  }
 0x300   : > { %v2329_v15 = vadd.f32 %v7327_v18, %v2297_v10  ;;  %2739 = vmatmul.mubr.bf16.gmra.mrb[176].mxu1 %v7599_v24  ;;  %v6075_v11 = vld [vmem:[#allocation8 + $0x208] sm:$0xff]  }
 0x301   : > { %v2330_v53 = vadd.f32 %v7327_v18, %v2298_v32  ;;  %v2140_v54 = vrot.slane %v2002_v56, 1  ;;  %v5105_v22 = vpop.f32.mrb[156].mxu0  ;;  %v6072_v10 = vld [vmem:[#allocation8 + $0x188] sm:$0xff]   ;;  %v6073_v32 = vld [vmem:[#allocation8 + $0x1d0] sm:$0xff]  }
 0x302   : > { %v2361_v52 = vmax.f32 %v2329_v15, 0.0  ;;  %v5106_v27 = vpop.f32.mrb[157].mxu0  ;;  %v6080_v56 = vld [vmem:[#allocation8 + $0x210] sm:$0xff]  }
 0x303   : > { %v2362_v21 = vmax.f32 %v2330_v53, 0.0  ;;  %v2157_v59 = vsel %vm2142_vm2, %v2124_v38, %v2140_v54  ;;  %v2173_v37 = vsel %vm2142_vm2, %v2140_v54, %v2124_v38  ;;  %v5107_v45 = vadd.f32 %v5106_v27, %v5105_v22  ;;  %v5108_v34 = vpop.f32.mrb[158].mxu0  ;;  %v6074_v15 = vld [vmem:[#allocation8 + $0x190] sm:$0xff]   ;;  %v6076_v53 = vld [vmem:[#allocation8 + $0x1d8] sm:$0xff]   ;;  %v6078_v54 = vld [vmem:[#allocation8 + $0x1e0] sm:$0xff]  }
 0x304   : > { %v2204_v58 = vsel %vm414_vm3, %v2173_v37, 0.0  ;;  %v2267_v48 = vadd.f32 %v7296_v8, %v2157_v59  ;;  %v5109_v44 = vpop.f32.mrb[159].mxu0  ;;  %v6085_v38 = vld [vmem:[#allocation8 + $0x218] sm:$0xff]   ;;  %v6088_v22 = vld [vmem:[#allocation8 + $0x220] sm:$0xff]   ;;  %v6081_v27 = vld [vmem:[#allocation8 + $0x1e8] sm:$0xff]  }
 0x305   : > { %v7637_v26 = vpack.c.bf16 %v2362_v21, %v2361_v52  ;;  %v2268_v39 = vadd.f32 %v7304_v31, %v2204_v58  ;;  %v2007_v49 = vadd.f32 %v7467_v5, %v5107_v45  ;;  %v5110_v19 = vadd.f32 %v5109_v44, %v5108_v34  ;;  %v6079_v52 = vld [vmem:[#allocation8 + $0x1a0] sm:$0xff]   ;;  %v6089_v21 = vld [vmem:[#allocation8 + $0x228] sm:$0xff]   ;;  %v6083_v37 = vld [vmem:[#allocation8 + $0x1f0] sm:$0xff]  }
 0x306   : > { %v2299_v61 = vmul.f32 %v7316_v50, %v2267_v48  ;;  %v6082_v59 = vld [vmem:[#allocation8 + $0x1a8] sm:$0xff]   ;;  %v6090_v45 = vld [vmem:[#allocation8 + $0x230] sm:$0xff]   ;;  %v6086_v58 = vld [vmem:[#allocation8 + $0x1f8] sm:$0xff]  }
 0x307   : > { %v2300_v46 = vmul.f32 %v7316_v50, %v2268_v39  ;;  %v2010_v28 = vadd.f32 %v7475_v9, %v5110_v19  ;;  %2746 = vmatprep.mubr.bf16.mxu1 %v7637_v26  ;;  %5727 = vmatprep.mubr.bf16.mxu0 %v7637_v26  ;;  %v2125_v31 = vrot.slane %v2007_v49, 1  ;;  %v6084_v34 = vld [vmem:[#allocation8 + $0x1b0] sm:$0xff]   ;;  %v6091_v48 = vld [vmem:[#allocation8 + $0x238] sm:$0xff]  }
 0x308   : > { %v2331_v8 = vadd.f32 %v7327_v18, %v2299_v61  ;;  %2747 = vmatmul.mubr.bf16.gmra.mrb[180].mxu1 %v7618_v13  ;;  %v6087_v44 = vld [vmem:[#allocation8 + $0x1b8] sm:$0xff]  }
 0x309   : > { %v2332_v30 = vadd.f32 %v7327_v18, %v2300_v46  ;;  %v2141_v2 = vrot.slane %v2010_v28, 1 }
 0x30a   : > { %v2363_v5 = vmax.f32 %v2331_v8, 0.0 }
 0x30b   : > { %v2364_v63 = vmax.f32 %v2332_v30, 0.0  ;;  %v2158_v41 = vsel %vm2142_vm2, %v2125_v31, %v2141_v2  ;;  %v2174_v9 = vsel %vm2142_vm2, %v2141_v2, %v2125_v31 }
 0x30c   : > { %v2206_v14 = vsel %vm414_vm3, %v2174_v9, 0.0  ;;  %v2269_v33 = vadd.f32 %v7301_v51, %v2158_v41 }
 0x30d   : > { %v7656_v7 = vpack.c.bf16 %v2364_v63, %v2363_v5  ;;  %v2270_v55 = vadd.f32 %v7307_v20, %v2206_v14  ;;  %v8516_v20 = vmov 0  }
 0x30e   : > { %v2301_v42 = vmul.f32 %v7316_v50, %v2269_v33 }
 0x30f   : > { %v2302_v57 = vmul.f32 %v7316_v50, %v2270_v55  ;;  %2754 = vmatprep.mubr.bf16.mxu1 %v7656_v7  ;;  %5728 = vmatmul.mubr.bf16.gmra.mrb[184].mxu0 %v7656_v7  ;;  %v8517_v50 = vld [vmem:[#allocation23_spill] sm:$0xff] }
 0x310   : > { %v2333_v23 = vadd.f32 %v7327_v18, %v2301_v42  ;;  %2755 = vmatmul.mubr.bf16.gmra.mrb[184].mxu1 %v7637_v26 }
 0x311   : > { %v2334_v47 = vadd.f32 %v7327_v18, %v2302_v57  ;;  %v8518_v18 = vld [vmem:[#allocation22_spill] sm:$0xff] }
 0x312   : > { %v2365_v6 = vmax.f32 %v2333_v23, 0.0 }
 0x313   : > { %v2366_v51 = vmax.f32 %v2334_v47, 0.0 }
 0x315   : > { %v7666_v12 = vpack.c.bf16 %v2366_v51, %v2365_v6 }
 0x317   : > { %2762 = vmatprep.mubr.bf16.mxu1 %v7666_v12  ;;  %5731 = vmatprep.mubr.bf16.mxu0 %v7666_v12 }
 0x318   : > { %2763 = vmatmul.mubr.bf16.gmra.mrb[188].mxu1 %v7656_v7  ;;  %5732 = vmatmul.mubr.bf16.gmra.mrb[188].mxu0 %v8516_v20 }
 0x319   : > { %3157 = vmatprep.mubr.bf16.mxu0 %v7349_v62  ;;  %5751 = vmatprep.mubr.bf16.mxu1 %v8517_v50 }
 0x320   : > { %3158 = vmatmul.mubr.bf16.vlgmr.msra.gmra.mrb[192].mxu0 %v8516_v20  ;;  %5752 = vmatmul.mubr.bf16.vlgmr.msra.gmra.mrb[192].mxu1 %v8518_v18 }
 0x321   : > { %3165 = vmatprep.mubr.bf16.mxu0 %v8517_v50  ;;  %5755 = vmatprep.mubr.bf16.mxu1 %v7428_v16 }
 0x322   : > { %5408 = vmatpush3.bf16.msra.mxu1 %v6069_v60  ;;  %5784 = vmatpush3.bf16.msra.mxu0 %v7494_v3  ;;  %v6077_v3 = vld [vmem:[#allocation8 + $0x198] sm:$0xff]  }
 0x323   : > { %5409 = vmatprep.subr.bf16.mxu1 %v6071_v36  ;;  %5785 = vmatprep.subr.bf16.mxu0 %v6075_v11 }
 0x326   : > { %5410 = vmatpush3.bf16.msra.mxu1 %v6072_v10  ;;  %5786 = vmatpush3.bf16.msra.mxu0 %v6075_v11 }
 0x327   : > { %5411 = vmatprep.subr.bf16.mxu1 %v6073_v32  ;;  %5787 = vmatprep.subr.bf16.mxu0 %v6080_v56 }
 0x328   : > { %3166 = vmatmul.mubr.bf16.gmra.mrb[196].mxu0 %v7349_v62  ;;  %5756 = vmatmul.mubr.bf16.gmra.mrb[196].mxu1 %v7455_v35 }
 0x329   : > { %3173 = vmatprep.mubr.bf16.mxu0 %v8518_v18  ;;  %5759 = vmatprep.mubr.bf16.mxu1 %v7482_v4 }
 0x32a   : > { %5412 = vmatpush3.bf16.msra.mxu1 %v6074_v15  ;;  %5788 = vmatpush3.bf16.msra.mxu0 %v6080_v56 }
 0x32b   : > { %5413 = vmatprep.subr.bf16.mxu1 %v6076_v53  ;;  %5789 = vmatprep.subr.bf16.mxu0 %v6085_v38 }
 0x32e   : > { %5414 = vmatpush3.bf16.msra.mxu1 %v6077_v3  ;;  %5790 = vmatpush3.bf16.msra.mxu0 %v6085_v38 }
 0x32f   : > { %5415 = vmatprep.subr.bf16.mxu1 %v6078_v54  ;;  %5791 = vmatprep.subr.bf16.mxu0 %v6088_v22 }
 0x330   : > { %3174 = vmatmul.mubr.bf16.gmra.mrb[200].mxu0 %v8517_v50  ;;  %5760 = vmatmul.mubr.bf16.gmra.mrb[200].mxu1 %v7503_v43 }
 0x331   : > { %3181 = vmatprep.mubr.bf16.mxu0 %v7428_v16  ;;  %5763 = vmatprep.mubr.bf16.mxu1 %v7523_v25 }
 0x332   : > { %5416 = vmatpush3.bf16.msra.mxu1 %v6079_v52  ;;  %5792 = vmatpush3.bf16.msra.mxu0 %v6088_v22 }
 0x333   : > { %5417 = vmatprep.subr.bf16.mxu1 %v6081_v27  ;;  %5793 = vmatprep.subr.bf16.mxu0 %v6089_v21 }
 0x336   : > { %5418 = vmatpush3.bf16.msra.mxu1 %v6082_v59  ;;  %5794 = vmatpush3.bf16.msra.mxu0 %v6089_v21 }
 0x337   : > { %5419 = vmatprep.subr.bf16.mxu1 %v6083_v37  ;;  %5795 = vmatprep.subr.bf16.mxu0 %v6090_v45 }
 0x338   : > { %3182 = vmatmul.mubr.bf16.gmra.mrb[204].mxu0 %v8518_v18  ;;  %5764 = vmatmul.mubr.bf16.gmra.mrb[204].mxu1 %v7542_v1 }
 0x339   : > { %3189 = vmatprep.mubr.bf16.mxu0 %v7455_v35  ;;  %5767 = vmatprep.mubr.bf16.mxu1 %v7561_v0 }
 0x33a   : > { %5420 = vmatpush3.bf16.msra.mxu1 %v6084_v34  ;;  %5796 = vmatpush3.bf16.msra.mxu0 %v6090_v45 }
 0x33b   : > { %5421 = vmatprep.subr.bf16.mxu1 %v6086_v58  ;;  %5797 = vmatprep.subr.bf16.mxu0 %v6091_v48 }
 0x33e   : > { %5422 = vmatpush3.bf16.msra.mxu1 %v6087_v44  ;;  %5798 = vmatpush3.bf16.msra.mxu0 %v6091_v48 }
 0x340   : > { %3190 = vmatmul.mubr.bf16.gmra.mrb[208].mxu0 %v7428_v16  ;;  %5768 = vmatmul.mubr.bf16.gmra.mrb[208].mxu1 %v7580_v40 }
 0x341   : > { %3197 = vmatprep.mubr.bf16.mxu0 %v7482_v4  ;;  %5771 = vmatprep.mubr.bf16.mxu1 %v7599_v24 }
 0x348   : > { %3198 = vmatmul.mubr.bf16.gmra.mrb[212].mxu0 %v7455_v35  ;;  %5772 = vmatmul.mubr.bf16.gmra.mrb[212].mxu1 %v7618_v13 }
 0x349   : > { %3205 = vmatprep.mubr.bf16.mxu0 %v7503_v43  ;;  %5775 = vmatprep.mubr.bf16.mxu1 %v7637_v26 }
 0x350   : > { %3206 = vmatmul.mubr.bf16.gmra.mrb[216].mxu0 %v7482_v4  ;;  %5776 = vmatmul.mubr.bf16.gmra.mrb[216].mxu1 %v7656_v7 }
 0x351   : > { %3213 = vmatprep.mubr.bf16.mxu0 %v7523_v25  ;;  %5779 = vmatprep.mubr.bf16.mxu1 %v7666_v12 }
 0x358   : > { %3214 = vmatmul.mubr.bf16.gmra.mrb[220].mxu0 %v7503_v43  ;;  %5780 = vmatmul.mubr.bf16.gmra.mrb[220].mxu1 %v8516_v20 }
 0x359   : > { %3221 = vmatprep.mubr.bf16.mxu0 %v7542_v1  ;;  %3672 = vmatprep.mubr.bf16.mxu1 %v7349_v62 }
 0x360   : > { %3222 = vmatmul.mubr.bf16.gmra.mrb[224].mxu0 %v7523_v25  ;;  %3673 = vmatmul.mubr.bf16.vlgmr.msra.gmra.mrb[224].mxu1 %v8516_v20 }
 0x361   : > { %3229 = vmatprep.mubr.bf16.mxu0 %v7561_v0  ;;  %3680 = vmatprep.mubr.bf16.mxu1 %v8517_v50 }
 0x368   : > { %3230 = vmatmul.mubr.bf16.gmra.mrb[228].mxu0 %v7542_v1  ;;  %3681 = vmatmul.mubr.bf16.gmra.mrb[228].mxu1 %v7349_v62 }
 0x369   : > { %3237 = vmatprep.mubr.bf16.mxu0 %v7580_v40  ;;  %3688 = vmatprep.mubr.bf16.mxu1 %v8518_v18 }
 0x370   : > { %3238 = vmatmul.mubr.bf16.gmra.mrb[232].mxu0 %v7561_v0  ;;  %3689 = vmatmul.mubr.bf16.gmra.mrb[232].mxu1 %v8517_v50 }
 0x371   : > { %3245 = vmatprep.mubr.bf16.mxu0 %v7599_v24  ;;  %3696 = vmatprep.mubr.bf16.mxu1 %v7428_v16 }
 0x373   : > { %v5151_v39 = vpop.f32.mrb[128].mxu1 }
 0x374   : > { %v5152_v49 = vpop.f32.mrb[129].mxu1 }
 0x375   : > { %v5153_v19 = vadd.f32 %v5152_v49, %v5151_v39  ;;  %v5154_v61 = vpop.f32.mrb[130].mxu1 }
 0x376   : > { %v5155_v46 = vpop.f32.mrb[131].mxu1 }
 0x377   : > { %v5156_v28 = vadd.f32 %v5155_v46, %v5154_v61 }
 0x378   : > { %3246 = vmatmul.mubr.bf16.gmra.mrb[236].mxu0 %v7580_v40  ;;  %3697 = vmatmul.mubr.bf16.gmra.mrb[236].mxu1 %v8518_v18 }
 0x379   : > { %3253 = vmatprep.mubr.bf16.mxu0 %v7618_v13  ;;  %3704 = vmatprep.mubr.bf16.mxu1 %v7455_v35 }
 0x37b   : > { %v5157_v62 = vpop.f32.mrb[132].mxu1 }
 0x37c   : > { %v5158_v8 = vpop.f32.mrb[133].mxu1 }
 0x37d   : > { %v5159_v30 = vadd.f32 %v5158_v8, %v5157_v62  ;;  %v5160_v31 = vpop.f32.mrb[134].mxu1 }
 0x37e   : > { %v5161_v2 = vpop.f32.mrb[135].mxu1 }
 0x37f   : > { %v5162_v5 = vadd.f32 %v5161_v2, %v5160_v31 }
 0x380   : > { %3254 = vmatmul.mubr.bf16.gmra.mrb[240].mxu0 %v7599_v24  ;;  %3705 = vmatmul.mubr.bf16.gmra.mrb[240].mxu1 %v7428_v16 }
 0x381   : > { %3261 = vmatprep.mubr.bf16.mxu0 %v7637_v26  ;;  %3712 = vmatprep.mubr.bf16.mxu1 %v7482_v4 }
 0x382   : > { %v5705_v63 = vpop.f32.mrb[160].mxu0 }
 0x383   : > { %v2814_v41 = vadd.f32 %v5705_v63, %v5159_v30  ;;  %v5163_v9 = vpop.f32.mrb[136].mxu1  ;;  %v2805_v14 = vpop.f32.mrb[161].mxu0 }
 0x384   : > { %v2806_v33 = vadd.f32 %v5153_v19, %v2805_v14  ;;  %v5164_v55 = vpop.f32.mrb[137].mxu1  ;;  %v5706_v42 = vpop.f32.mrb[162].mxu0 }
 0x385   : > { %v5165_v57 = vadd.f32 %v5164_v55, %v5163_v9  ;;  %v2817_v23 = vadd.f32 %v5706_v42, %v5162_v5  ;;  %v5166_v47 = vpop.f32.mrb[138].mxu1  ;;  %v2808_v6 = vpop.f32.mrb[163].mxu0  ;;  %v3963_v36 = vrot.slane %v2814_v41, 7 }
 0x386   : > { %v2809_v51 = vadd.f32 %v5156_v28, %v2808_v6  ;;  %v5167_v60 = vpop.f32.mrb[139].mxu1  ;;  %v3962_v32 = vrot.slane %v2806_v33, 7 }
 0x387   : > { %v3979_v11 = vrot.slane %v2817_v23, 7  ;;  %v5168_v10 = vadd.f32 %v5167_v60, %v5166_v47 }
 0x388   : > { %v3978_v56 = vrot.slane %v2809_v51, 7  ;;  %3262 = vmatmul.mubr.bf16.gmra.mrb[244].mxu0 %v7618_v13  ;;  %3713 = vmatmul.mubr.bf16.gmra.mrb[244].mxu1 %v7455_v35 }
 0x389   : > { %v7731_v15 = vsel %vm2045_vm0, %v3979_v11, %v3963_v36  ;;  %3269 = vmatprep.mubr.bf16.mxu0 %v7656_v7  ;;  %3720 = vmatprep.mubr.bf16.mxu1 %v7503_v43  ;;  %v7737_v53 = vsel %vm2045_vm0, %v3963_v36, %v3979_v11 }
 0x38a   : > { %v7741_v38 = vsel %vm2045_vm0, %v3978_v56, %v3962_v32  ;;  %v7745_v3 = vsel %vm2045_vm0, %v3962_v32, %v3978_v56 }
 0x38b   : > { %v5169_v54 = vpop.f32.mrb[140].mxu1 }
 0x38c   : > { %v5170_v22 = vpop.f32.mrb[141].mxu1 }
 0x38d   : > { %v5171_v52 = vadd.f32 %v5170_v22, %v5169_v54  ;;  %v5172_v27 = vpop.f32.mrb[142].mxu1 }
 0x38e   : > { %v5173_v21 = vpop.f32.mrb[143].mxu1 }
 0x38f   : > { %v5174_v59 = vadd.f32 %v5173_v21, %v5172_v27 }
 0x390   : > { %3270 = vmatmul.mubr.bf16.gmra.mrb[248].mxu0 %v7637_v26  ;;  %3721 = vmatmul.mubr.bf16.gmra.mrb[248].mxu1 %v7482_v4 }
 0x391   : > { %3277 = vmatprep.mubr.bf16.mxu0 %v7666_v12  ;;  %3728 = vmatprep.mubr.bf16.mxu1 %v7523_v25 }
 0x392   : > { %v5709_v37 = vpop.f32.mrb[164].mxu0 }
 0x393   : > { %v2830_v45 = vadd.f32 %v5709_v37, %v5171_v52  ;;  %v5175_v34 = vpop.f32.mrb[144].mxu1  ;;  %v2821_v58 = vpop.f32.mrb[165].mxu0 }
 0x394   : > { %v2822_v48 = vadd.f32 %v5165_v57, %v2821_v58  ;;  %v5176_v44 = vpop.f32.mrb[145].mxu1  ;;  %v5710_v39 = vpop.f32.mrb[166].mxu0 }
 0x395   : > { %v5177_v49 = vadd.f32 %v5176_v44, %v5175_v34  ;;  %v2833_v19 = vadd.f32 %v5710_v39, %v5174_v59  ;;  %v5178_v61 = vpop.f32.mrb[146].mxu1  ;;  %v2824_v46 = vpop.f32.mrb[167].mxu0  ;;  %v3965_v8 = vrot.slane %v2830_v45, 7 }
 0x396   : > { %v2825_v28 = vadd.f32 %v5168_v10, %v2824_v46  ;;  %v5179_v62 = vpop.f32.mrb[147].mxu1  ;;  %v3964_v2 = vrot.slane %v2822_v48, 7 }
 0x397   : > { %v3981_v30 = vrot.slane %v2833_v19, 7  ;;  %v5180_v31 = vadd.f32 %v5179_v62, %v5178_v61 }
 0x398   : > { %v3980_v5 = vrot.slane %v2825_v28, 7  ;;  %3278 = vmatmul.mubr.bf16.gmra.mrb[252].mxu0 %v7656_v7  ;;  %3729 = vmatmul.mubr.bf16.gmra.mrb[252].mxu1 %v7503_v43 }
 0x399   : > { %v7755_v63 = vsel %vm2045_vm0, %v3981_v30, %v3965_v8  ;;  %3736 = vmatprep.mubr.bf16.mxu1 %v7542_v1  ;;  %5799 = vmatprep.mubr.bf16.mxu0 %v8517_v50  ;;  %v7761_v41 = vsel %vm2045_vm0, %v3965_v8, %v3981_v30 }
 0x39a   : > { %v7765_v9 = vsel %vm2045_vm0, %v3980_v5, %v3964_v2  ;;  %v7769_v14 = vsel %vm2045_vm0, %v3964_v2, %v3980_v5 }
 0x39b   : > { %v5181_v33 = vpop.f32.mrb[148].mxu1 }
 0x39c   : > { %v5182_v55 = vpop.f32.mrb[149].mxu1 }
 0x39d   : > { %v5183_v42 = vadd.f32 %v5182_v55, %v5181_v33  ;;  %v5184_v57 = vpop.f32.mrb[150].mxu1 }
 0x39e   : > { %v5185_v23 = vpop.f32.mrb[151].mxu1 }
 0x39f   : > { %v5186_v47 = vadd.f32 %v5185_v23, %v5184_v57 }
 0x3a0   : > { %3737 = vmatmul.mubr.bf16.gmra.mrb[0].mxu1 %v7523_v25  ;;  %5800 = vmatmul.mubr.bf16.vlgmr.msra.gmra.mrb[0].mxu0 %v8518_v18 }
 0x3a1   : > { %3744 = vmatprep.mubr.bf16.mxu1 %v7561_v0  ;;  %5803 = vmatprep.mubr.bf16.mxu0 %v7428_v16 }
 0x3a2   : > { %v5713_v50 = vpop.f32.mrb[168].mxu0 }
 0x3a3   : > { %v2846_v6 = vadd.f32 %v5713_v50, %v5183_v42  ;;  %v5187_v51 = vpop.f32.mrb[152].mxu1  ;;  %v2837_v60 = vpop.f32.mrb[169].mxu0 }
 0x3a4   : > { %v2838_v36 = vadd.f32 %v5177_v49, %v2837_v60  ;;  %v5188_v11 = vpop.f32.mrb[153].mxu1  ;;  %v5714_v10 = vpop.f32.mrb[170].mxu0 }
 0x3a5   : > { %v5189_v32 = vadd.f32 %v5188_v11, %v5187_v51  ;;  %v2849_v56 = vadd.f32 %v5714_v10, %v5186_v47  ;;  %v5190_v54 = vpop.f32.mrb[154].mxu1  ;;  %v2840_v22 = vpop.f32.mrb[171].mxu0  ;;  %v3967_v21 = vrot.slane %v2846_v6, 7 }
 0x3a6   : > { %v2841_v52 = vadd.f32 %v5180_v31, %v2840_v22  ;;  %v5191_v27 = vpop.f32.mrb[155].mxu1  ;;  %v3966_v37 = vrot.slane %v2838_v36, 7 }
 0x3a7   : > { %v3983_v59 = vrot.slane %v2849_v56, 7  ;;  %v5192_v18 = vadd.f32 %v5191_v27, %v5190_v54 }
 0x3a8   : > { %v3982_v45 = vrot.slane %v2841_v52, 7  ;;  %3745 = vmatmul.mubr.bf16.gmra.mrb[4].mxu1 %v7542_v1  ;;  %5804 = vmatmul.mubr.bf16.gmra.mrb[4].mxu0 %v7455_v35 }
 0x3a9   : > { %v7779_v16 = vsel %vm2045_vm0, %v3983_v59, %v3967_v21  ;;  %3752 = vmatprep.mubr.bf16.mxu1 %v7580_v40  ;;  %5807 = vmatprep.mubr.bf16.mxu0 %v7482_v4  ;;  %v7785_v34 = vsel %vm2045_vm0, %v3967_v21, %v3983_v59 }
 0x3aa   : > { %v7789_v58 = vsel %vm2045_vm0, %v3982_v45, %v3966_v37  ;;  %v7793_v48 = vsel %vm2045_vm0, %v3966_v37, %v3982_v45 }
 0x3ab   : > { %v5193_v35 = vpop.f32.mrb[156].mxu1 }
 0x3ac   : > { %v5194_v44 = vpop.f32.mrb[157].mxu1 }
 0x3ad   : > { %v5195_v39 = vadd.f32 %v5194_v44, %v5193_v35  ;;  %v5196_v49 = vpop.f32.mrb[158].mxu1 }
 0x3ae   : > { %v5197_v19 = vpop.f32.mrb[159].mxu1 }
 0x3af   : > { %v5198_v61 = vadd.f32 %v5197_v19, %v5196_v49 }
 0x3b0   : > { %3753 = vmatmul.mubr.bf16.gmra.mrb[8].mxu1 %v7561_v0  ;;  %5808 = vmatmul.mubr.bf16.gmra.mrb[8].mxu0 %v7503_v43 }
 0x3b1   : > { %3760 = vmatprep.mubr.bf16.mxu1 %v7599_v24  ;;  %5811 = vmatprep.mubr.bf16.mxu0 %v7523_v25 }
 0x3b2   : > { %v5717_v4 = vpop.f32.mrb[172].mxu0 }
 0x3b3   : > { %v2862_v46 = vadd.f32 %v5717_v4, %v5195_v39  ;;  %v5199_v28 = vpop.f32.mrb[160].mxu1  ;;  %v2853_v62 = vpop.f32.mrb[173].mxu0 }
 0x3b4   : > { %v2854_v8 = vadd.f32 %v5189_v32, %v2853_v62  ;;  %v5200_v30 = vpop.f32.mrb[161].mxu1  ;;  %v5718_v31 = vpop.f32.mrb[174].mxu0 }
 0x3b5   : > { %v5201_v2 = vadd.f32 %v5200_v30, %v5199_v28  ;;  %v2865_v5 = vadd.f32 %v5718_v31, %v5198_v61  ;;  %v5202_v33 = vpop.f32.mrb[162].mxu1  ;;  %v2856_v55 = vpop.f32.mrb[175].mxu0  ;;  %v3969_v23 = vrot.slane %v2862_v46, 7 }
 0x3b6   : > { %v2857_v42 = vadd.f32 %v5192_v18, %v2856_v55  ;;  %v5203_v57 = vpop.f32.mrb[163].mxu1  ;;  %v3968_v50 = vrot.slane %v2854_v8, 7 }
 0x3b7   : > { %v3985_v47 = vrot.slane %v2865_v5, 7  ;;  %v5204_v43 = vadd.f32 %v5203_v57, %v5202_v33 }
 0x3b8   : > { %v3984_v6 = vrot.slane %v2857_v42, 7  ;;  %3761 = vmatmul.mubr.bf16.gmra.mrb[12].mxu1 %v7580_v40  ;;  %5812 = vmatmul.mubr.bf16.gmra.mrb[12].mxu0 %v7542_v1 }
 0x3b9   : > { %v7803_v25 = vsel %vm2045_vm0, %v3985_v47, %v3969_v23  ;;  %3768 = vmatprep.mubr.bf16.mxu1 %v7618_v13  ;;  %5815 = vmatprep.mubr.bf16.mxu0 %v7561_v0  ;;  %v7809_v51 = vsel %vm2045_vm0, %v3969_v23, %v3985_v47 }
 0x3ba   : > { %v7813_v60 = vsel %vm2045_vm0, %v3984_v6, %v3968_v50  ;;  %v7817_v36 = vsel %vm2045_vm0, %v3968_v50, %v3984_v6 }
 0x3bb   : > { %v5205_v1 = vpop.f32.mrb[164].mxu1 }
 0x3bc   : > { %v5206_v11 = vpop.f32.mrb[165].mxu1 }
 0x3bd   : > { %v5207_v10 = vadd.f32 %v5206_v11, %v5205_v1  ;;  %v5208_v32 = vpop.f32.mrb[166].mxu1 }
 0x3be   : > { %v5209_v56 = vpop.f32.mrb[167].mxu1 }
 0x3bf   : > { %v5210_v54 = vadd.f32 %v5209_v56, %v5208_v32 }
 0x3c0   : > { %3769 = vmatmul.mubr.bf16.gmra.mrb[16].mxu1 %v7599_v24  ;;  %5816 = vmatmul.mubr.bf16.gmra.mrb[16].mxu0 %v7580_v40 }
 0x3c1   : > { %3776 = vmatprep.mubr.bf16.mxu1 %v7637_v26  ;;  %5819 = vmatprep.mubr.bf16.mxu0 %v7599_v24 }
 0x3c2   : > { %v5721_v0 = vpop.f32.mrb[176].mxu0 }
 0x3c3   : > { %v2878_v22 = vadd.f32 %v5721_v0, %v5207_v10  ;;  %v5211_v52 = vpop.f32.mrb[168].mxu1  ;;  %v2869_v27 = vpop.f32.mrb[177].mxu0 }
 0x3c4   : > { %v2870_v21 = vadd.f32 %v5201_v2, %v2869_v27  ;;  %v5212_v59 = vpop.f32.mrb[169].mxu1  ;;  %v5722_v18 = vpop.f32.mrb[178].mxu0 }
 0x3c5   : > { %v5213_v37 = vadd.f32 %v5212_v59, %v5211_v52  ;;  %v2881_v45 = vadd.f32 %v5722_v18, %v5210_v54  ;;  %v5214_v35 = vpop.f32.mrb[170].mxu1  ;;  %v2872_v44 = vpop.f32.mrb[179].mxu0  ;;  %v3971_v19 = vrot.slane %v2878_v22, 7 }
 0x3c6   : > { %v2873_v39 = vadd.f32 %v5204_v43, %v2872_v44  ;;  %v5215_v49 = vpop.f32.mrb[171].mxu1  ;;  %v3970_v4 = vrot.slane %v2870_v21, 7 }
 0x3c7   : > { %v3987_v61 = vrot.slane %v2881_v45, 7  ;;  %v5216_v40 = vadd.f32 %v5215_v49, %v5214_v35 }
 0x3c8   : > { %v3986_v46 = vrot.slane %v2873_v39, 7  ;;  %3777 = vmatmul.mubr.bf16.gmra.mrb[20].mxu1 %v7618_v13  ;;  %5820 = vmatmul.mubr.bf16.gmra.mrb[20].mxu0 %v7618_v13 }
 0x3c9   : > { %v7827_v24 = vsel %vm2045_vm0, %v3987_v61, %v3971_v19  ;;  %3784 = vmatprep.mubr.bf16.mxu1 %v7656_v7  ;;  %5823 = vmatprep.mubr.bf16.mxu0 %v7637_v26  ;;  %v7833_v28 = vsel %vm2045_vm0, %v3971_v19, %v3987_v61 }
 0x3ca   : > { %v7837_v62 = vsel %vm2045_vm0, %v3986_v46, %v3970_v4  ;;  %v7841_v8 = vsel %vm2045_vm0, %v3970_v4, %v3986_v46 }
 0x3cb   : > { %v5217_v13 = vpop.f32.mrb[172].mxu1 }
 0x3cc   : > { %v5218_v30 = vpop.f32.mrb[173].mxu1 }
 0x3cd   : > { %v5219_v31 = vadd.f32 %v5218_v30, %v5217_v13  ;;  %v5220_v2 = vpop.f32.mrb[174].mxu1 }
 0x3ce   : > { %v5221_v5 = vpop.f32.mrb[175].mxu1 }
 0x3cf   : > { %v5222_v33 = vadd.f32 %v5221_v5, %v5220_v2 }
 0x3d0   : > { %3785 = vmatmul.mubr.bf16.gmra.mrb[24].mxu1 %v7637_v26  ;;  %5824 = vmatmul.mubr.bf16.gmra.mrb[24].mxu0 %v7656_v7 }
 0x3d1   : > { %3792 = vmatprep.mubr.bf16.mxu1 %v7666_v12  ;;  %5827 = vmatprep.mubr.bf16.mxu0 %v7666_v12 }
 0x3d2   : > { %v5725_v55 = vpop.f32.mrb[180].mxu0 }
 0x3d3   : > { %v2894_v42 = vadd.f32 %v5725_v55, %v5219_v31  ;;  %v5223_v57 = vpop.f32.mrb[176].mxu1  ;;  %v2885_v23 = vpop.f32.mrb[181].mxu0 }
 0x3d4   : > { %v2886_v47 = vadd.f32 %v5213_v37, %v2885_v23  ;;  %v5224_v43 = vpop.f32.mrb[177].mxu1  ;;  %v5726_v50 = vpop.f32.mrb[182].mxu0 }
 0x3d5   : > { %v5225_v6 = vadd.f32 %v5224_v43, %v5223_v57  ;;  %v2897_v1 = vadd.f32 %v5726_v50, %v5222_v33  ;;  %v5226_v11 = vpop.f32.mrb[178].mxu1  ;;  %v2888_v10 = vpop.f32.mrb[183].mxu0  ;;  %v3973_v26 = vrot.slane %v2894_v42, 7 }
 0x3d6   : > { %v2889_v32 = vadd.f32 %v5216_v40, %v2888_v10  ;;  %v5227_v56 = vpop.f32.mrb[179].mxu1  ;;  %v3972_v22 = vrot.slane %v2886_v47, 7 }
 0x3d7   : > { %v3989_v54 = vrot.slane %v2897_v1, 7  ;;  %v5228_v0 = vadd.f32 %v5227_v56, %v5226_v11 }
 0x3d8   : > { %v3988_v52 = vrot.slane %v2889_v32, 7  ;;  %3793 = vmatmul.mubr.bf16.gmra.mrb[28].mxu1 %v7656_v7  ;;  %5828 = vmatmul.mubr.bf16.gmra.mrb[28].mxu0 %v8516_v20 }
 0x3d9   : > { %v7851_v12 = vsel %vm2045_vm0, %v3989_v54, %v3973_v26  ;;  %v7855_v27 = vsel %vm2045_vm0, %v3973_v26, %v3989_v54 }
 0x3da   : > { %v7859_v21 = vsel %vm2045_vm0, %v3988_v52, %v3972_v22  ;;  %v7863_v59 = vsel %vm2045_vm0, %v3972_v22, %v3988_v52 }
 0x3db   : > { %v5229_v18 = vpop.f32.mrb[180].mxu1 }
 0x3dc   : > { %v5230_v7 = vpop.f32.mrb[181].mxu1 }
 0x3dd   : > { %v5231_v37 = vadd.f32 %v5230_v7, %v5229_v18  ;;  %v5232_v20 = vpop.f32.mrb[182].mxu1 }
 0x3de   : > { %v5233_v45 = vpop.f32.mrb[183].mxu1 }
 0x3df   : > { %v5234_v35 = vadd.f32 %v5233_v45, %v5232_v20 }
 0x3e2   : > { %v5729_v44 = vpop.f32.mrb[184].mxu0 }
 0x3e3   : > { %v2910_v39 = vadd.f32 %v5729_v44, %v5231_v37  ;;  %v5235_v49 = vpop.f32.mrb[184].mxu1  ;;  %v2901_v19 = vpop.f32.mrb[185].mxu0 }
 0x3e4   : > { %v2902_v61 = vadd.f32 %v5225_v6, %v2901_v19  ;;  %v5236_v40 = vpop.f32.mrb[185].mxu1  ;;  %v5730_v4 = vpop.f32.mrb[186].mxu0 }
 0x3e5   : > { %v5237_v46 = vadd.f32 %v5236_v40, %v5235_v49  ;;  %v2913_v13 = vadd.f32 %v5730_v4, %v5234_v35  ;;  %v5238_v30 = vpop.f32.mrb[186].mxu1  ;;  %v2904_v31 = vpop.f32.mrb[187].mxu0  ;;  %v3975_v33 = vrot.slane %v2910_v39, 7 }
 0x3e6   : > { %v2905_v2 = vadd.f32 %v5228_v0, %v2904_v31  ;;  %v5239_v5 = vpop.f32.mrb[187].mxu1  ;;  %v3974_v57 = vrot.slane %v2902_v61, 7 }
 0x3e7   : > { %v3991_v55 = vrot.slane %v2913_v13, 7  ;;  %v5240_v42 = vadd.f32 %v5239_v5, %v5238_v30 }
 0x3e8   : > { %v3990_v23 = vrot.slane %v2905_v2, 7 }
 0x3e9   : > { %v7867_v47 = vsel %vm2045_vm0, %v3991_v55, %v3975_v33  ;;  %v7871_v43 = vsel %vm2045_vm0, %v3975_v33, %v3991_v55 }
 0x3ea   : > { %v7875_v50 = vsel %vm2045_vm0, %v3990_v23, %v3974_v57  ;;  %v7879_v6 = vsel %vm2045_vm0, %v3974_v57, %v3990_v23  ;;  %v4026_v23 = vsel %vm411_vm1, %v7741_v38, 0.0  ;;  %v4028_v38 = vsel %vm411_vm1, %v7731_v15, 0.0 }
 0x3eb   : > { %v5241_v1 = vpop.f32.mrb[188].mxu1  ;;  %v5733_v11 = vpop.f32.mrb[188].mxu0  ;;  %v4030_v15 = vsel %vm411_vm1, %v7765_v9, 0.0  ;;  %v4032_v9 = vsel %vm411_vm1, %v7755_v63, 0.0 }
 0x3ec   : > { %v5242_v10 = vpop.f32.mrb[189].mxu1  ;;  %v2917_v32 = vpop.f32.mrb[189].mxu0 }
 0x3ed   : > { %v5243_v56 = vadd.f32 %v5242_v10, %v5241_v1  ;;  %v2918_v26 = vadd.f32 %v5237_v46, %v2917_v32  ;;  %v5244_v54 = vpop.f32.mrb[190].mxu1  ;;  %v5734_v0 = vpop.f32.mrb[190].mxu0 }
 0x3ee   : > { %v5245_v22 = vpop.f32.mrb[191].mxu1  ;;  %v2920_v52 = vpop.f32.mrb[191].mxu0 }
 0x3ef   : > { %v2926_v18 = vadd.f32 %v5733_v11, %v5243_v56  ;;  %v5246_v7 = vadd.f32 %v5245_v22, %v5244_v54  ;;  %v2921_v37 = vadd.f32 %v5240_v42, %v2920_v52  ;;  %v3976_v20 = vrot.slane %v2918_v26, 7 }
 0x3f1   : > { %v2929_v45 = vadd.f32 %v5734_v0, %v5246_v7  ;;  %v3992_v35 = vrot.slane %v2921_v37, 7  ;;  %v3977_v44 = vrot.slane %v2926_v18, 7 }
 0x3f3   : > { %v3993_v39 = vrot.slane %v2929_v45, 7  ;;  %v7883_v49 = vsel %vm2045_vm0, %v3992_v35, %v3976_v20  ;;  %v5287_v19 = vpop.f32.mrb[192].mxu0  ;;  %v5753_v61 = vpop.f32.mrb[192].mxu1  ;;  %v7887_v40 = vsel %vm2045_vm0, %v3976_v20, %v3992_v35 }
 0x3f4   : > { %v5288_v4 = vpop.f32.mrb[193].mxu0  ;;  %v3320_v46 = vpop.f32.mrb[193].mxu1 }
 0x3f5   : > { %v5289_v13 = vadd.f32 %v5288_v4, %v5287_v19  ;;  %v5290_v30 = vpop.f32.mrb[194].mxu0  ;;  %v5754_v31 = vpop.f32.mrb[194].mxu1  ;;  %v7891_v2 = vsel %vm2045_vm0, %v3993_v39, %v3977_v44  ;;  %v7895_v5 = vsel %vm2045_vm0, %v3977_v44, %v3993_v39 }
 0x3f6   : > { %v5291_v33 = vpop.f32.mrb[195].mxu0  ;;  %v3323_v55 = vpop.f32.mrb[195].mxu1 }
 0x3f7   : > { %v3321_v42 = vadd.f32 %v5289_v13, %v3320_v46  ;;  %v5292_v57 = vadd.f32 %v5291_v33, %v5290_v30 }
 0x3f9   : > { %v7900_v1 = vadd.f32 %v4026_v23, %v3321_v42  ;;  %v3324_v11 = vadd.f32 %v5292_v57, %v3323_v55 }
 0x3fb   : > { %v7903_v10 = vadd.f32 %v7745_v3, %v3324_v11  ;;  %v5293_v32 = vpop.f32.mrb[196].mxu0  ;;  %v5757_v56 = vpop.f32.mrb[196].mxu1 }
 0x3fc   : > { %v5294_v26 = vpop.f32.mrb[197].mxu0  ;;  %v3336_v54 = vpop.f32.mrb[197].mxu1 }
 0x3fd   : > { %v5295_v0 = vadd.f32 %v5294_v26, %v5293_v32  ;;  %v5296_v22 = vpop.f32.mrb[198].mxu0  ;;  %v5758_v52 = vpop.f32.mrb[198].mxu1 }
 0x3fe   : > { %v5297_v18 = vpop.f32.mrb[199].mxu0  ;;  %v3339_v7 = vpop.f32.mrb[199].mxu1 }
 0x3ff   : > { %v3329_v37 = vadd.f32 %v5753_v61, %v5295_v0  ;;  %v5298_v20 = vadd.f32 %v5297_v18, %v5296_v22 }
 0x401   : > { %v7908_v45 = vadd.f32 %v4028_v38, %v3329_v37  ;;  %v3332_v35 = vadd.f32 %v5754_v31, %v5298_v20 }
 0x403   : > { %v7911_v3 = vadd.f32 %v7737_v53, %v3332_v35  ;;  %v5299_v44 = vpop.f32.mrb[200].mxu0  ;;  %v5761_v39 = vpop.f32.mrb[200].mxu1 }
 0x404   : > { %v5300_v19 = vpop.f32.mrb[201].mxu0  ;;  %v3352_v4 = vpop.f32.mrb[201].mxu1 }
 0x405   : > { %v5301_v46 = vadd.f32 %v5300_v19, %v5299_v44  ;;  %v5302_v13 = vpop.f32.mrb[202].mxu0  ;;  %v5762_v30 = vpop.f32.mrb[202].mxu1 }
 0x406   : > { %v5303_v33 = vpop.f32.mrb[203].mxu0  ;;  %v3355_v61 = vpop.f32.mrb[203].mxu1 }
 0x407   : > { %v3337_v55 = vadd.f32 %v5301_v46, %v3336_v54  ;;  %v5304_v42 = vadd.f32 %v5303_v33, %v5302_v13 }
 0x409   : > { %v7916_v57 = vadd.f32 %v4030_v15, %v3337_v55  ;;  %v3340_v31 = vadd.f32 %v5304_v42, %v3339_v7 }
 0x40b   : > { %v7919_v53 = vadd.f32 %v7769_v14, %v3340_v31  ;;  %v5305_v23 = vpop.f32.mrb[204].mxu0  ;;  %v7921_v11 = vpop.f32.mrb[204].mxu1 }
 0x40c   : > { %v5306_v32 = vpop.f32.mrb[205].mxu0  ;;  %v3368_v26 = vpop.f32.mrb[205].mxu1 }
 0x40d   : > { %v5307_v0 = vadd.f32 %v5306_v32, %v5305_v23  ;;  %v5308_v22 = vpop.f32.mrb[206].mxu0  ;;  %v7923_v18 = vpop.f32.mrb[206].mxu1 }
 0x40e   : > { %v5309_v54 = vpop.f32.mrb[207].mxu0  ;;  %v3371_v37 = vpop.f32.mrb[207].mxu1 }
 0x40f   : > { %v3345_v20 = vadd.f32 %v5757_v56, %v5307_v0  ;;  %v5310_v38 = vadd.f32 %v5309_v54, %v5308_v22 }
 0x411   : > { %v7928_v7 = vadd.f32 %v4032_v9, %v3345_v20  ;;  %v3348_v14 = vadd.f32 %v5758_v52, %v5310_v38 }
 0x413   : > { %v7931_v35 = vadd.f32 %v7761_v41, %v3348_v14  ;;  %v5311_v44 = vpop.f32.mrb[208].mxu0  ;;  %v7933_v19 = vpop.f32.mrb[208].mxu1  ;;  %v4034_v41 = vsel %vm411_vm1, %v7789_v58, 0.0 }
 0x414   : > { %v5312_v46 = vpop.f32.mrb[209].mxu0  ;;  %v7935_v13 = vpop.f32.mrb[209].mxu1 }
 0x415   : > { %v5313_v33 = vadd.f32 %v5312_v46, %v5311_v44  ;;  %v5314_v55 = vpop.f32.mrb[210].mxu0  ;;  %v7937_v56 = vpop.f32.mrb[210].mxu1 }
 0x416   : > { %v5315_v42 = vpop.f32.mrb[211].mxu0  ;;  %v7939_v15 = vpop.f32.mrb[211].mxu1 }
 0x417   : > { %v3353_v63 = vadd.f32 %v5313_v33, %v3352_v4  ;;  %v5316_v31 = vadd.f32 %v5315_v42, %v5314_v55 }
 0x419   : > { %v7944_v52 = vadd.f32 %v4034_v41, %v3353_v63  ;;  %v3356_v23 = vadd.f32 %v5316_v31, %v3355_v61 }
 0x41b   : > { %v7947_v32 = vadd.f32 %v7793_v48, %v3356_v23  ;;  %v5317_v0 = vpop.f32.mrb[212].mxu0  ;;  %v7949_v22 = vpop.f32.mrb[212].mxu1  ;;  %v4036_v48 = vsel %vm411_vm1, %v7779_v16, 0.0 }
 0x41c   : > { %v5318_v54 = vpop.f32.mrb[213].mxu0  ;;  %v7951_v20 = vpop.f32.mrb[213].mxu1 }
 0x41d   : > { %8519 = vst [vmem:[#allocation21_spill] sm:$0xff] %v7947_v32  ;;  %v5319_v38 = vadd.f32 %v5318_v54, %v5317_v0  ;;  %v5320_v9 = vpop.f32.mrb[214].mxu0  ;;  %v7953_v4 = vpop.f32.mrb[214].mxu1 }
 0x41e   : > { %v5321_v14 = vpop.f32.mrb[215].mxu0  ;;  %v7955_v44 = vpop.f32.mrb[215].mxu1 }
 0x41f   : > { %v3361_v58 = vadd.f32 %v5761_v39, %v5319_v38  ;;  %v5322_v46 = vadd.f32 %v5321_v14, %v5320_v9 }
 0x421   : > { %v7960_v61 = vadd.f32 %v4036_v48, %v3361_v58  ;;  %v3364_v33 = vadd.f32 %v5762_v30, %v5322_v46 }
 0x423   : > { %v7963_v55 = vadd.f32 %v7785_v34, %v3364_v33  ;;  %v5323_v42 = vpop.f32.mrb[216].mxu0  ;;  %v7965_v63 = vpop.f32.mrb[216].mxu1  ;;  %v4038_v34 = vsel %vm411_vm1, %v7813_v60, 0.0 }
 0x424   : > { %v5324_v31 = vpop.f32.mrb[217].mxu0  ;;  %v7967_v41 = vpop.f32.mrb[217].mxu1 }
 0x425   : > { %v5325_v23 = vadd.f32 %v5324_v31, %v5323_v42  ;;  %v5326_v0 = vpop.f32.mrb[218].mxu0  ;;  %v7969_v39 = vpop.f32.mrb[218].mxu1 }
 0x426   : > { %v5327_v54 = vpop.f32.mrb[219].mxu0  ;;  %v7971_v38 = vpop.f32.mrb[219].mxu1 }
 0x427   : > { %v3369_v16 = vadd.f32 %v5325_v23, %v3368_v26  ;;  %v5328_v9 = vadd.f32 %v5327_v54, %v5326_v0 }
 0x429   : > { %v7976_v30 = vadd.f32 %v4038_v34, %v3369_v16  ;;  %v3372_v14 = vadd.f32 %v5328_v9, %v3371_v37 }
 0x42b   : > { %8520 = vst [vmem:[#allocation23_spill] sm:$0xff] %v7976_v30  ;;  %v7979_v58 = vadd.f32 %v7817_v36, %v3372_v14  ;;  %v5329_v46 = vpop.f32.mrb[220].mxu0  ;;  %v7981_v48 = vpop.f32.mrb[220].mxu1  ;;  %v4040_v36 = vsel %vm411_vm1, %v7803_v25, 0.0 }
 0x42c   : > { %v5330_v33 = vpop.f32.mrb[221].mxu0  ;;  %v7983_v42 = vpop.f32.mrb[221].mxu1 }
 0x42d   : > { %8521 = vst [vmem:[#allocation22_spill] sm:$0xff] %v7979_v58  ;;  %v5331_v31 = vadd.f32 %v5330_v33, %v5329_v46  ;;  %v5332_v32 = vpop.f32.mrb[222].mxu0  ;;  %v7985_v26 = vpop.f32.mrb[222].mxu1 }
 0x42e   : > { %v5333_v23 = vpop.f32.mrb[223].mxu0  ;;  %v7987_v0 = vpop.f32.mrb[223].mxu1 }
 0x42f   : > { %v3377_v60 = vadd.f32 %v7921_v11, %v5331_v31  ;;  %v5334_v54 = vadd.f32 %v5333_v23, %v5332_v32 }
 0x431   : > { %v7993_v37 = vadd.f32 %v4040_v36, %v3377_v60  ;;  %v3380_v16 = vadd.f32 %v7923_v18, %v5334_v54 }
 0x433   : > { %v7997_v9 = vadd.f32 %v7809_v51, %v3380_v16  ;;  %v5335_v34 = vpop.f32.mrb[224].mxu0  ;;  %v5423_v14 = vpop.f32.mrb[224].mxu1  ;;  %v4042_v51 = vsel %vm411_vm1, %v7837_v62, 0.0 }
 0x434   : > { %v5336_v46 = vpop.f32.mrb[225].mxu0  ;;  %v5424_v33 = vpop.f32.mrb[225].mxu1 }
 0x435   : > { %8522 = vst [vmem:[#allocation24_spill] sm:$0xff] %v7997_v9  ;;  %v5337_v58 = vadd.f32 %v5336_v46, %v5335_v34  ;;  %v7999_v30 = vadd.f32 %v5424_v33, %v5423_v14  ;;  %v5338_v11 = vpop.f32.mrb[226].mxu0  ;;  %v5426_v32 = vpop.f32.mrb[226].mxu1 }
 0x436   : > { %v5339_v31 = vpop.f32.mrb[227].mxu0  ;;  %v5427_v23 = vpop.f32.mrb[227].mxu1 }
 0x437   : > { %v3385_v25 = vadd.f32 %v5337_v58, %v7935_v13  ;;  %v5340_v60 = vadd.f32 %v5339_v31, %v5338_v11  ;;  %v8002_v36 = vadd.f32 %v5427_v23, %v5426_v32 }
 0x439   : > { %v8007_v18 = vadd.f32 %v4042_v51, %v3385_v25  ;;  %v3388_v54 = vadd.f32 %v5340_v60, %v7939_v15 }
 0x43b   : > { %v8011_v16 = vadd.f32 %v7841_v8, %v3388_v54  ;;  %v5341_v34 = vpop.f32.mrb[228].mxu0  ;;  %v5429_v14 = vpop.f32.mrb[228].mxu1  ;;  %v4044_v8 = vsel %vm411_vm1, %v7827_v24, 0.0 }
 0x43c   : > { %v5342_v46 = vpop.f32.mrb[229].mxu0  ;;  %v5430_v33 = vpop.f32.mrb[229].mxu1 }
 0x43d   : > { %v5343_v9 = vadd.f32 %v5342_v46, %v5341_v34  ;;  %v8013_v13 = vadd.f32 %v5430_v33, %v5429_v14  ;;  %v5344_v58 = vpop.f32.mrb[230].mxu0  ;;  %v5432_v11 = vpop.f32.mrb[230].mxu1 }
 0x43e   : > { %v5345_v32 = vpop.f32.mrb[231].mxu0  ;;  %v5433_v31 = vpop.f32.mrb[231].mxu1 }
 0x43f   : > { %v3393_v62 = vadd.f32 %v7933_v19, %v5343_v9  ;;  %v5346_v23 = vadd.f32 %v5345_v32, %v5344_v58  ;;  %v8016_v25 = vadd.f32 %v5433_v31, %v5432_v11 }
 0x441   : > { %v8021_v15 = vadd.f32 %v4044_v8, %v3393_v62  ;;  %v3396_v60 = vadd.f32 %v7937_v56, %v5346_v23 }
 0x443   : > { %v8025_v51 = vadd.f32 %v7833_v28, %v3396_v60  ;;  %v5347_v54 = vpop.f32.mrb[232].mxu0  ;;  %v5435_v34 = vpop.f32.mrb[232].mxu1  ;;  %v4046_v28 = vsel %vm411_vm1, %v7859_v21, 0.0 }
 0x444   : > { %v5348_v14 = vpop.f32.mrb[233].mxu0  ;;  %v5436_v46 = vpop.f32.mrb[233].mxu1 }
 0x445   : > { %v5349_v33 = vadd.f32 %v5348_v14, %v5347_v54  ;;  %v8027_v19 = vadd.f32 %v5436_v46, %v5435_v34  ;;  %v5350_v9 = vpop.f32.mrb[234].mxu0  ;;  %v5438_v58 = vpop.f32.mrb[234].mxu1 }
 0x446   : > { %v5351_v11 = vpop.f32.mrb[235].mxu0  ;;  %v5439_v32 = vpop.f32.mrb[235].mxu1 }
 0x447   : > { %v3401_v24 = vadd.f32 %v5349_v33, %v7951_v20  ;;  %v5352_v31 = vadd.f32 %v5351_v11, %v5350_v9  ;;  %v8030_v62 = vadd.f32 %v5439_v32, %v5438_v58 }
 0x449   : > { %v8035_v56 = vadd.f32 %v4046_v28, %v3401_v24  ;;  %v3404_v23 = vadd.f32 %v5352_v31, %v7955_v44 }
 0x44b   : > { %v8039_v8 = vadd.f32 %v7863_v59, %v3404_v23  ;;  %v5353_v60 = vpop.f32.mrb[236].mxu0  ;;  %v5441_v54 = vpop.f32.mrb[236].mxu1  ;;  %v4048_v59 = vsel %vm411_vm1, %v7851_v12, 0.0 }
 0x44c   : > { %v5354_v34 = vpop.f32.mrb[237].mxu0  ;;  %v5442_v14 = vpop.f32.mrb[237].mxu1 }
 0x44d   : > { %v5355_v46 = vadd.f32 %v5354_v34, %v5353_v60  ;;  %v8041_v20 = vadd.f32 %v5442_v14, %v5441_v54  ;;  %v5356_v33 = vpop.f32.mrb[238].mxu0  ;;  %v5444_v9 = vpop.f32.mrb[238].mxu1 }
 0x44e   : > { %v5357_v58 = vpop.f32.mrb[239].mxu0  ;;  %v5445_v11 = vpop.f32.mrb[239].mxu1 }
 0x44f   : > { %v3409_v21 = vadd.f32 %v7949_v22, %v5355_v46  ;;  %v5358_v32 = vadd.f32 %v5357_v58, %v5356_v33  ;;  %v8044_v24 = vadd.f32 %v5445_v11, %v5444_v9 }
 0x451   : > { %v8049_v44 = vadd.f32 %v4048_v59, %v3409_v21  ;;  %v3412_v31 = vadd.f32 %v7953_v4, %v5358_v32 }
 0x453   : > { %v8053_v28 = vadd.f32 %v7855_v27, %v3412_v31  ;;  %v5359_v23 = vpop.f32.mrb[240].mxu0  ;;  %v5447_v60 = vpop.f32.mrb[240].mxu1  ;;  %v4050_v27 = vsel %vm411_vm1, %v7875_v50, 0.0 }
 0x454   : > { %v5360_v54 = vpop.f32.mrb[241].mxu0  ;;  %v5448_v34 = vpop.f32.mrb[241].mxu1 }
 0x455   : > { %v5361_v14 = vadd.f32 %v5360_v54, %v5359_v23  ;;  %v8055_v22 = vadd.f32 %v5448_v34, %v5447_v60  ;;  %v5362_v46 = vpop.f32.mrb[242].mxu0  ;;  %v5450_v33 = vpop.f32.mrb[242].mxu1 }
 0x456   : > { %v5363_v9 = vpop.f32.mrb[243].mxu0  ;;  %v5451_v58 = vpop.f32.mrb[243].mxu1 }
 0x457   : > { %v3417_v12 = vadd.f32 %v5361_v14, %v7967_v41  ;;  %v5364_v11 = vadd.f32 %v5363_v9, %v5362_v46  ;;  %v8058_v21 = vadd.f32 %v5451_v58, %v5450_v33 }
 0x459   : > { %v8063_v4 = vadd.f32 %v4050_v27, %v3417_v12  ;;  %v3420_v32 = vadd.f32 %v5364_v11, %v7971_v38 }
 0x45b   : > { %v8067_v59 = vadd.f32 %v7879_v6, %v3420_v32  ;;  %v5365_v31 = vpop.f32.mrb[244].mxu0  ;;  %v5453_v23 = vpop.f32.mrb[244].mxu1  ;;  %v4052_v6 = vsel %vm411_vm1, %v7867_v47, 0.0 }
 0x45c   : > { %v5366_v60 = vpop.f32.mrb[245].mxu0  ;;  %v5454_v54 = vpop.f32.mrb[245].mxu1 }
 0x45d   : > { %v5367_v34 = vadd.f32 %v5366_v60, %v5365_v31  ;;  %v8069_v41 = vadd.f32 %v5454_v54, %v5453_v23  ;;  %v5368_v14 = vpop.f32.mrb[246].mxu0  ;;  %v5456_v46 = vpop.f32.mrb[246].mxu1 }
 0x45e   : > { %v5369_v33 = vpop.f32.mrb[247].mxu0  ;;  %v5457_v9 = vpop.f32.mrb[247].mxu1 }
 0x45f   : > { %v3425_v50 = vadd.f32 %v7965_v63, %v5367_v34  ;;  %v5370_v58 = vadd.f32 %v5369_v33, %v5368_v14  ;;  %v8072_v12 = vadd.f32 %v5457_v9, %v5456_v46 }
 0x461   : > { %v8077_v38 = vadd.f32 %v4052_v6, %v3425_v50  ;;  %v3428_v11 = vadd.f32 %v7969_v39, %v5370_v58 }
 0x463   : > { %v8081_v27 = vadd.f32 %v7871_v43, %v3428_v11  ;;  %v5371_v32 = vpop.f32.mrb[248].mxu0  ;;  %v5459_v31 = vpop.f32.mrb[248].mxu1  ;;  %v4054_v43 = vsel %vm411_vm1, %v7883_v49, 0.0 }
 0x464   : > { %v5372_v23 = vpop.f32.mrb[249].mxu0  ;;  %v5460_v60 = vpop.f32.mrb[249].mxu1 }
 0x465   : > { %v5373_v54 = vadd.f32 %v5372_v23, %v5371_v32  ;;  %v8083_v63 = vadd.f32 %v5460_v60, %v5459_v31  ;;  %v5374_v34 = vpop.f32.mrb[250].mxu0  ;;  %v5462_v14 = vpop.f32.mrb[250].mxu1 }
 0x466   : > { %v5375_v46 = vpop.f32.mrb[251].mxu0  ;;  %v5463_v33 = vpop.f32.mrb[251].mxu1 }
 0x467   : > { %v3433_v47 = vadd.f32 %v5373_v54, %v7983_v42  ;;  %v5376_v9 = vadd.f32 %v5375_v46, %v5374_v34  ;;  %v8086_v50 = vadd.f32 %v5463_v33, %v5462_v14 }
 0x469   : > { %v8091_v39 = vadd.f32 %v4054_v43, %v3433_v47  ;;  %v3436_v58 = vadd.f32 %v5376_v9, %v7987_v0 }
 0x46b   : > { %8523 = vst [vmem:[#allocation25_spill] sm:$0xff] %v8091_v39  ;;  %v8095_v6 = vadd.f32 %v7887_v40, %v3436_v58  ;;  %v5377_v11 = vpop.f32.mrb[252].mxu0  ;;  %v5465_v32 = vpop.f32.mrb[252].mxu1  ;;  %v4056_v40 = vsel %vm411_vm1, %v7891_v2, 0.0 }
 0x46c   : > { %v5378_v31 = vpop.f32.mrb[253].mxu0  ;;  %v5466_v23 = vpop.f32.mrb[253].mxu1 }
 0x46d   : > { %8524 = vst [vmem:[#allocation26_spill] sm:$0xff] %v8095_v6  ;;  %v5379_v60 = vadd.f32 %v5378_v31, %v5377_v11  ;;  %v8097_v42 = vadd.f32 %v5466_v23, %v5465_v32  ;;  %v5380_v54 = vpop.f32.mrb[254].mxu0  ;;  %v5468_v34 = vpop.f32.mrb[254].mxu1 }
 0x46e   : > { %v5381_v14 = vpop.f32.mrb[255].mxu0  ;;  %v5469_v46 = vpop.f32.mrb[255].mxu1 }
 0x46f   : > { %v3441_v49 = vadd.f32 %v7981_v48, %v5379_v60  ;;  %v5382_v33 = vadd.f32 %v5381_v14, %v5380_v54  ;;  %v8100_v47 = vadd.f32 %v5469_v46, %v5468_v34 }
 0x471   : > { %v8105_v0 = vadd.f32 %v4056_v40, %v3441_v49  ;;  %v3444_v9 = vadd.f32 %v7985_v26, %v5382_v33 }
 0x473   : > { %v8109_v43 = vadd.f32 %v7895_v5, %v3444_v9  ;;  %v5471_v58 = vpop.f32.mrb[0].mxu1  ;;  %v5801_v11 = vpop.f32.mrb[0].mxu0  ;;  %v8119_v9 = vld [vmem:[#allocation12] ss:$0 sm:$0xff] }
 0x474   : > { %v3844_v32 = vadd.f32 %v5801_v11, %v8013_v13  ;;  %v5472_v31 = vpop.f32.mrb[1].mxu1  ;;  %v3835_v48 = vpop.f32.mrb[1].mxu0 }
 0x475   : > { %v8112_v23 = vadd.f32 %v5472_v31, %v5471_v58  ;;  %v3836_v60 = vadd.f32 %v7999_v30, %v3835_v48  ;;  %v5474_v54 = vpop.f32.mrb[2].mxu1  ;;  %v5802_v34 = vpop.f32.mrb[2].mxu0 }
 0x476   : > { %v3847_v2 = vadd.f32 %v5802_v34, %v8016_v25  ;;  %v5475_v14 = vpop.f32.mrb[3].mxu1  ;;  %v3838_v46 = vpop.f32.mrb[3].mxu0  ;;  %v4059_v49 = vrot.slane %v3844_v32, 1 }
 0x477   : > { %v8116_v26 = vadd.f32 %v5475_v14, %v5474_v54  ;;  %v3839_v5 = vadd.f32 %v8002_v36, %v3838_v46  ;;  %v4058_v40 = vrot.slane %v3836_v60, 1  ;;  %v8132_v60 = vld [vmem:[#allocation14] ss:$0 sm:$0xff] }
 0x478   : > { %v4075_v33 = vrot.slane %v3847_v2, 1 }
 0x479   : > { %v4074_v13 = vrot.slane %v3839_v5, 1 }
 0x47a   : > { %v4091_v30 = vsel %vm2142_vm2, %v4059_v49, %v4075_v33  ;;  %v4107_v58 = vsel %vm2142_vm2, %v4075_v33, %v4059_v49 }
 0x47b   : > { %v4125_v25 = vsel %vm414_vm3, %v4107_v58, 0.0  ;;  %v4188_v11 = vadd.f32 %v7908_v45, %v4091_v30  ;;  %v4090_v36 = vsel %vm2142_vm2, %v4058_v40, %v4074_v13  ;;  %v4106_v32 = vsel %vm2142_vm2, %v4074_v13, %v4058_v40  ;;  %v5477_v31 = vpop.f32.mrb[4].mxu1  ;;  %v5805_v48 = vpop.f32.mrb[4].mxu0  ;;  %v4691_v30 = vld [vmem:[%s6686_s9 + $0x20] sm:$0xff] }
 0x47c   : > { %v4189_v54 = vadd.f32 %v7911_v3, %v4125_v25  ;;  %v4123_v34 = vsel %vm414_vm3, %v4106_v32, 0.0  ;;  %v4186_v2 = vadd.f32 %v7900_v1, %v4090_v36  ;;  %v3860_v45 = vadd.f32 %v5805_v48, %v8041_v20  ;;  %v5478_v14 = vpop.f32.mrb[5].mxu1  ;;  %v3851_v46 = vpop.f32.mrb[5].mxu0  ;;  %v4692_v32 = vld [vmem:[%s6686_s9 + $0x28] sm:$0xff] }
 0x47d   : > { %v4253_v5 = vmul.f32 %v8119_v9, %v4188_v11  ;;  %v4187_v49 = vadd.f32 %v7903_v10, %v4123_v34  ;;  %v8142_v33 = vadd.f32 %v5478_v14, %v5477_v31  ;;  %v3852_v3 = vadd.f32 %v8027_v19, %v3851_v46  ;;  %v5480_v40 = vpop.f32.mrb[6].mxu1  ;;  %v5806_v13 = vpop.f32.mrb[6].mxu0  ;;  %v4689_v10 = vld [vmem:[%s6686_s9 + $0x10] sm:$0xff]  ;;  %v4690_v14 = vld [vmem:[%s6686_s9 + $0x18] sm:$0xff] }
 0x47e   : > { %v4254_v1 = vmul.f32 %v8119_v9, %v4189_v54  ;;  %v4251_v20 = vmul.f32 %v8119_v9, %v4186_v2  ;;  %v3863_v58 = vadd.f32 %v5806_v13, %v8044_v24  ;;  %v5481_v25 = vpop.f32.mrb[7].mxu1  ;;  %v3854_v36 = vpop.f32.mrb[7].mxu0  ;;  %v4061_v19 = vrot.slane %v3860_v45, 1 }
 0x47f   : > { %v4285_v11 = vadd.f32 %v8132_v60, %v4253_v5  ;;  %v4252_v31 = vmul.f32 %v8119_v9, %v4187_v49  ;;  %v8153_v48 = vadd.f32 %v5481_v25, %v5480_v40  ;;  %v3855_v24 = vadd.f32 %v8030_v62, %v3854_v36 }
 0x480   : > { %v4286_v34 = vadd.f32 %v8132_v60, %v4254_v1  ;;  %v4283_v54 = vadd.f32 %v8132_v60, %v4251_v20  ;;  %v4077_v2 = vrot.slane %v3863_v58, 1  ;;  %v4060_v6 = vrot.slane %v3852_v3, 1 }
 0x481   : > { %v4317_v46 = vadd.f32 %v4691_v30, %v4285_v11  ;;  %v4284_v13 = vadd.f32 %v8132_v60, %v4252_v31  ;;  %v4076_v30 = vrot.slane %v3855_v24, 1  ;;  %v4696_v24 = vld [vmem:[%s6686_s9 + $0x48] sm:$0xff] }
 0x482   : > { %v4318_v5 = vadd.f32 %v4692_v32, %v4286_v34  ;;  %v4315_v39 = vadd.f32 %v4689_v10, %v4283_v54  ;;  %v4093_v49 = vsel %vm2142_vm2, %v4061_v19, %v4077_v2  ;;  %v4109_v45 = vsel %vm2142_vm2, %v4077_v2, %v4061_v19  ;;  %v4695_v34 = vld [vmem:[%s6686_s9 + $0x40] sm:$0xff] }
 0x483   : > { %4349 = vst [vmem:[%s8166_s12 + $0x10] sm:$0xff] %v4317_v46  ;;  %v4316_v62 = vadd.f32 %v4690_v14, %v4284_v13  ;;  %v4129_v3 = vsel %vm414_vm3, %v4109_v45, 0.0  ;;  %v4192_v40 = vadd.f32 %v7928_v7, %v4093_v49  ;;  %v5483_v1 = vpop.f32.mrb[8].mxu1  ;;  %v5809_v20 = vpop.f32.mrb[8].mxu0  ;;  %v4092_v10 = vsel %vm2142_vm2, %v4060_v6, %v4076_v30 }
 0x484   : > { %4350 = vst [vmem:[%s8166_s12 + $0x18] sm:$0xff] %v4318_v5  ;;  %4347 = vst [vmem:[%s8166_s12] sm:$0xff] %v4315_v39  ;;  %v4193_v58 = vadd.f32 %v7931_v35, %v4129_v3  ;;  %v3876_v25 = vadd.f32 %v5809_v20, %v8069_v41  ;;  %v5484_v36 = vpop.f32.mrb[9].mxu1  ;;  %v3867_v32 = vpop.f32.mrb[9].mxu0  ;;  %v4108_v7 = vsel %vm2142_vm2, %v4076_v30, %v4060_v6 }
 0x485   : > { %4348 = vst [vmem:[%s8166_s12 + $0x8] sm:$0xff] %v4316_v62  ;;  %v4257_v11 = vmul.f32 %v8119_v9, %v4192_v40  ;;  %v8182_v31 = vadd.f32 %v5484_v36, %v5483_v1  ;;  %v5486_v19 = vpop.f32.mrb[10].mxu1  ;;  %v5810_v39 = vpop.f32.mrb[10].mxu0  ;;  %v4127_v41 = vsel %vm414_vm3, %v4108_v7, 0.0  ;;  %v4190_v14 = vadd.f32 %v7916_v57, %v4092_v10  ;;  %v4693_v40 = vld [vmem:[%s6686_s9 + $0x30] sm:$0xff] }
 0x486   : > { %v4258_v35 = vmul.f32 %v8119_v9, %v4193_v58  ;;  %v5487_v54 = vpop.f32.mrb[11].mxu1  ;;  %v3870_v2 = vpop.f32.mrb[11].mxu0  ;;  %v4191_v6 = vadd.f32 %v7919_v53, %v4127_v41  ;;  %v3868_v13 = vadd.f32 %v8055_v22, %v3867_v32  ;;  %v3879_v5 = vadd.f32 %v5810_v39, %v8072_v12  ;;  %v4694_v22 = vld [vmem:[%s6686_s9 + $0x38] sm:$0xff] }
 0x487   : > { %v4289_v46 = vadd.f32 %v8132_v60, %v4257_v11  ;;  %v4255_v45 = vmul.f32 %v8119_v9, %v4190_v14  ;;  %v8196_v62 = vadd.f32 %v5487_v54, %v5486_v19  ;;  %v3871_v57 = vadd.f32 %v8058_v21, %v3870_v2 }
 0x488   : > { %v4290_v49 = vadd.f32 %v8132_v60, %v4258_v35  ;;  %v4256_v30 = vmul.f32 %v8119_v9, %v4191_v6  ;;  %v4063_v1 = vrot.slane %v3876_v25, 1  ;;  %v4079_v53 = vrot.slane %v3879_v5, 1 }
 0x489   : > { %v4321_v3 = vadd.f32 %v4695_v34, %v4289_v46  ;;  %v4287_v58 = vadd.f32 %v8132_v60, %v4255_v45  ;;  %v4062_v12 = vrot.slane %v3868_v13, 1  ;;  %v4078_v36 = vrot.slane %v3871_v57, 1  ;;  %v4699_v57 = vld [vmem:[%s6686_s9 + $0x60] sm:$0xff] }
 0x48a   : > { %v4322_v20 = vadd.f32 %v4696_v24, %v4290_v49  ;;  %v4288_v32 = vadd.f32 %v8132_v60, %v4256_v30  ;;  %v4095_v11 = vsel %vm2142_vm2, %v4063_v1, %v4079_v53  ;;  %v4111_v21 = vsel %vm2142_vm2, %v4079_v53, %v4063_v1  ;;  %v4700_v53 = vld [vmem:[%s6686_s9 + $0x68] sm:$0xff] }
 0x48b   : > { %4353 = vst [vmem:[%s8166_s12 + $0x30] sm:$0xff] %v4321_v3  ;;  %v5489_v10 = vpop.f32.mrb[12].mxu1  ;;  %v5813_v7 = vpop.f32.mrb[12].mxu0  ;;  %v4319_v25 = vadd.f32 %v4693_v40, %v4287_v58  ;;  %v4133_v19 = vsel %vm414_vm3, %v4111_v21, 0.0  ;;  %v4196_v39 = vadd.f32 %v7960_v61, %v4095_v11  ;;  %v4094_v34 = vsel %vm2142_vm2, %v4062_v12, %v4078_v36  ;;  %v8525_v3 = vld [vmem:[#allocation21_spill] sm:$0xff]  ;;  %v4698_v21 = vld [vmem:[%s6686_s9 + $0x58] sm:$0xff] }
 0x48c   : > { %4354 = vst [vmem:[%s8166_s12 + $0x38] sm:$0xff] %v4322_v20  ;;  %v5490_v35 = vpop.f32.mrb[13].mxu1  ;;  %v3883_v41 = vpop.f32.mrb[13].mxu0  ;;  %v4320_v14 = vadd.f32 %v4694_v22, %v4288_v32  ;;  %v4197_v54 = vadd.f32 %v7963_v55, %v4133_v19  ;;  %v4110_v2 = vsel %vm2142_vm2, %v4078_v36, %v4062_v12  ;;  %v4194_v24 = vadd.f32 %v7944_v52, %v4094_v34  ;;  %v4697_v22 = vld [vmem:[%s6686_s9 + $0x50] sm:$0xff] }
 0x48d   : > { %v5492_v46 = vpop.f32.mrb[14].mxu1  ;;  %v5814_v6 = vpop.f32.mrb[14].mxu0  ;;  %4351 = vst [vmem:[%s8166_s12 + $0x20] sm:$0xff] %v4319_v25  ;;  %v4261_v61 = vmul.f32 %v8119_v9, %v4196_v39  ;;  %v4131_v13 = vsel %vm414_vm3, %v4110_v2, 0.0  ;;  %v3892_v5 = vadd.f32 %v5813_v7, %v8097_v42  ;;  %v8224_v49 = vadd.f32 %v5490_v35, %v5489_v10 }
 0x48e   : > { %v5493_v55 = vpop.f32.mrb[15].mxu1  ;;  %v3886_v45 = vpop.f32.mrb[15].mxu0  ;;  %4352 = vst [vmem:[%s8166_s12 + $0x28] sm:$0xff] %v4320_v14  ;;  %v4262_v52 = vmul.f32 %v8119_v9, %v4197_v54  ;;  %v4195_v40 = vadd.f32 %v8525_v3, %v4131_v13  ;;  %v4259_v30 = vmul.f32 %v8119_v9, %v4194_v24  ;;  %v3884_v1 = vadd.f32 %v8083_v63, %v3883_v41 }
 0x48f   : > { %v4293_v20 = vadd.f32 %v8132_v60, %v4261_v61  ;;  %v3895_v42 = vadd.f32 %v5814_v6, %v8100_v47  ;;  %v8236_v58 = vadd.f32 %v5493_v55, %v5492_v46  ;;  %v4065_v10 = vrot.slane %v3892_v5, 1 }
 0x490   : > { %v4294_v12 = vadd.f32 %v8132_v60, %v4262_v52  ;;  %v4260_v36 = vmul.f32 %v8119_v9, %v4195_v40  ;;  %v4291_v32 = vadd.f32 %v8132_v60, %v4259_v30  ;;  %v3887_v7 = vadd.f32 %v8086_v50, %v3886_v45  ;;  %v8526_v45 = vld [vmem:[#allocation24_spill] sm:$0xff] }
 0x491   : > { %v4325_v11 = vadd.f32 %v4699_v57, %v4293_v20  ;;  %v4081_v63 = vrot.slane %v3895_v42, 1  ;;  %v4064_v39 = vrot.slane %v3884_v1, 1  ;;  %v8527_v1 = vld [vmem:[#allocation23_spill] sm:$0xff] }
 0x492   : > { %v4326_v25 = vadd.f32 %v4700_v53, %v4294_v12  ;;  %v4292_v47 = vadd.f32 %v8132_v60, %v4260_v36  ;;  %v4323_v19 = vadd.f32 %v4697_v22, %v4291_v32  ;;  %v4080_v54 = vrot.slane %v3887_v7, 1  ;;  %v4703_v22 = vld [vmem:[%s6686_s9 + $0x80] sm:$0xff]  ;;  %v8528_v12 = vld [vmem:[#allocation22_spill] sm:$0xff] }
 0x493   : > { %v5495_v34 = vpop.f32.mrb[16].mxu1  ;;  %v5817_v35 = vpop.f32.mrb[16].mxu0  ;;  %4357 = vst [vmem:[%s8166_s12 + $0x50] sm:$0xff] %v4325_v11  ;;  %v4097_v41 = vsel %vm2142_vm2, %v4065_v10, %v4081_v63  ;;  %v4113_v14 = vsel %vm2142_vm2, %v4081_v63, %v4065_v10 }
 0x494   : > { %v3908_v2 = vadd.f32 %v5817_v35, %v8142_v33  ;;  %v5496_v50 = vpop.f32.mrb[17].mxu1  ;;  %v3899_v24 = vpop.f32.mrb[17].mxu0  ;;  %4358 = vst [vmem:[%s8166_s12 + $0x58] sm:$0xff] %v4326_v25  ;;  %v4324_v46 = vadd.f32 %v4698_v21, %v4292_v47  ;;  %4355 = vst [vmem:[%s8166_s12 + $0x40] sm:$0xff] %v4323_v19  ;;  %v4137_v6 = vsel %vm414_vm3, %v4113_v14, 0.0  ;;  %v4200_v61 = vadd.f32 %v7993_v37, %v4097_v41  ;;  %v4704_v21 = vld [vmem:[%s6686_s9 + $0x88] sm:$0xff] }
 0x495   : > { %v8255_v13 = vadd.f32 %v5496_v50, %v5495_v34  ;;  %v5498_v5 = vpop.f32.mrb[18].mxu1  ;;  %v5818_v55 = vpop.f32.mrb[18].mxu0  ;;  %v4201_v57 = vadd.f32 %v8526_v45, %v4137_v6  ;;  %v4096_v33 = vsel %vm2142_vm2, %v4064_v39, %v4080_v54  ;;  %v4112_v52 = vsel %vm2142_vm2, %v4080_v54, %v4064_v39  ;;  %v4702_v35 = vld [vmem:[%s6686_s9 + $0x78] sm:$0xff] }
 0x496   : > { %v5499_v3 = vpop.f32.mrb[19].mxu1  ;;  %v3902_v40 = vpop.f32.mrb[19].mxu0  ;;  %4356 = vst [vmem:[%s8166_s12 + $0x48] sm:$0xff] %v4324_v46  ;;  %v4265_v30 = vmul.f32 %v8119_v9, %v4200_v61  ;;  %v4135_v37 = vsel %vm414_vm3, %v4112_v52, 0.0  ;;  %v4198_v53 = vadd.f32 %v8527_v1, %v4096_v33  ;;  %v3900_v20 = vadd.f32 %v8112_v23, %v3899_v24  ;;  %v4701_v23 = vld [vmem:[%s6686_s9 + $0x70] sm:$0xff] }
 0x497   : > { %v4266_v42 = vmul.f32 %v8119_v9, %v4201_v57  ;;  %v4199_v36 = vadd.f32 %v8528_v12, %v4135_v37  ;;  %v3911_v32 = vadd.f32 %v5818_v55, %v8153_v48  ;;  %v8272_v11 = vadd.f32 %v5499_v3, %v5498_v5 }
 0x498   : > { %v4297_v10 = vadd.f32 %v8132_v60, %v4265_v30  ;;  %v4263_v63 = vmul.f32 %v8119_v9, %v4198_v53  ;;  %v3903_v7 = vadd.f32 %v8116_v26, %v3902_v40  ;;  %v4067_v19 = vrot.slane %v3908_v2, 1 }
 0x499   : > { %v4298_v25 = vadd.f32 %v8132_v60, %v4266_v42  ;;  %v4264_v47 = vmul.f32 %v8119_v9, %v4199_v36  ;;  %v4083_v39 = vrot.slane %v3911_v32, 1  ;;  %v4066_v41 = vrot.slane %v3900_v20, 1 }
 0x49a   : > { %v4329_v34 = vadd.f32 %v4703_v22, %v4297_v10  ;;  %v4295_v48 = vadd.f32 %v8132_v60, %v4263_v63  ;;  %v4082_v14 = vrot.slane %v3903_v7, 1  ;;  %v4705_v63 = vld [vmem:[%s6686_s9 + $0x90] sm:$0xff] }
 0x49b   : > { %v5501_v54 = vpop.f32.mrb[20].mxu1  ;;  %v5821_v50 = vpop.f32.mrb[20].mxu0  ;;  %v4330_v24 = vadd.f32 %v4704_v21, %v4298_v25  ;;  %v4296_v26 = vadd.f32 %v8132_v60, %v4264_v47  ;;  %v4099_v46 = vsel %vm2142_vm2, %v4067_v19, %v4083_v39  ;;  %v4115_v6 = vsel %vm2142_vm2, %v4083_v39, %v4067_v19  ;;  %v4708_v21 = vld [vmem:[%s6686_s9 + $0xa8] sm:$0xff]  ;;  %v4706_v39 = vld [vmem:[%s6686_s9 + $0x98] sm:$0xff] }
 0x49c   : > { %v5502_v2 = vpop.f32.mrb[21].mxu1  ;;  %v3915_v61 = vpop.f32.mrb[21].mxu0  ;;  %4361 = vst [vmem:[%s8166_s12 + $0x70] sm:$0xff] %v4329_v34  ;;  %v4327_v5 = vadd.f32 %v4701_v23, %v4295_v48  ;;  %v4141_v55 = vsel %vm414_vm3, %v4115_v6, 0.0  ;;  %v4204_v45 = vadd.f32 %v8021_v15, %v4099_v46  ;;  %v4098_v57 = vsel %vm2142_vm2, %v4066_v41, %v4082_v14 }
 0x49d   : > { %v5504_v33 = vpop.f32.mrb[22].mxu1  ;;  %v5822_v52 = vpop.f32.mrb[22].mxu0  ;;  %4362 = vst [vmem:[%s8166_s12 + $0x78] sm:$0xff] %v4330_v24  ;;  %v4328_v3 = vadd.f32 %v4702_v35, %v4296_v26  ;;  %v4205_v40 = vadd.f32 %v8025_v51, %v4141_v55  ;;  %v4114_v30 = vsel %vm2142_vm2, %v4082_v14, %v4066_v41  ;;  %v4202_v37 = vadd.f32 %v8007_v18, %v4098_v57  ;;  %v4707_v51 = vld [vmem:[%s6686_s9 + $0xa0] sm:$0xff] }
 0x49e   : > { %v5505_v1 = vpop.f32.mrb[23].mxu1  ;;  %v3918_v15 = vpop.f32.mrb[23].mxu0  ;;  %4359 = vst [vmem:[%s8166_s12 + $0x60] sm:$0xff] %v4327_v5  ;;  %v4269_v53 = vmul.f32 %v8119_v9, %v4204_v45  ;;  %v4139_v20 = vsel %vm414_vm3, %v4114_v30, 0.0  ;;  %v3924_v22 = vadd.f32 %v5821_v50, %v8224_v49  ;;  %v5503_v42 = vadd.f32 %v5502_v2, %v5501_v54 }
 0x49f   : > { %4360 = vst [vmem:[%s8166_s12 + $0x68] sm:$0xff] %v4328_v3  ;;  %v4270_v12 = vmul.f32 %v8119_v9, %v4205_v40  ;;  %v4203_v36 = vadd.f32 %v8011_v16, %v4139_v20  ;;  %v4267_v18 = vmul.f32 %v8119_v9, %v4202_v37  ;;  %v3916_v32 = vadd.f32 %v8182_v31, %v3915_v61  ;;  %v4711_v20 = vld [vmem:[%s6686_s9 + $0xc0] sm:$0xff] }
 0x4a0   : > { %v4301_v10 = vadd.f32 %v8132_v60, %v4269_v53  ;;  %v3927_v7 = vadd.f32 %v5822_v52, %v8236_v58  ;;  %v5506_v25 = vadd.f32 %v5505_v1, %v5504_v33  ;;  %v4069_v19 = vrot.slane %v3924_v22, 1 }
 0x4a1   : > { %v4302_v49 = vadd.f32 %v8132_v60, %v4270_v12  ;;  %v4268_v23 = vmul.f32 %v8119_v9, %v4203_v36  ;;  %v4299_v47 = vadd.f32 %v8132_v60, %v4267_v18  ;;  %v4068_v34 = vrot.slane %v3916_v32, 1  ;;  %v4712_v12 = vld [vmem:[%s6686_s9 + $0xc8] sm:$0xff] }
 0x4a2   : > { %v4333_v16 = vadd.f32 %v4707_v51, %v4301_v10  ;;  %v4085_v35 = vrot.slane %v3927_v7, 1  ;;  %v3919_v31 = vadd.f32 %v8196_v62, %v3918_v15 }
 0x4a3   : > { %v5507_v48 = vpop.f32.mrb[24].mxu1  ;;  %v5825_v41 = vpop.f32.mrb[24].mxu0  ;;  %v4334_v58 = vadd.f32 %v4708_v21, %v4302_v49  ;;  %v4300_v14 = vadd.f32 %v8132_v60, %v4268_v23  ;;  %v4331_v54 = vadd.f32 %v4705_v63, %v4299_v47  ;;  %v4710_v49 = vld [vmem:[%s6686_s9 + $0xb8] sm:$0xff] }
 0x4a4   : > { %v3940_v50 = vadd.f32 %v5825_v41, %v5503_v42  ;;  %v5508_v24 = vpop.f32.mrb[25].mxu1  ;;  %v3931_v26 = vpop.f32.mrb[25].mxu0  ;;  %4365 = vst [vmem:[%s8166_s12 + $0x90] sm:$0xff] %v4333_v16  ;;  %v4101_v46 = vsel %vm2142_vm2, %v4069_v19, %v4085_v35  ;;  %v4117_v6 = vsel %vm2142_vm2, %v4085_v35, %v4069_v19  ;;  %v4084_v62 = vrot.slane %v3919_v31, 1 }
 0x4a5   : > { %v5509_v2 = vadd.f32 %v5508_v24, %v5507_v48  ;;  %v5510_v61 = vpop.f32.mrb[26].mxu1  ;;  %v5826_v5 = vpop.f32.mrb[26].mxu0  ;;  %4366 = vst [vmem:[%s8166_s12 + $0x98] sm:$0xff] %v4334_v58  ;;  %v4332_v55 = vadd.f32 %v4706_v39, %v4300_v14  ;;  %4363 = vst [vmem:[%s8166_s12 + $0x80] sm:$0xff] %v4331_v54  ;;  %v4145_v45 = vsel %vm414_vm3, %v4117_v6, 0.0  ;;  %v4208_v57 = vadd.f32 %v8049_v44, %v4101_v46 }
 0x4a6   : > { %v5511_v33 = vpop.f32.mrb[27].mxu1  ;;  %v3934_v52 = vpop.f32.mrb[27].mxu0  ;;  %v4209_v3 = vadd.f32 %v8053_v28, %v4145_v45  ;;  %v4100_v40 = vsel %vm2142_vm2, %v4068_v34, %v4084_v62  ;;  %v4116_v30 = vsel %vm2142_vm2, %v4084_v62, %v4068_v34  ;;  %v3932_v37 = vadd.f32 %v8255_v13, %v3931_v26 }
 0x4a7   : > { %4364 = vst [vmem:[%s8166_s12 + $0x88] sm:$0xff] %v4332_v55  ;;  %v4273_v1 = vmul.f32 %v8119_v9, %v4208_v57  ;;  %v4143_v44 = vsel %vm414_vm3, %v4116_v30, 0.0  ;;  %v4206_v15 = vadd.f32 %v8035_v56, %v4100_v40  ;;  %v3943_v53 = vadd.f32 %v5826_v5, %v5506_v25  ;;  %v4709_v56 = vld [vmem:[%s6686_s9 + $0xb0] sm:$0xff]  ;;  %v4716_v57 = vld [vmem:[%s6686_s9 + $0xe8] sm:$0xff] }
 0x4a8   : > { %v4274_v28 = vmul.f32 %v8119_v9, %v4209_v3  ;;  %v4207_v22 = vadd.f32 %v8039_v8, %v4143_v44  ;;  %v4071_v42 = vrot.slane %v3940_v50, 1  ;;  %v5512_v51 = vadd.f32 %v5511_v33, %v5510_v61 }
 0x4a9   : > { %v4305_v13 = vadd.f32 %v8132_v60, %v4273_v1  ;;  %v4271_v36 = vmul.f32 %v8119_v9, %v4206_v15  ;;  %v4087_v18 = vrot.slane %v3943_v53, 1  ;;  %v3935_v32 = vadd.f32 %v8272_v11, %v3934_v52  ;;  %v4713_v53 = vld [vmem:[%s6686_s9 + $0xd0] sm:$0xff] }
 0x4aa   : > { %v4306_v21 = vadd.f32 %v8132_v60, %v4274_v28  ;;  %v4272_v10 = vmul.f32 %v8119_v9, %v4207_v22  ;;  %v4070_v63 = vrot.slane %v3932_v37, 1 }
 0x4ab   : > { %v5513_v7 = vpop.f32.mrb[28].mxu1  ;;  %v5829_v25 = vpop.f32.mrb[28].mxu0  ;;  %v4337_v8 = vadd.f32 %v4711_v20, %v4305_v13  ;;  %v4303_v23 = vadd.f32 %v8132_v60, %v4271_v36  ;;  %v4103_v47 = vsel %vm2142_vm2, %v4071_v42, %v4087_v18  ;;  %v4119_v19 = vsel %vm2142_vm2, %v4087_v18, %v4071_v42  ;;  %v4714_v42 = vld [vmem:[%s6686_s9 + $0xd8] sm:$0xff] }
 0x4ac   : > { %v5514_v11 = vpop.f32.mrb[29].mxu1  ;;  %v3947_v16 = vpop.f32.mrb[29].mxu0  ;;  %v4338_v39 = vadd.f32 %v4712_v12, %v4306_v21  ;;  %v4304_v34 = vadd.f32 %v8132_v60, %v4272_v10  ;;  %v4149_v35 = vsel %vm414_vm3, %v4119_v19, 0.0  ;;  %v4212_v31 = vadd.f32 %v8077_v38, %v4103_v47  ;;  %v4715_v38 = vld [vmem:[%s6686_s9 + $0xe0] sm:$0xff]  ;;  %v8530_v19 = vld [vmem:[#allocation26_spill] sm:$0xff] }
 0x4ad   : > { %v5516_v48 = vpop.f32.mrb[30].mxu1  ;;  %v5830_v41 = vpop.f32.mrb[30].mxu0  ;;  %4369 = vst [vmem:[%s8166_s12 + $0xb0] sm:$0xff] %v4337_v8  ;;  %v4335_v58 = vadd.f32 %v4709_v56, %v4303_v23  ;;  %v4213_v14 = vadd.f32 %v8081_v27, %v4149_v35  ;;  %v4086_v54 = vrot.slane %v3935_v32, 1  ;;  %v5515_v50 = vadd.f32 %v5514_v11, %v5513_v7  ;;  %v4719_v23 = vld [vmem:[%s6686_s9 + $0x100] sm:$0xff]  ;;  %v4720_v11 = vld [vmem:[%s6686_s9 + $0x108] sm:$0xff] }
 0x4ae   : > { %v5517_v24 = vpop.f32.mrb[31].mxu1  ;;  %v3950_v26 = vpop.f32.mrb[31].mxu0  ;;  %4370 = vst [vmem:[%s8166_s12 + $0xb8] sm:$0xff] %v4338_v39  ;;  %v4336_v46 = vadd.f32 %v4710_v49, %v4304_v34  ;;  %v4277_v6 = vmul.f32 %v8119_v9, %v4212_v31  ;;  %v3948_v62 = vadd.f32 %v5509_v2, %v3947_v16  ;;  %v4717_v39 = vld [vmem:[%s6686_s9 + $0xf0] sm:$0xff] }
 0x4af   : > { %v5518_v61 = vadd.f32 %v5517_v24, %v5516_v48  ;;  %4367 = vst [vmem:[%s8166_s12 + $0xa0] sm:$0xff] %v4335_v58  ;;  %v4278_v5 = vmul.f32 %v8119_v9, %v4213_v14  ;;  %v4102_v27 = vsel %vm2142_vm2, %v4070_v63, %v4086_v54  ;;  %v4118_v55 = vsel %vm2142_vm2, %v4086_v54, %v4070_v63  ;;  %v4718_v48 = vld [vmem:[%s6686_s9 + $0xf8] sm:$0xff] }
 0x4b0   : > { %v3956_v45 = vadd.f32 %v5829_v25, %v5515_v50  ;;  %4368 = vst [vmem:[%s8166_s12 + $0xa8] sm:$0xff] %v4336_v46  ;;  %v4309_v33 = vadd.f32 %v8132_v60, %v4277_v6  ;;  %v4147_v2 = vsel %vm414_vm3, %v4118_v55, 0.0  ;;  %v4210_v52 = vadd.f32 %v8063_v4, %v4102_v27  ;;  %v8529_v25 = vld [vmem:[#allocation25_spill] sm:$0xff] }
 0x4b1   : > { %v4310_v3 = vadd.f32 %v8132_v60, %v4278_v5  ;;  %v4211_v40 = vadd.f32 %v8067_v59, %v4147_v2  ;;  %v3959_v30 = vadd.f32 %v5830_v41, %v5518_v61  ;;  %v3951_v44 = vadd.f32 %v5512_v51, %v3950_v26 }
 0x4b2   : > { %v4341_v37 = vadd.f32 %v4715_v38, %v4309_v33  ;;  %v4275_v1 = vmul.f32 %v8119_v9, %v4210_v52  ;;  %v4073_v28 = vrot.slane %v3956_v45, 1  ;;  %v4072_v12 = vrot.slane %v3948_v62, 1 }
 0x4b3   : > { %v4342_v15 = vadd.f32 %v4716_v57, %v4310_v3  ;;  %v4276_v20 = vmul.f32 %v8119_v9, %v4211_v40  ;;  %v4089_v22 = vrot.slane %v3959_v30, 1  ;;  %v4088_v13 = vrot.slane %v3951_v44, 1 }
 0x4b4   : > { %4373 = vst [vmem:[%s8166_s12 + $0xd0] sm:$0xff] %v4341_v37  ;;  %v4307_v4 = vadd.f32 %v8132_v60, %v4275_v1 }
 0x4b5   : > { %4374 = vst [vmem:[%s8166_s12 + $0xd8] sm:$0xff] %v4342_v15  ;;  %v4308_v59 = vadd.f32 %v8132_v60, %v4276_v20  ;;  %v4105_v51 = vsel %vm2142_vm2, %v4073_v28, %v4089_v22  ;;  %v4121_v36 = vsel %vm2142_vm2, %v4089_v22, %v4073_v28  ;;  %v4104_v56 = vsel %vm2142_vm2, %v4072_v12, %v4088_v13 }
 0x4b6   : > { %v4339_v18 = vadd.f32 %v4713_v53, %v4307_v4  ;;  %v4153_v32 = vsel %vm414_vm3, %v4121_v36, 0.0  ;;  %v4216_v21 = vadd.f32 %v8105_v0, %v4105_v51  ;;  %v4120_v7 = vsel %vm2142_vm2, %v4088_v13, %v4072_v12 }
 0x4b7   : > { %v4340_v10 = vadd.f32 %v4714_v42, %v4308_v59  ;;  %v4217_v63 = vadd.f32 %v8109_v43, %v4153_v32  ;;  %v4214_v8 = vadd.f32 %v8529_v25, %v4104_v56  ;;  %v4151_v0 = vsel %vm414_vm3, %v4120_v7, 0.0 }
 0x4b8   : > { %4371 = vst [vmem:[%s8166_s12 + $0xc0] sm:$0xff] %v4339_v18  ;;  %v4281_v49 = vmul.f32 %v8119_v9, %v4216_v21  ;;  %v4215_v43 = vadd.f32 %v8530_v19, %v4151_v0 }
 0x4b9   : > { %4372 = vst [vmem:[%s8166_s12 + $0xc8] sm:$0xff] %v4340_v10  ;;  %v4282_v47 = vmul.f32 %v8119_v9, %v4217_v63  ;;  %v4279_v17 = vmul.f32 %v8119_v9, %v4214_v8 }
 0x4ba   : > { %v4313_v16 = vadd.f32 %v8132_v60, %v4281_v49  ;;  %v4280_v29 = vmul.f32 %v8119_v9, %v4215_v43 }
 0x4bb   : > { %v4314_v34 = vadd.f32 %v8132_v60, %v4282_v47  ;;  %v4311_v35 = vadd.f32 %v8132_v60, %v4279_v17 }
 0x4bc   : > { %v4345_v31 = vadd.f32 %v4719_v23, %v4313_v16  ;;  %v4312_v58 = vadd.f32 %v8132_v60, %v4280_v29 }
 0x4bd   : > { %v4346_v41 = vadd.f32 %v4720_v11, %v4314_v34  ;;  %v4343_v14 = vadd.f32 %v4717_v39, %v4311_v35 }
 0x4be   : > { %4377 = vst [vmem:[%s8166_s12 + $0xf0] sm:$0xff] %v4345_v31  ;;  %v4344_v9 = vadd.f32 %v4718_v48, %v4312_v58 }
 0x4bf   : > { %4378 = vst [vmem:[%s8166_s12 + $0xf8] sm:$0xff] %v4346_v41  ;;  %4375 = vst [vmem:[%s8166_s12 + $0xe0] sm:$0xff] %v4343_v14 }
 0x4c0   : > { %4376 = vst [vmem:[%s8166_s12 + $0xe8] sm:$0xff] %v4344_v9 }
 0x4c1   : > { %6303 = shalt.err (!%p6300_p8)
}
 0x4c2   : > { %s6304_s10 = scalar_lea.hbm %s8424_s18, 4096  ;;  %s6308_s8 = scalar_lea.hbm %s8480_s7, 8192 }
 0x4c3   : > { %p6305_p4 = scmp.ne.s32.totalorder %s8424_s18, %s6304_s10  ;;  %p6309_p3 = scmp.lt.u32.totalorder %s8424_s18, %s8480_s7 }
 0x4c4   : > { %p6310_p6 = scmp.lt.u32.totalorder %s6308_s8, %s6304_s10  ;;  %p6312_p5 = scmp.lt.u32.totalorder %s6304_s10, %s8424_s18 }
 0x4c5   : > { %p6306_p10 = pnand %p6305_p4, %p8531_p9 }
 0x4c6   : > { %p6311_p7 = por %p6310_p6, %p6309_p3 }
 0x4c7   : > { %p6307_p11 = pneg %p6306_p10 }
 0x4c8   : > { %p6313_p12 = por %p6312_p5, %p6311_p7 }
 0x4ca   : > { %p6314_p1 = pnand %p6313_p12, %p6307_p11 }
 0x4cc   : > { %6317 = shalt.err (!%p6314_p1)
}
 0x4cd   : > { %s6383_s23 = smov 128   ;;  %s6384_s19 = smov 8  }
 0x4ce   : > { %5860 = dma.vmem_to_hbm [thread:$0]  (%p8531_p9), %s8426_s29, 4096, %s8424_s18, %s4380_s30, %s6383_s23, %s6383_s23, %s6384_s19  }
 0x4cf PF: > { %s4408_s22 = sand.u32 1, %s6356_s24   ;;  %p8532_p13 = scmp.ne.s32.totalorder %s8499_s17, 0 }
 0x4d0   : > { %p8533_p0 = scmp.ge.s32.totalorder %s6368_s27, 2  ;;  %s4409_s1 = scalar_lea.sflag [#allocation5], %s4408_s22 }
 0x4d2   : > { %p5886_p2 = pnand %p8533_p0, %p8532_p13 }
 0x4d4   : > { %6351 = dma.done.wait (!%p5886_p2), %s4409_s1, 4096  }
 0x4d5   : > { %6353 = vsyncadd (!%p5886_p2), %s4409_s1, 4294963200  ;;  %p23_p8 = scmp.ge.s32.totalorder %s6609_s11, 4   ;;  %s8534_s24 = smov %s6360_s25 }
 0x4d6   : > { %s8535_s25 = smov %s6364_s26  ;;  %s8536_s26 = smov %s6620_s13 }
 0x4d7   : > { %s8537_s27 = smov %s6609_s11  ;;  %25 = sbr.rel (!%p23_p8) target bundleno = 10 (0xa), region = 124 }
 0x4de   :  { %4414 = vsyncpa [#allocation4], 1 }
 0x4df   :  { %4416 = vsyncpa [#allocation4 + $0x1], 1 }
 0x4e0   :  { %4417 = vsyncpa [#allocation7], 1 }
 0x4e1   :  { %4418 = vsyncpa [#allocation10], 1 }
 0x4e2   :  { %4419 = vsyncpa [#allocation13], 1 }
 0x4e3   :  { %4420 = vsyncpa [#allocation5], 1 }
 0x4e4   :  { %4422 = vsyncpa [#allocation5 + $0x1], 1 }

</bundles_post_ra>
